<compile_context>
chip_gen: v6e
topology: v6e:2x2x1
jax: 0.10.0
libtpu: 0.0.40
codegen_flags: <defaults>
</compile_context>

<pallas_src>
import functools

import jax
import jax.numpy as jnp
from jax import lax
from jax.experimental import pallas as pl
from jax.experimental.pallas import tpu as pltpu

BN_EPS = 1e-5
LRELU_SLOPE = 0.01           # nn.LeakyReLU default negative_slope (ref uses default)

TM_FUSED_MAX = 1024          # max rows resident for the single-block fused path
TM_TILE = 1024               # M tile for the large-M (tiled) path
VMEM_BUDGET = 44 * 1024 * 1024   # keep any fused block under this (v7x: 64 MiB phys)


def _round_up(x, m):
    return (x + m - 1) // m * m


def _pick_tk(Kp):
    if Kp <= 1024:
        return Kp                      # single k step: no init/finalize loop
    for t in (512, 384, 256, 128):
        if Kp % t == 0:
            return t
    return 128


def _pick_tc_parallel(Cp):
    # Give the cout ("parallel") grid axis >= 2 steps when possible so both
    # v7x TensorCores get work; 256-wide tiles once Cp >= 512.
    if Cp >= 512 and Cp % 256 == 0:
        return 256
    if Cp >= 256 and Cp % 128 == 0:
        return 128
    return Cp


def _mosaic_params(sem, est_bytes):
    # Explicit scoped-VMEM limit (defaults: 16 MiB v5e / 32 MiB v6e+v7x);
    # capped at 60 MiB so it also fits v7x's 64 MiB physical VMEM.
    limit = int(min(max(2 * est_bytes, 32 * 1024 * 1024), 60 * 1024 * 1024))
    return pltpu.CompilerParams(dimension_semantics=sem, vmem_limit_bytes=limit)


def _apply_act(y, act):
    if act == 'lrelu':
        return jnp.where(y >= 0, y, LRELU_SLOPE * y)
    if act == 'relu':
        return jnp.maximum(y, 0.0)
    if act == 'silu':
        return y * jax.nn.sigmoid(y)
    return y


def _bn_epilogue(y, p_ref, m_actual, use_bn, act):
    """BN (training-mode batch stats) + activation on an f32 accumulator tile.

    Padded rows of `y` are exactly zero (zero-padded patches, conv bias elided
    under BN), so one-pass channel sums need no row mask; divide by m_actual.
    """
    if use_bn:
        gamma = p_ref[0:1, :]
        beta = p_ref[1:2, :]
        inv_m = 1.0 / float(m_actual)
        mean = jnp.sum(y, axis=0, keepdims=True) * inv_m
        var = jnp.sum(y * y, axis=0, keepdims=True) * inv_m - mean * mean
        var = jnp.maximum(var, 0.0)               # guard cancellation -> no NaN
        scale = gamma * lax.rsqrt(var + BN_EPS)
        y = (y - mean) * scale + beta
    else:
        y = y + p_ref[0:1, :]                     # conv bias (no BN)
    return _apply_act(y, act)


# ---------------------------------------------------------------------------
# Pallas kernels
# ---------------------------------------------------------------------------
def _fused_conv_kernel(x_ref, w_ref, p_ref, o_ref, acc_ref, *,
                       m_actual, use_bn, act):
    """Fused conv(+BN+act). grid = (cout_tiles, k_tiles), k innermost."""
    @pl.when(pl.program_id(1) == 0)
    def _():
        acc_ref[...] = jnp.zeros_like(acc_ref)

    acc_ref[...] += jnp.dot(x_ref[...], w_ref[...],
                            preferred_element_type=jnp.float32)

    @pl.when(pl.program_id(1) == pl.num_programs(1) - 1)
    def _():
        o_ref[...] = _bn_epilogue(acc_ref[...], p_ref, m_actual, use_bn,
                                  act).astype(o_ref.dtype)


def _tiled_conv_kernel(x_ref, w_ref, p_ref, o_ref, stat_ref, acc_ref, *,
                       use_bn, act):
    """Large-M matmul. grid = (m_tiles, cout_tiles, k_tiles), k innermost.

    BN path: stores the raw activations in bf16 plus per-(m,cout)-tile channel
    partial sums / sums-of-squares taken from the f32 accumulator, so the BN
    statistics never require another pass over the (M, C) tensor.
    """
    @pl.when(pl.program_id(2) == 0)
    def _():
        acc_ref[...] = jnp.zeros_like(acc_ref)

    acc_ref[...] += jnp.dot(x_ref[...], w_ref[...],
                            preferred_element_type=jnp.float32)

    @pl.when(pl.program_id(2) == pl.num_programs(2) - 1)
    def _():
        y = acc_ref[...]
        if use_bn:
            s1 = jnp.sum(y, axis=0, keepdims=True)            # (1, tc)
            s2 = jnp.sum(y * y, axis=0, keepdims=True)        # (1, tc)
            pad = jnp.zeros((6, s1.shape[1]), jnp.float32)
            stat_ref[...] = jnp.concatenate([s1, s2, pad], axis=0)[None]
            o_ref[...] = y.astype(o_ref.dtype)                # raw, bf16
        else:
            o_ref[...] = _apply_act(y + p_ref[0:1, :], act).astype(o_ref.dtype)


def _bn_act_kernel(y_ref, p_ref, o_ref, *, act):
    """Per-channel affine (precomputed scale/shift) + activation, bf16 in."""
    y = y_ref[...].astype(jnp.float32) * p_ref[0:1, :] + p_ref[1:2, :]
    o_ref[...] = _apply_act(y, act).astype(o_ref.dtype)


def _concat1x1_kernel(xa_ref, xb_ref, wa_ref, wb_ref, p_ref, o_ref, *,
                      m_actual, act):
    """Fused channel-concat + 1x1 conv + BN + act. grid = (cout_tiles,)."""
    y = jnp.dot(xa_ref[...], wa_ref[...], preferred_element_type=jnp.float32)
    y = y + jnp.dot(xb_ref[...], wb_ref[...], preferred_element_type=jnp.float32)
    o_ref[...] = _bn_epilogue(y, p_ref, m_actual, True, act).astype(o_ref.dtype)


# ---------------------------------------------------------------------------
# pallas_call wrappers
# ---------------------------------------------------------------------------
def _fused_call(xp, wp, pp, *, m_actual, use_bn, act, out_dtype):
    Mp, Kp = xp.shape
    Cp = wp.shape[1]
    ob = jnp.dtype(out_dtype).itemsize

    def est(tk_, tc_):
        return (2 * Mp * tk_ * 2 + 2 * tk_ * tc_ * 2 + 2 * 2 * tc_ * 4
                + 2 * Mp * tc_ * ob + Mp * tc_ * 4)

    if Kp <= 1024:
        # Single k step: the x block index is (0, 0) at every grid point, so
        # the patch matrix is DMAed from HBM exactly once even with several
        # cout steps (which give v7x's two TensorCores parallel work).
        tk = Kp
        tc = _pick_tc_parallel(Cp)
    else:
        # Multiple k steps: prefer a single cout step (full-Cp f32 accumulator)
        # so the patch matrix is streamed exactly once over k instead of once
        # per cout tile; shrink tc only if VMEM would overflow.
        tk = _pick_tk(Kp)
        tc = 128
        for cand in (Cp, 1024, 512, 256):
            if (cand <= Cp and Cp % cand == 0 and cand % 128 == 0
                    and est(tk, cand) <= VMEM_BUDGET):
                tc = cand
                break

    grid = (Cp // tc, Kp // tk)
    kernel = functools.partial(_fused_conv_kernel, m_actual=m_actual,
                               use_bn=use_bn, act=act)
    return pl.pallas_call(
        kernel,
        out_shape=jax.ShapeDtypeStruct((Mp, Cp), out_dtype),
        grid_spec=pltpu.PrefetchScalarGridSpec(
            num_scalar_prefetch=0,
            grid=grid,
            in_specs=[
                pl.BlockSpec((Mp, tk), lambda j, k: (0, k)),   # bf16 patches
                pl.BlockSpec((tk, tc), lambda j, k: (k, j)),   # bf16 weights
                pl.BlockSpec((2, tc), lambda j, k: (0, j)),    # gamma/beta | bias
            ],
            out_specs=pl.BlockSpec((Mp, tc), lambda j, k: (0, j)),
            scratch_shapes=[pltpu.VMEM((Mp, tc), jnp.float32)],
        ),
        compiler_params=_mosaic_params(("parallel", "arbitrary"), est(tk, tc)),
    )(xp, wp, pp)


def _tiled_conv_call(xp, wp, pp, *, use_bn, act, out_dtype):
    Mp, Kp = xp.shape
    Cp = wp.shape[1]
    ob = jnp.dtype(out_dtype).itemsize
    tm = min(TM_TILE, Mp)
    tk = _pick_tk(Kp)
    tc = _pick_tc_parallel(Cp)
    mt = Mp // tm
    grid = (mt, Cp // tc, Kp // tk)
    est = (2 * tm * tk * 2 + 2 * tk * tc * 2 + 2 * 2 * tc * 4
           + 2 * tm * tc * ob + 2 * 8 * tc * 4 + tm * tc * 4)
    kernel = functools.partial(_tiled_conv_kernel, use_bn=use_bn, act=act)
    return pl.pallas_call(
        kernel,
        out_shape=(jax.ShapeDtypeStruct((Mp, Cp), out_dtype),
                   jax.ShapeDtypeStruct((mt, 8, Cp), jnp.float32)),
        grid_spec=pltpu.PrefetchScalarGridSpec(
            num_scalar_prefetch=0,
            grid=grid,
            in_specs=[
                pl.BlockSpec((tm, tk), lambda m, j, k: (m, k)),
                pl.BlockSpec((tk, tc), lambda m, j, k: (k, j)),
                pl.BlockSpec((2, tc), lambda m, j, k: (0, j)),
            ],
            out_specs=(pl.BlockSpec((tm, tc), lambda m, j, k: (m, j)),
                       pl.BlockSpec((1, 8, tc), lambda m, j, k: (m, 0, j))),
            scratch_shapes=[pltpu.VMEM((tm, tc), jnp.float32)],
        ),
        compiler_params=_mosaic_params(
            ("parallel", "parallel", "arbitrary"), est),
    )(xp, wp, pp)


def _bn_act_call(y, ss, *, act, out_dtype):
    Mp, Cp = y.shape
    tm = min(TM_TILE, Mp)
    tc = _pick_tc_parallel(Cp)
    grid = (Mp // tm, Cp // tc)
    est = (2 * tm * tc * y.dtype.itemsize + 2 * 2 * tc * 4
           + 2 * tm * tc * jnp.dtype(out_dtype).itemsize)
    kernel = functools.partial(_bn_act_kernel, act=act)
    return pl.pallas_call(
        kernel,
        out_shape=jax.ShapeDtypeStruct((Mp, Cp), out_dtype),
        grid_spec=pltpu.PrefetchScalarGridSpec(
            num_scalar_prefetch=0,
            grid=grid,
            in_specs=[
                pl.BlockSpec((tm, tc), lambda m, j: (m, j)),
                pl.BlockSpec((2, tc), lambda m, j: (0, j)),
            ],
            out_specs=pl.BlockSpec((tm, tc), lambda m, j: (m, j)),
        ),
        compiler_params=_mosaic_params(("parallel", "parallel"), est),
    )(y, ss)


# ---------------------------------------------------------------------------
# Conv wrapper: im2col (glue) + padding + Pallas kernels
# ---------------------------------------------------------------------------
@functools.partial(jax.jit, static_argnames=('ksize', 'stride', 'padding',
                                             'use_bn', 'act', 'out_dtype'))
def conv2d_bn_act(x, w, affine, *, ksize, stride, padding, use_bn, act,
                  out_dtype=jnp.bfloat16):
    # x: (N,H,W,Cin); w: (k,k,Cin,Cout); affine: (2,Cout) = (gamma,beta)|(bias,0)
    N, H, W, Cin = x.shape
    Cout = w.shape[-1]
    xb = x.astype(jnp.bfloat16)
    if padding > 0:
        xb = jnp.pad(xb, ((0, 0), (padding, padding), (padding, padding), (0, 0)))
    OH = (H + 2 * padding - ksize) // stride + 1
    OW = (W + 2 * padding - ksize) // stride + 1

    if ksize == 1 and stride == 1 and padding == 0:
        xcol = xb.reshape(N * OH * OW, Cin)            # 1x1 conv: no im2col
    else:
        # TODO(synk): for stride-1 3x3 convs, replace this materialized im2col
        # with 9 shifted matmuls accumulated inside the kernel (feedback #2).
        patches = []
        for dy in range(ksize):
            for dx in range(ksize):
                patches.append(xb[:, dy:dy + (OH - 1) * stride + 1:stride,
                                   dx:dx + (OW - 1) * stride + 1:stride, :])
        xcol = jnp.stack(patches, axis=3).reshape(N * OH * OW, ksize * ksize * Cin)

    wmat = w.astype(jnp.bfloat16).reshape(ksize * ksize * Cin, Cout)
    M, Kd = xcol.shape
    Kp = _round_up(Kd, 128)
    Cp = _round_up(Cout, 128)
    wp = jnp.pad(wmat, ((0, Kp - Kd), (0, Cp - Cout)))
    pp = jnp.pad(affine.astype(jnp.float32), ((0, 0), (0, Cp - Cout)))

    if _round_up(M, 16) <= TM_FUSED_MAX:
        # Fully fused path: whole M block resident, BN stats inside the kernel.
        Mp = _round_up(M, 16)
        xp = xcol if (Mp == M and Kp == Kd) else jnp.pad(
            xcol, ((0, Mp - M), (0, Kp - Kd)))
        y = _fused_call(xp, wp, pp, m_actual=M, use_bn=use_bn, act=act,
                        out_dtype=out_dtype)
    else:
        # Large-M path: tiled matmul emitting bf16 raw output + in-kernel
        # channel partials, tiny JAX reduction, then bf16 normalize+act kernel.
        Mp = _round_up(M, TM_TILE)
        xp = xcol if (Mp == M and Kp == Kd) else jnp.pad(
            xcol, ((0, Mp - M), (0, Kp - Kd)))
        if use_bn:
            y_raw, stats = _tiled_conv_call(xp, wp, pp, use_bn=True, act=act,
                                            out_dtype=jnp.bfloat16)
            inv_m = 1.0 / float(M)
            mean = jnp.sum(stats[:, 0, :], axis=0) * inv_m
            var = jnp.maximum(jnp.sum(stats[:, 1, :], axis=0) * inv_m
                              - mean * mean, 0.0)
            inv_std = lax.rsqrt(var + BN_EPS)
            scale = pp[0] * inv_std
            shift = pp[1] - mean * scale
            ss = jnp.stack([scale, shift])             # (2, Cp) f32
            y = _bn_act_call(y_raw, ss, act=act, out_dtype=out_dtype)
        else:
            y, _ = _tiled_conv_call(xp, wp, pp, use_bn=False, act=act,
                                    out_dtype=out_dtype)

    return y[:M, :Cout].reshape(N, OH, OW, Cout)


@functools.partial(jax.jit, static_argnames=('act',))
def concat_conv1x1_bn_act(xa, xb, w, affine, *, act):
    """cat([xa, xb], channel) -> 1x1 conv -> BN -> act, without materializing
    the concatenated tensor (two K chunks feed one accumulator)."""
    N, H, W_, Ca = xa.shape
    Cb = xb.shape[-1]
    Cout = w.shape[-1]
    M = N * H * W_
    Mp = _round_up(M, 16)
    Kap = _round_up(Ca, 128)
    Kbp = _round_up(Cb, 128)
    Cp = _round_up(Cout, 128)

    xap = jnp.pad(xa.astype(jnp.bfloat16).reshape(M, Ca),
                  ((0, Mp - M), (0, Kap - Ca)))
    xbp = jnp.pad(xb.astype(jnp.bfloat16).reshape(M, Cb),
                  ((0, Mp - M), (0, Kbp - Cb)))
    wmat = w.astype(jnp.bfloat16).reshape(Ca + Cb, Cout)
    wap = jnp.pad(wmat[:Ca], ((0, Kap - Ca), (0, Cp - Cout)))
    wbp = jnp.pad(wmat[Ca:], ((0, Kbp - Cb), (0, Cp - Cout)))
    pp = jnp.pad(affine.astype(jnp.float32), ((0, 0), (0, Cp - Cout)))

    tc = _pick_tc_parallel(Cp)
    grid = (Cp // tc,)
    est = (2 * Mp * (Kap + Kbp) * 2 + 2 * (Kap + Kbp) * tc * 2
           + 2 * 2 * tc * 4 + 2 * Mp * tc * 2)
    kernel = functools.partial(_concat1x1_kernel, m_actual=M, act=act)
    y = pl.pallas_call(
        kernel,
        out_shape=jax.ShapeDtypeStruct((Mp, Cp), jnp.bfloat16),
        grid_spec=pltpu.PrefetchScalarGridSpec(
            num_scalar_prefetch=0,
            grid=grid,
            in_specs=[
                pl.BlockSpec((Mp, Kap), lambda j: (0, 0)),
                pl.BlockSpec((Mp, Kbp), lambda j: (0, 0)),
                pl.BlockSpec((Kap, tc), lambda j: (0, j)),
                pl.BlockSpec((Kbp, tc), lambda j: (0, j)),
                pl.BlockSpec((2, tc), lambda j: (0, j)),
            ],
            out_specs=pl.BlockSpec((Mp, tc), lambda j: (0, j)),
        ),
        compiler_params=_mosaic_params(("parallel",), est),
    )(xap, xbp, wap, wbp, pp)
    return y[:M, :Cout].reshape(N, H, W_, Cout)


def cnn_block(x, p, k, stride=1, padding=0, act='lrelu'):
    affine = jnp.stack([p['gamma'], p['beta']])
    return conv2d_bn_act(x, p['w'], affine, ksize=k, stride=stride,
                         padding=padding, use_bn=True, act=act,
                         out_dtype=jnp.bfloat16)


def concat_cnn_block(xa, xb, p, act='lrelu'):
    M = xa.shape[0] * xa.shape[1] * xa.shape[2]
    if _round_up(M, 16) > TM_FUSED_MAX or (xa.shape[-1] + xb.shape[-1]) > 4096:
        x = jnp.concatenate([xa, xb], axis=-1)         # fallback: materialize
        return cnn_block(x, p, 1, act=act)
    affine = jnp.stack([p['gamma'], p['beta']])
    return concat_conv1x1_bn_act(xa, xb, p['w'], affine, act=act)


def plain_conv(x, p, k, stride=1, padding=0):
    affine = jnp.stack([p['b'], jnp.zeros_like(p['b'])])
    return conv2d_bn_act(x, p['w'], affine, ksize=k, stride=stride,
                         padding=padding, use_bn=False, act='none',
                         out_dtype=jnp.float32)


def upsample2(x):  # nn.Upsample(scale_factor=2), nearest
    return jnp.repeat(jnp.repeat(x, 2, axis=1), 2, axis=2)


# ---------------------------------------------------------------------------
# Model (functional mirror of the PyTorch modules)
# ---------------------------------------------------------------------------
def block_apply(x, p, shortcut):
    sc = x
    y = cnn_block(x, p['conv_1'], 1)
    y = cnn_block(y, p['conv_2'], 3, padding=1)
    if shortcut and sc.shape == y.shape:
        y = y + sc
    return y


def residual_apply(x, plist, shortcut):
    for bp in plist:
        x = block_apply(x, bp, shortcut)
    return x


def prediction_apply(x, p, n_classes):
    N, H, W, _ = x.shape
    y = cnn_block(x, p['cnn'], 3, padding=1)          # C -> 2C
    y = plain_conv(y, p['conv'], 1)                   # 2C -> (nc+5)*3, f32
    # PyTorch: view(N, 3, nc+5, H, W).permute(0,1,3,4,2) from NCHW
    y = y.reshape(N, H, W, 3, n_classes + 5)
    return jnp.transpose(y, (0, 3, 1, 2, 4))          # (N, 3, H, W, nc+5)


def head_apply(x, p, n_classes, scaled):
    x = residual_apply(x, p['conv_set'], shortcut=False)
    x = cnn_block(x, p['conv1'], 1)
    output = prediction_apply(x, p['prediction'], n_classes)
    if scaled:
        x = cnn_block(x, p['conv2'], 1)
        x = upsample2(x)
        return x, output
    return output


def darknet_apply(x, p):
    x = cnn_block(x, p['conv'], 3, padding=1)
    x = cnn_block(x, p['conv1'], 3, stride=2, padding=1)
    x = residual_apply(x, p['res1'], shortcut=True)
    x = cnn_block(x, p['conv2'], 3, stride=2, padding=1)
    x = residual_apply(x, p['res2'], shortcut=True)
    x = cnn_block(x, p['conv3'], 3, stride=2, padding=1)
    x36 = residual_apply(x, p['res3'], shortcut=True)
    x = cnn_block(x36, p['conv4'], 3, stride=2, padding=1)
    x61 = residual_apply(x, p['res4'], shortcut=True)
    x = cnn_block(x61, p['conv5'], 3, stride=2, padding=1)
    x = residual_apply(x, p['res5'], shortcut=False)
    assert x.shape[-1] == 1024 and x36.shape[-1] == 256 and x61.shape[-1] == 512
    return x, x36, x61


def yolov3_apply(x, p, n_classes):
    x, x36, x61 = darknet_apply(x, p['backbone'])
    x79, yolo82 = head_apply(x, p['head1'], n_classes, True)
    # torch.cat(dim=1) + conv21 fused into one kernel (no materialized concat).
    x79 = concat_cnn_block(x79, x61, p['conv21'])
    x79 = cnn_block(x79, p['conv22'], 3, padding=1)
    x91, yolo94 = head_apply(x79, p['head2'], n_classes, True)
    x91 = concat_cnn_block(x91, x36, p['conv31'])
    x91 = cnn_block(x91, p['conv32'], 3, padding=1)
    yolo106 = head_apply(x91, p['head3'], n_classes, False)
    return yolo82, yolo94, yolo106


# ---------------------------------------------------------------------------
# Deterministic synthetic parameter initialization (mirrors __init__ shapes)
# ---------------------------------------------------------------------------
class KeyGen:
    def __init__(self, key):
        self.key = key
        self.i = 0

    def __call__(self):
        self.i += 1
        return jax.random.fold_in(self.key, self.i)


def init_conv(key, cin, cout, k, use_bn):
    kw, kb, kg, kbe = jax.random.split(key, 4)
    p = {'w': 0.05 * jax.random.normal(kw, (k, k, cin, cout), jnp.float32),
         'b': 0.05 * jax.random.normal(kb, (cout,), jnp.float32)}
    if use_bn:
        p['gamma'] = 1.0 + 0.1 * jax.random.normal(kg, (cout,), jnp.float32)
        p['beta'] = 0.05 * jax.random.normal(kbe, (cout,), jnp.float32)
    return p


def init_cnnblock(kg, cin, cout, k):
    return init_conv(kg(), cin, cout, k, use_bn=True)


def init_block(kg, cin, cout):
    hidden = int(cout * 0.5)
    return {'conv_1': init_cnnblock(kg, cin, hidden, 1),
            'conv_2': init_cnnblock(kg, hidden, cout, 3)}


def init_residual(kg, cin, cout, n_block):
    return [init_block(kg, cin, cout) for _ in range(n_block)]


def init_prediction(kg, cin, n_classes):
    return {'cnn': init_cnnblock(kg, cin, cin * 2, 3),
            'conv': init_conv(kg(), cin * 2, (n_classes + 5) * 3, 1, use_bn=False)}


def init_head(kg, cin, cout, n_block, n_classes, scaled):
    p = {'conv_set': init_residual(kg, cin, cin, n_block),
         'conv1': init_cnnblock(kg, cin, cout, 1),
         'prediction': init_prediction(kg, cout, n_classes)}
    if scaled:
        p['conv2'] = init_cnnblock(kg, cout, cout // 2, 1)
    return p


def init_darknet(kg):
    return {
        'conv': init_cnnblock(kg, 3, 32, 3),
        'conv1': init_cnnblock(kg, 32, 64, 3),
        'res1': init_residual(kg, 64, 64, 1),
        'conv2': init_cnnblock(kg, 64, 128, 3),
        'res2': init_residual(kg, 128, 128, 2),
        'conv3': init_cnnblock(kg, 128, 256, 3),
        'res3': init_residual(kg, 256, 256, 8),
        'conv4': init_cnnblock(kg, 256, 512, 3),
        'res4': init_residual(kg, 512, 512, 8),
        'conv5': init_cnnblock(kg, 512, 1024, 3),
        'res5': init_residual(kg, 1024, 1024, 4),
    }


def init_yolov3(key, n_classes):
    kg = KeyGen(key)
    return {
        'backbone': init_darknet(kg),
        'head1': init_head(kg, 1024, 512, 3, n_classes, True),
        'head2': init_head(kg, 512, 256, 3, n_classes, True),
        'conv21': init_cnnblock(kg, 256 * 3, 256, 1),
        'conv22': init_cnnblock(kg, 256, 512, 3),
        'head3': init_head(kg, 256, 128, 3, n_classes, False),
        'conv31': init_cnnblock(kg, 128 * 3, 128, 1),
        'conv32': init_cnnblock(kg, 128, 256, 3),
    }


# ---------------------------------------------------------------------------
if __name__ == "__main__":
    key = jax.random.PRNGKey(0)
    n_classes = 80

    params = init_yolov3(jax.random.fold_in(key, 1), n_classes)

    # Small input consistent with the module: (batch=2, 3, 32, 32) NCHW.
    x_nchw = jax.random.normal(jax.random.fold_in(key, 2), (2, 3, 32, 32),
                               jnp.float32)
    x = jnp.transpose(x_nchw, (0, 2, 3, 1))  # -> NHWC for the kernels

    yolo82, yolo94, yolo106 = yolov3_apply(x, params, n_classes)
    jax.block_until_ready((yolo82, yolo94, yolo106))

    assert yolo82.shape == (2, 3, 1, 1, n_classes + 5), yolo82.shape
    assert yolo94.shape == (2, 3, 2, 2, n_classes + 5), yolo94.shape
    assert yolo106.shape == (2, 3, 4, 4, n_classes + 5), yolo106.shape
    assert all(bool(jnp.isfinite(y.astype(jnp.float32)).all())
               for y in (yolo82, yolo94, yolo106))

    print("KERNEL_OK")
</pallas_src>

<mosaic_0001>
module attributes {stable_mosaic.version = 11 : i64} {
  func.func @_tiled_conv_kernel(%arg0: i32, %arg1: i32, %arg2: i32, %arg3: memref<1024x128xbf16, #tpu.memory_space<vmem>>, %arg4: memref<128x128xbf16, #tpu.memory_space<vmem>>, %arg5: memref<2x128xf32, #tpu.memory_space<vmem>>, %arg6: memref<1024x128xbf16, #tpu.memory_space<vmem>>, %arg7: memref<1x8x128xf32, #tpu.memory_space<vmem>>, %arg8: memref<1024x128xf32, #tpu.memory_space<vmem>>) attributes {dimension_semantics = [#tpu.dimension_semantics<parallel>, #tpu.dimension_semantics<parallel>, #tpu.dimension_semantics<arbitrary>], iteration_bounds = array<i64: 2, 1, 1>, scalar_prefetch = 0 : i64, scratch_operands = 1 : i64, tpu.core_type = #tpu.core_type<tc>, window_params = [{transform_indices = @transform_0, window_bounds = array<i64: 1024, 128>}, {transform_indices = @transform_1, window_bounds = array<i64: 128, 128>}, {transform_indices = @transform_2, window_bounds = array<i64: 2, 128>}, {transform_indices = @transform_3, window_bounds = array<i64: 1024, 128>}, {transform_indices = @transform_4, window_bounds = array<i64: 1, 8, 128>}]} {
    %c0_i32 = arith.constant 0 : i32
    %0 = arith.cmpi eq, %arg2, %c0_i32 : i32
    %1 = arith.extui %0 : i1 to i32
    %c0_i32_0 = arith.constant 0 : i32
    %2 = arith.cmpi ne, %1, %c0_i32_0 : i32
    scf.if %2 {
      %cst_10 = arith.constant 0.000000e+00 : f32
      %12 = vector.broadcast %cst_10 : f32 to vector<1024x128xf32>
      %c0_11 = arith.constant 0 : index
      %c0_12 = arith.constant 0 : index
      %13 = vector.load %arg8[%c0_11, %c0_12] : memref<1024x128xf32, #tpu.memory_space<vmem>>, vector<1024x128xf32>
      tpu.vector_store %arg8[%c0_11, %c0_12], %12 {strides = array<i32>} : memref<1024x128xf32, #tpu.memory_space<vmem>>, vector<1024x128xf32>,
    } else {
    }
    %c0 = arith.constant 0 : index
    %c0_1 = arith.constant 0 : index
    %3 = vector.load %arg8[%c0, %c0_1] : memref<1024x128xf32, #tpu.memory_space<vmem>>, vector<1024x128xf32>
    %c0_2 = arith.constant 0 : index
    %c0_3 = arith.constant 0 : index
    %4 = vector.load %arg3[%c0_2, %c0_3] : memref<1024x128xbf16, #tpu.memory_space<vmem>>, vector<1024x128xbf16>
    %c0_4 = arith.constant 0 : index
    %c0_5 = arith.constant 0 : index
    %5 = vector.load %arg4[%c0_4, %c0_5] : memref<128x128xbf16, #tpu.memory_space<vmem>>, vector<128x128xbf16>
    %cst = arith.constant dense<0.000000e+00> : vector<1024x128xf32>
    %6 = tpu.matmul %4, %5, %cst {dimension_numbers = #tpu.dot_dimension_numbers<[1], [0], [0], [1], [0, 0, 1, 1], [], []>} : vector<1024x128xbf16>, vector<128x128xbf16>, vector<1024x128xf32> -> vector<1024x128xf32>
    %7 = arith.addf %3, %6 : vector<1024x128xf32>
    %c0_6 = arith.constant 0 : index
    %c0_7 = arith.constant 0 : index
    %8 = vector.load %arg8[%c0_6, %c0_7] : memref<1024x128xf32, #tpu.memory_space<vmem>>, vector<1024x128xf32>
    tpu.vector_store %arg8[%c0_6, %c0_7], %7 {strides = array<i32>} : memref<1024x128xf32, #tpu.memory_space<vmem>>, vector<1024x128xf32>,
    %c0_i32_8 = arith.constant 0 : i32
    %9 = arith.cmpi eq, %arg2, %c0_i32_8 : i32
    %10 = arith.extui %9 : i1 to i32
    %c0_i32_9 = arith.constant 0 : i32
    %11 = arith.cmpi ne, %10, %c0_i32_9 : i32
    scf.if %11 {
      %c0_10 = arith.constant 0 : index
      %c0_11 = arith.constant 0 : index
      %12 = vector.load %arg8[%c0_10, %c0_11] : memref<1024x128xf32, #tpu.memory_space<vmem>>, vector<1024x128xf32>
      %cst_12 = arith.constant dense<0.000000e+00> : vector<128xf32>
      %13 = vector.multi_reduction <add>, %12, %cst_12 [0] : vector<1024x128xf32> to vector<128xf32>
      %14 = vector.shape_cast %13 : vector<128xf32> to vector<1x128xf32>
      %15 = arith.mulf %12, %12 : vector<1024x128xf32>
      %cst_13 = arith.constant dense<0.000000e+00> : vector<128xf32>
      %16 = vector.multi_reduction <add>, %15, %cst_13 [0] : vector<1024x128xf32> to vector<128xf32>
      %17 = vector.shape_cast %16 : vector<128xf32> to vector<1x128xf32>
      %cst_14 = arith.constant 0.000000e+00 : f32
      %18 = vector.broadcast %cst_14 : f32 to vector<6x128xf32>
      %19 = tpu.concatenate %14, %17, %18 in 0 : vector<1x128xf32>, vector<1x128xf32>, vector<6x128xf32> -> vector<8x128xf32>
      %20 = vector.shape_cast %19 : vector<8x128xf32> to vector<1x8x128xf32>
      %c0_15 = arith.constant 0 : index
      %c0_16 = arith.constant 0 : index
      %c0_17 = arith.constant 0 : index
      %21 = vector.load %arg7[%c0_15, %c0_16, %c0_17] : memref<1x8x128xf32, #tpu.memory_space<vmem>>, vector<1x8x128xf32>
      tpu.vector_store %arg7[%c0_15, %c0_16, %c0_17], %20 {strides = array<i32>} : memref<1x8x128xf32, #tpu.memory_space<vmem>>, vector<1x8x128xf32>,
      %22 = arith.truncf %12 : vector<1024x128xf32> to vector<1024x128xbf16>
      %c0_18 = arith.constant 0 : index
      %c0_19 = arith.constant 0 : index
      %23 = vector.load %arg6[%c0_18, %c0_19] : memref<1024x128xbf16, #tpu.memory_space<vmem>>, vector<1024x128xbf16>
      tpu.vector_store %arg6[%c0_18, %c0_19], %22 {strides = array<i32>} : memref<1024x128xbf16, #tpu.memory_space<vmem>>, vector<1024x128xbf16>,
    } else {
    }
    return
  }
  func.func @transform_0(%arg0: i32, %arg1: i32, %arg2: i32) -> (i32, i32) {
    %c0_i32 = arith.constant 0 : i32
    return %arg0, %arg2 : i32, i32
  }
  func.func @transform_1(%arg0: i32, %arg1: i32, %arg2: i32) -> (i32, i32) {
    %c0_i32 = arith.constant 0 : i32
    return %arg2, %arg1 : i32, i32
  }
  func.func @transform_2(%arg0: i32, %arg1: i32, %arg2: i32) -> (i32, i32) {
    %c0_i32 = arith.constant 0 : i32
    %c0_i32_0 = arith.constant 0 : i32
    return %c0_i32, %arg1 : i32, i32
  }
  func.func @transform_3(%arg0: i32, %arg1: i32, %arg2: i32) -> (i32, i32) {
    %c0_i32 = arith.constant 0 : i32
    return %arg0, %arg1 : i32, i32
  }
  func.func @transform_4(%arg0: i32, %arg1: i32, %arg2: i32) -> (i32, i32, i32) {
    %c0_i32 = arith.constant 0 : i32
    %c0_i32_0 = arith.constant 0 : i32
    return %arg0, %c0_i32, %arg1 : i32, i32, i32
  }
}

module attributes {stable_mosaic.version = 11 : i64} {
  func.func @_bn_act_kernel(%arg0: i32, %arg1: i32, %arg2: memref<1024x128xbf16, #tpu.memory_space<vmem>>, %arg3: memref<2x128xf32, #tpu.memory_space<vmem>>, %arg4: memref<1024x128xbf16, #tpu.memory_space<vmem>>) attributes {dimension_semantics = [#tpu.dimension_semantics<parallel>, #tpu.dimension_semantics<parallel>], iteration_bounds = array<i64: 2, 1>, scalar_prefetch = 0 : i64, scratch_operands = 0 : i64, tpu.core_type = #tpu.core_type<tc>, window_params = [{transform_indices = @transform_0, window_bounds = array<i64: 1024, 128>}, {transform_indices = @transform_1, window_bounds = array<i64: 2, 128>}, {transform_indices = @transform_2, window_bounds = array<i64: 1024, 128>}]} {
    %c0 = arith.constant 0 : index
    %c0_0 = arith.constant 0 : index
    %0 = vector.load %arg2[%c0, %c0_0] : memref<1024x128xbf16, #tpu.memory_space<vmem>>, vector<1024x128xbf16>
    %1 = arith.extf %0 : vector<1024x128xbf16> to vector<1024x128xf32>
    %c0_1 = arith.constant 0 : index
    %c0_2 = arith.constant 0 : index
    %2 = vector.load %arg3[%c0_1, %c0_2] : memref<2x128xf32, #tpu.memory_space<vmem>>, vector<1x128xf32>
    %3 = vector.broadcast %2 : vector<1x128xf32> to vector<1024x128xf32>
    %4 = arith.mulf %1, %3 : vector<1024x128xf32>
    %c1 = arith.constant 1 : index
    %c0_3 = arith.constant 0 : index
    %5 = vector.load %arg3[%c1, %c0_3] : memref<2x128xf32, #tpu.memory_space<vmem>>, vector<1x128xf32>
    %6 = vector.broadcast %5 : vector<1x128xf32> to vector<1024x128xf32>
    %7 = arith.addf %4, %6 : vector<1024x128xf32>
    %cst = arith.constant 0.000000e+00 : f32
    %8 = vector.broadcast %cst : f32 to vector<1024x128xf32>
    %9 = arith.cmpf oge, %7, %8 : vector<1024x128xf32>
    %cst_4 = arith.constant 0.00999999977 : f32
    %10 = vector.broadcast %cst_4 : f32 to vector<1024x128xf32>
    %11 = arith.mulf %10, %7 : vector<1024x128xf32>
    %12 = arith.select %9, %7, %11 : vector<1024x128xi1>, vector<1024x128xf32>
    %13 = arith.truncf %12 : vector<1024x128xf32> to vector<1024x128xbf16>
    %c0_5 = arith.constant 0 : index
    %c0_6 = arith.constant 0 : index
    %14 = vector.load %arg4[%c0_5, %c0_6] : memref<1024x128xbf16, #tpu.memory_space<vmem>>, vector<1024x128xbf16>
    tpu.vector_store %arg4[%c0_5, %c0_6], %13 {strides = array<i32>} : memref<1024x128xbf16, #tpu.memory_space<vmem>>, vector<1024x128xbf16>,
    return
  }
  func.func @transform_0(%arg0: i32, %arg1: i32) -> (i32, i32) {
    %c0_i32 = arith.constant 0 : i32
    return %arg0, %arg1 : i32, i32
  }
  func.func @transform_1(%arg0: i32, %arg1: i32) -> (i32, i32) {
    %c0_i32 = arith.constant 0 : i32
    %c0_i32_0 = arith.constant 0 : i32
    return %c0_i32, %arg1 : i32, i32
  }
  func.func @transform_2(%arg0: i32, %arg1: i32) -> (i32, i32) {
    %c0_i32 = arith.constant 0 : i32
    return %arg0, %arg1 : i32, i32
  }
}

</mosaic_0001>

<bundles_post_ra>
// kernel: conv2d_bn_act.3
= control target key start
LH: loop header
LB: loop body
LE: loop exit
PB: predicated region body
PF: predicated region fallthrough
CT: control target
= control target key end

     0   :  { %7 = vsyncpa [#allocation3], 0  ;;  %s3497_s0 = inlined_call_operand.vmem [shape: bf16[2048,128], index: 0, kind: input, shape index: {}]   ;;  %s3498_s1 = inlined_call_operand.vmem [shape: f32[2,128], index: 1, kind: input, shape index: {}]   ;;  %s3499_s2 = inlined_call_operand.hbm [shape: bf16[2048,128], index: 2, kind: output, shape index: {}]  }
   0x1   :  { %9 = vsyncpa [#allocation3 + $0x1], 0  ;;  %s2968_s9 = smov 0   ;;  %s2970_s10 = smov 0  }
   0x2   :  { %s2972_s11 = smov 0   ;;  %s2974_s12 = smov 0  }
   0x3   :  { %s2976_s13 = smov 0   ;;  %s2978_s14 = smov 0  }
   0x4 LB: > { %s1838_s15 = sadd.s32 4294967295, %s2948_s14   ;;  %s1839_s16 = sadd.s32 4294967294, %s2948_s14   ;;  %s2948_s14 = sphi %s2978_s14, %s15_s14   ;;  %s2944_s13 = sphi %s2976_s13, %s3506_s13   ;;  %s2940_s12 = sphi %s2974_s12, %s3505_s12   ;;  %s2936_s11 = sphi %s2972_s11, %s3504_s11   ;;  %s2932_s10 = sphi %s2970_s10, %s3503_s10   ;;  %s2928_s9 = sphi %s2968_s9, %s3502_s9  }
   0x5   : > { %s27_s17 = sadd.s32 1, %s2944_s13  ;;  %s90_s18 = sadd.s32 1, %s2936_s11 }
   0x6   : > { %p29_p0 = scmp.ge.s32.totalorder %s27_s17, 2  ;;  %p100_p1 = scmp.ne.s32.totalorder %s2936_s11, %s2932_s10 }
   0x7   : > { %p101_p2 = scmp.eq.s32.totalorder %s1838_s15, 1  ;;  %p106_p3 = scmp.ne.s32.totalorder %s2932_s10, %s2928_s9 }
   0x8   : > { %s3508_s17 = smov (%p29_p0, %s27_s17), 0  ;;  %p107_p5 = scmp.eq.s32.totalorder %s1839_s16, 1 }
   0x9   : > { %p3008_p4 = por %p101_p2, %p100_p1  ;;  %s85_s20 = ssub.s32 %s2944_s13, %s3508_s17 }
   0xa   : > { %p1843_p6 = scmp.ge.s32.totalorder %s2948_s14, 1  ;;  %p88_p7 = scmp.eq.s32.totalorder %s85_s20, 0 }
   0xb   : > { %p3015_p8 = por %p107_p5, %p106_p3  ;;  %p144_p9 = scmp.lt.s32.totalorder %s2948_s14, 3 }
   0xc   : > { %s3021_s22 = scalar_select %p88_p7, %s2936_s11, %s90_s18  }
   0xd   : > { %p145_p10 = pnand %p1843_p6, %p144_p9 }
   0xe   : > { %s1845_s23 = sshll.u32 (!%p145_p10), %s2940_s12, 7  ;;  %s170_s4 = sand.u32 (!%p145_p10), 1, %s2932_s10  }
   0xf   : > { %148 = sbr.rel (%p145_p10) target bundleno = 249 (0xf9), region = 28  ;;  %p174_p11 = scmp.lt.s32.totalorder (!%p145_p10), %s1845_s23, 255 }
  0x10   : > { %s1844_s5 = sshll.u32 (!%p145_p10), %s170_s4, 9  ;;  %s2110_s18 = sshll.u32 (!%p145_p10), %s2940_s12, 13 }
  0x11   : > { %s3064_s6 = scalar_lea.vmem (!%p145_p10), [#allocation2], %s1844_s5  ;;  %s3444_s25 = scalar_lea.hbm (!%p145_p10), %s3499_s2, %s2110_s18 }
  0x12   : > { %s1748_s20 = sshll.u32 (!%p145_p10), %s3064_s6, 4  ;;  %s3452_s12 = scalar_lea.sflag (!%p145_p10), [#allocation3], %s170_s4  ;;  %s3446_s20 = int_to_ptr.vmem [resolvable:$true] %s1748_s20 }
  0x13   : > { %s2872_s26 = scalar_lea.vmem (!%p145_p10), %s3446_s20, 8192 }
  0x14   : > { %s3510_s23 = smov (!%p174_p11, %s1845_s23), 255  ;;  %v3032_v0 = vld [vmem:[%s3498_s1] ss:$0 sm:$0xff]  ;;  %v3041_v9 = vld [vmem:[%s3498_s1 + $0x1] ss:$0 sm:$0xff]  ;;  %p2873_p12 = scmp.ne.s32.totalorder %s3446_s20, %s2872_s26 }
  0x15   : > { %s1846_s24 = sshll.u32 %s3510_s23, 2 }
  0x16   : > { %s3027_s27 = scalar_lea.vmem %s3497_s0, %s1846_s24  ;;  %p2874_p13 = pnand %p2873_p12, %p3008_p4 }
  0x17   : > { %v2112_v1 = vld [vmem:[%s3027_s27] sm:$0xff]   ;;  %v2687_v2 = vld [vmem:[%s3027_s27 + $0x8] sm:$0xff]   ;;  %v2688_v3 = vld [vmem:[%s3027_s27 + $0x10] sm:$0xff]  }
  0x18   : > { %v2113_v4 = vunpack.c.l.bf16 %v2112_v1  ;;  %v2114_v5 = vunpack.c.h.bf16 %v2112_v1  ;;  %v2117_v6 = vunpack.c.l.bf16 %v2687_v2  ;;  %v2118_v7 = vunpack.c.h.bf16 %v2687_v2  ;;  %v2689_v8 = vld [vmem:[%s3027_s27 + $0x18] sm:$0xff]   ;;  %v2690_v36 = vld [vmem:[%s3027_s27 + $0x20] sm:$0xff]   ;;  %v2691_v41 = vld [vmem:[%s3027_s27 + $0x28] sm:$0xff]   ;;  %p2875_p0 = pneg %p2874_p13 }
  0x19   : > { %v2121_v10 = vunpack.c.l.bf16 %v2688_v3  ;;  %v2122_v11 = vunpack.c.h.bf16 %v2688_v3  ;;  %v2125_v12 = vunpack.c.l.bf16 %v2689_v8  ;;  %v2126_v13 = vunpack.c.h.bf16 %v2689_v8  ;;  %v2692_v52 = vld [vmem:[%s3027_s27 + $0x30] sm:$0xff]   ;;  %v2693_v53 = vld [vmem:[%s3027_s27 + $0x38] sm:$0xff]  }
  0x1a   : > { %v448_v14 = vmul.f32 %v2113_v4, %v3032_v0  ;;  %v449_v15 = vmul.f32 %v2114_v5, %v3032_v0  ;;  %v450_v16 = vmul.f32 %v2117_v6, %v3032_v0  ;;  %v451_v17 = vmul.f32 %v2118_v7, %v3032_v0 }
  0x1b   : > { %v452_v18 = vmul.f32 %v2121_v10, %v3032_v0  ;;  %v453_v19 = vmul.f32 %v2122_v11, %v3032_v0  ;;  %v454_v20 = vmul.f32 %v2125_v12, %v3032_v0  ;;  %v455_v21 = vmul.f32 %v2126_v13, %v3032_v0 }
  0x1c   : > { %v581_v22 = vadd.f32 %v3041_v9, %v448_v14  ;;  %v582_v23 = vadd.f32 %v3041_v9, %v449_v15  ;;  %v583_v24 = vadd.f32 %v3041_v9, %v450_v16  ;;  %v584_v25 = vadd.f32 %v3041_v9, %v451_v17 }
  0x1d   : > { %v585_v26 = vadd.f32 %v3041_v9, %v452_v18  ;;  %v586_v27 = vadd.f32 %v3041_v9, %v453_v19  ;;  %v587_v28 = vadd.f32 %v3041_v9, %v454_v20  ;;  %v588_v29 = vadd.f32 %v3041_v9, %v455_v21  ;;  %v2694_v20 = vld [vmem:[%s3027_s27 + $0x40] sm:$0xff]  }
  0x1e   : > { %vm709_vm0 = vcmp.ge.f32.partialorder %v581_v22, 0.0  ;;  %vm710_vm1 = vcmp.ge.f32.partialorder %v582_v23, 0.0  ;;  %v837_v30 = vmul.f32 0.01, %v581_v22  ;;  %v838_v31 = vmul.f32 0.01, %v582_v23 }
  0x1f   : > { %vm711_vm2 = vcmp.ge.f32.partialorder %v583_v24, 0.0  ;;  %vm712_vm3 = vcmp.ge.f32.partialorder %v584_v25, 0.0  ;;  %v839_v32 = vmul.f32 0.01, %v583_v24  ;;  %v840_v33 = vmul.f32 0.01, %v584_v25 }
  0x20   : > { %v965_v34 = vsel %vm709_vm0, %v581_v22, %v837_v30  ;;  %v966_v35 = vsel %vm710_vm1, %v582_v23, %v838_v31  ;;  %vm713_vm4 = vcmp.ge.f32.partialorder %v585_v26, 0.0  ;;  %vm714_vm5 = vcmp.ge.f32.partialorder %v586_v27, 0.0 }
  0x21   : > { %v2370_v37 = vpack.c.bf16 %v966_v35, %v965_v34  ;;  %v967_v38 = vsel %vm711_vm2, %v583_v24, %v839_v32  ;;  %v968_v39 = vsel %vm712_vm3, %v584_v25, %v840_v33  ;;  %v841_v40 = vmul.f32 0.01, %v585_v26  ;;  %v2695_v24 = vld [vmem:[%s3027_s27 + $0x48] sm:$0xff]  }
  0x22   : > { %v2375_v42 = vpack.c.bf16 %v968_v39, %v967_v38  ;;  %v842_v43 = vmul.f32 0.01, %v586_v27  ;;  %vm715_vm6 = vcmp.ge.f32.partialorder %v587_v28, 0.0  ;;  %vm716_vm7 = vcmp.ge.f32.partialorder %v588_v29, 0.0 }
  0x23   : > { %2371 = vst [vmem:[%s3064_s6] sm:$0xff] %v2370_v37   ;;  %v969_v44 = vsel %vm713_vm4, %v585_v26, %v841_v40  ;;  %v843_v45 = vmul.f32 0.01, %v587_v28  ;;  %v844_v46 = vmul.f32 0.01, %v588_v29  ;;  %v2129_v47 = vunpack.c.l.bf16 %v2690_v36 }
  0x24   : > { %2750 = vst [vmem:[%s3064_s6 + $0x8] sm:$0xff] %v2375_v42   ;;  %v970_v48 = vsel %vm714_vm5, %v586_v27, %v842_v43  ;;  %v2130_v49 = vunpack.c.h.bf16 %v2690_v36  ;;  %v2133_v50 = vunpack.c.l.bf16 %v2691_v41  ;;  %v2134_v51 = vunpack.c.h.bf16 %v2691_v41  ;;  %v2696_v36 = vld [vmem:[%s3027_s27 + $0x50] sm:$0xff]  }
  0x25   : > { %v2380_v54 = vpack.c.bf16 %v970_v48, %v969_v44  ;;  %v971_v55 = vsel %vm715_vm6, %v587_v28, %v843_v45  ;;  %v972_v56 = vsel %vm716_vm7, %v588_v29, %v844_v46  ;;  %v456_v57 = vmul.f32 %v2129_v47, %v3032_v0 }
  0x26   : > { %v2385_v58 = vpack.c.bf16 %v972_v56, %v971_v55  ;;  %v457_v59 = vmul.f32 %v2130_v49, %v3032_v0  ;;  %v458_v60 = vmul.f32 %v2133_v50, %v3032_v0  ;;  %v459_v61 = vmul.f32 %v2134_v51, %v3032_v0  ;;  %v2697_v55 = vld [vmem:[%s3027_s27 + $0x58] sm:$0xff]  }
  0x27   : > { %2751 = vst [vmem:[%s3064_s6 + $0x10] sm:$0xff] %v2380_v54   ;;  %v589_v62 = vadd.f32 %v3041_v9, %v456_v57  ;;  %v2137_v63 = vunpack.c.l.bf16 %v2692_v52  ;;  %v2138_v1 = vunpack.c.h.bf16 %v2692_v52  ;;  %v2141_v2 = vunpack.c.l.bf16 %v2693_v53 }
  0x28   : > { %2752 = vst [vmem:[%s3064_s6 + $0x18] sm:$0xff] %v2385_v58   ;;  %v590_v3 = vadd.f32 %v3041_v9, %v457_v59  ;;  %v591_v4 = vadd.f32 %v3041_v9, %v458_v60  ;;  %v592_v5 = vadd.f32 %v3041_v9, %v459_v61  ;;  %v2142_v6 = vunpack.c.h.bf16 %v2693_v53 }
  0x29   : > { %vm717_vm8 = vcmp.ge.f32.partialorder %v589_v62, 0.0  ;;  %v845_v7 = vmul.f32 0.01, %v589_v62  ;;  %v460_v8 = vmul.f32 %v2137_v63, %v3032_v0  ;;  %v461_v10 = vmul.f32 %v2138_v1, %v3032_v0  ;;  %v2698_v1 = vld [vmem:[%s3027_s27 + $0x60] sm:$0xff]  }
  0x2a   : > { %vm718_vm9 = vcmp.ge.f32.partialorder %v590_v3, 0.0  ;;  %v846_v11 = vmul.f32 0.01, %v590_v3  ;;  %vm719_vm10 = vcmp.ge.f32.partialorder %v591_v4, 0.0  ;;  %vm720_vm11 = vcmp.ge.f32.partialorder %v592_v5, 0.0 }
  0x2b   : > { %v973_v12 = vsel %vm717_vm8, %v589_v62, %v845_v7  ;;  %v847_v13 = vmul.f32 0.01, %v591_v4  ;;  %v848_v14 = vmul.f32 0.01, %v592_v5  ;;  %v593_v15 = vadd.f32 %v3041_v9, %v460_v8 }
  0x2c   : > { %v974_v16 = vsel %vm718_vm9, %v590_v3, %v846_v11  ;;  %v594_v17 = vadd.f32 %v3041_v9, %v461_v10  ;;  %v462_v18 = vmul.f32 %v2141_v2, %v3032_v0  ;;  %v463_v19 = vmul.f32 %v2142_v6, %v3032_v0  ;;  %v2699_v6 = vld [vmem:[%s3027_s27 + $0x68] sm:$0xff]  }
  0x2d   : > { %v2390_v21 = vpack.c.bf16 %v974_v16, %v973_v12  ;;  %v975_v22 = vsel %vm719_vm10, %v591_v4, %v847_v13  ;;  %v976_v23 = vsel %vm720_vm11, %v592_v5, %v848_v14  ;;  %vm721_vm12 = vcmp.ge.f32.partialorder %v593_v15, 0.0 }
  0x2e   : > { %v2395_v25 = vpack.c.bf16 %v976_v23, %v975_v22  ;;  %vm722_vm13 = vcmp.ge.f32.partialorder %v594_v17, 0.0  ;;  %v849_v26 = vmul.f32 0.01, %v593_v15  ;;  %v850_v27 = vmul.f32 0.01, %v594_v17  ;;  %v2700_v22 = vld [vmem:[%s3027_s27 + $0x70] sm:$0xff]  }
  0x2f   : > { %2753 = vst [vmem:[%s3064_s6 + $0x20] sm:$0xff] %v2390_v21   ;;  %v595_v28 = vadd.f32 %v3041_v9, %v462_v18  ;;  %v596_v29 = vadd.f32 %v3041_v9, %v463_v19  ;;  %v2145_v30 = vunpack.c.l.bf16 %v2694_v20  ;;  %v2146_v31 = vunpack.c.h.bf16 %v2694_v20 }
  0x30   : > { %2754 = vst [vmem:[%s3064_s6 + $0x28] sm:$0xff] %v2395_v25   ;;  %v977_v32 = vsel %vm721_vm12, %v593_v15, %v849_v26  ;;  %v978_v33 = vsel %vm722_vm13, %v594_v17, %v850_v27  ;;  %v2149_v34 = vunpack.c.l.bf16 %v2695_v24  ;;  %v2150_v35 = vunpack.c.h.bf16 %v2695_v24 }
  0x31   : > { %v2400_v37 = vpack.c.bf16 %v978_v33, %v977_v32  ;;  %vm723_vm14 = vcmp.ge.f32.partialorder %v595_v28, 0.0  ;;  %vm724_vm15 = vcmp.ge.f32.partialorder %v596_v29, 0.0  ;;  %v851_v38 = vmul.f32 0.01, %v595_v28 }
  0x32   : > { %v852_v39 = vmul.f32 0.01, %v596_v29  ;;  %v464_v40 = vmul.f32 %v2145_v30, %v3032_v0  ;;  %v465_v41 = vmul.f32 %v2146_v31, %v3032_v0  ;;  %v466_v42 = vmul.f32 %v2149_v34, %v3032_v0 }
  0x33   : > { %2755 = vst [vmem:[%s3064_s6 + $0x30] sm:$0xff] %v2400_v37   ;;  %v979_v43 = vsel %vm723_vm14, %v595_v28, %v851_v38  ;;  %v467_v44 = vmul.f32 %v2150_v35, %v3032_v0  ;;  %v2153_v45 = vunpack.c.l.bf16 %v2696_v36  ;;  %v2154_v46 = vunpack.c.h.bf16 %v2696_v36 }
  0x34   : > { %v980_v47 = vsel %vm724_vm15, %v596_v29, %v852_v39  ;;  %v597_v48 = vadd.f32 %v3041_v9, %v464_v40  ;;  %v598_v49 = vadd.f32 %v3041_v9, %v465_v41  ;;  %v599_v50 = vadd.f32 %v3041_v9, %v466_v42  ;;  %v2701_v41 = vld [vmem:[%s3027_s27 + $0x78] sm:$0xff]  }
  0x35   : > { %v2405_v51 = vpack.c.bf16 %v980_v47, %v979_v43  ;;  %v600_v52 = vadd.f32 %v3041_v9, %v467_v44  ;;  %v468_v53 = vmul.f32 %v2153_v45, %v3032_v0  ;;  %v469_v54 = vmul.f32 %v2154_v46, %v3032_v0  ;;  %v2702_v46 = vld [vmem:[%s3027_s27 + $0x80] sm:$0xff]   ;;  %v2703_v47 = vld [vmem:[%s3027_s27 + $0x88] sm:$0xff]  }
  0x36   : > { %vm725_vm0 = vcmp.ge.f32.partialorder %v597_v48, 0.0  ;;  %vm726_vm1 = vcmp.ge.f32.partialorder %v598_v49, 0.0  ;;  %v853_v56 = vmul.f32 0.01, %v597_v48  ;;  %v854_v57 = vmul.f32 0.01, %v598_v49 }
  0x37   : > { %2756 = vst [vmem:[%s3064_s6 + $0x38] sm:$0xff] %v2405_v51   ;;  %vm727_vm2 = vcmp.ge.f32.partialorder %v599_v50, 0.0  ;;  %vm728_vm3 = vcmp.ge.f32.partialorder %v600_v52, 0.0  ;;  %v855_v58 = vmul.f32 0.01, %v599_v50  ;;  %v601_v62 = vadd.f32 %v3041_v9, %v468_v53 }
  0x38   : > { %v856_v59 = vmul.f32 0.01, %v600_v52  ;;  %v981_v60 = vsel %vm725_vm0, %v597_v48, %v853_v56  ;;  %v982_v61 = vsel %vm726_vm1, %v598_v49, %v854_v57  ;;  %v602_v63 = vadd.f32 %v3041_v9, %v469_v54 }
  0x39   : > { %v2410_v2 = vpack.c.bf16 %v982_v61, %v981_v60  ;;  %v983_v3 = vsel %vm727_vm2, %v599_v50, %v855_v58  ;;  %v2157_v5 = vunpack.c.l.bf16 %v2697_v55  ;;  %vm729_vm4 = vcmp.ge.f32.partialorder %v601_v62, 0.0 }
  0x3a   : > { %v984_v4 = vsel %vm728_vm3, %v600_v52, %v856_v59  ;;  %vm730_vm5 = vcmp.ge.f32.partialorder %v602_v63, 0.0  ;;  %v857_v8 = vmul.f32 0.01, %v601_v62  ;;  %v858_v10 = vmul.f32 0.01, %v602_v63 }
  0x3b   : > { %v2415_v7 = vpack.c.bf16 %v984_v4, %v983_v3  ;;  %2757 = vst [vmem:[%s3064_s6 + $0x40] sm:$0xff] %v2410_v2   ;;  %v2158_v11 = vunpack.c.h.bf16 %v2697_v55  ;;  %v470_v12 = vmul.f32 %v2157_v5, %v3032_v0  ;;  %v2161_v13 = vunpack.c.l.bf16 %v2698_v1 }
  0x3c   : > { %v985_v14 = vsel %vm729_vm4, %v601_v62, %v857_v8  ;;  %v2162_v15 = vunpack.c.h.bf16 %v2698_v1  ;;  %v2165_v16 = vunpack.c.l.bf16 %v2699_v6  ;;  %v2166_v17 = vunpack.c.h.bf16 %v2699_v6 }
  0x3d   : > { %2758 = vst [vmem:[%s3064_s6 + $0x48] sm:$0xff] %v2415_v7   ;;  %v986_v18 = vsel %vm730_vm5, %v602_v63, %v858_v10  ;;  %v471_v19 = vmul.f32 %v2158_v11, %v3032_v0  ;;  %v603_v20 = vadd.f32 %v3041_v9, %v470_v12  ;;  %v472_v21 = vmul.f32 %v2161_v13, %v3032_v0 }
  0x3e   : > { %v2420_v23 = vpack.c.bf16 %v986_v18, %v985_v14  ;;  %v473_v24 = vmul.f32 %v2162_v15, %v3032_v0  ;;  %v474_v25 = vmul.f32 %v2165_v16, %v3032_v0  ;;  %v475_v26 = vmul.f32 %v2166_v17, %v3032_v0  ;;  %v2704_v14 = vld [vmem:[%s3027_s27 + $0x90] sm:$0xff]  }
  0x3f   : > { %v604_v27 = vadd.f32 %v3041_v9, %v471_v19  ;;  %vm731_vm6 = vcmp.ge.f32.partialorder %v603_v20, 0.0  ;;  %v859_v28 = vmul.f32 0.01, %v603_v20  ;;  %v605_v29 = vadd.f32 %v3041_v9, %v472_v21 }
  0x40   : > { %2759 = vst [vmem:[%s3064_s6 + $0x50] sm:$0xff] %v2420_v23   ;;  %v606_v30 = vadd.f32 %v3041_v9, %v473_v24  ;;  %v607_v31 = vadd.f32 %v3041_v9, %v474_v25  ;;  %v608_v32 = vadd.f32 %v3041_v9, %v475_v26  ;;  %v2169_v33 = vunpack.c.l.bf16 %v2700_v22  ;;  %v2705_v25 = vld [vmem:[%s3027_s27 + $0x98] sm:$0xff]  }
  0x41   : > { %vm732_vm7 = vcmp.ge.f32.partialorder %v604_v27, 0.0  ;;  %v860_v34 = vmul.f32 0.01, %v604_v27  ;;  %v987_v35 = vsel %vm731_vm6, %v603_v20, %v859_v28  ;;  %vm733_vm8 = vcmp.ge.f32.partialorder %v605_v29, 0.0 }
  0x42   : > { %vm734_vm9 = vcmp.ge.f32.partialorder %v606_v30, 0.0  ;;  %v861_v36 = vmul.f32 0.01, %v605_v29  ;;  %v862_v37 = vmul.f32 0.01, %v606_v30  ;;  %vm735_vm10 = vcmp.ge.f32.partialorder %v607_v31, 0.0 }
  0x43   : > { %v988_v38 = vsel %vm732_vm7, %v604_v27, %v860_v34  ;;  %vm736_vm11 = vcmp.ge.f32.partialorder %v608_v32, 0.0  ;;  %v863_v39 = vmul.f32 0.01, %v607_v31  ;;  %v864_v40 = vmul.f32 0.01, %v608_v32 }
  0x44   : > { %v2425_v42 = vpack.c.bf16 %v988_v38, %v987_v35  ;;  %v989_v43 = vsel %vm733_vm8, %v605_v29, %v861_v36  ;;  %v990_v44 = vsel %vm734_vm9, %v606_v30, %v862_v37  ;;  %v2170_v45 = vunpack.c.h.bf16 %v2700_v22  ;;  %v2706_v30 = vld [vmem:[%s3027_s27 + $0xa0] sm:$0xff]  }
  0x45   : > { %v2430_v48 = vpack.c.bf16 %v990_v44, %v989_v43  ;;  %v991_v49 = vsel %vm735_vm10, %v607_v31, %v863_v39  ;;  %v992_v50 = vsel %vm736_vm11, %v608_v32, %v864_v40  ;;  %v476_v51 = vmul.f32 %v2169_v33, %v3032_v0 }
  0x46   : > { %2760 = vst [vmem:[%s3064_s6 + $0x58] sm:$0xff] %v2425_v42   ;;  %v2435_v52 = vpack.c.bf16 %v992_v50, %v991_v49  ;;  %v477_v53 = vmul.f32 %v2170_v45, %v3032_v0  ;;  %v2173_v54 = vunpack.c.l.bf16 %v2701_v41  ;;  %v2174_v55 = vunpack.c.h.bf16 %v2701_v41  ;;  %v2707_v45 = vld [vmem:[%s3027_s27 + $0xa8] sm:$0xff]  }
  0x47   : > { %2761 = vst [vmem:[%s3064_s6 + $0x60] sm:$0xff] %v2430_v48   ;;  %v609_v56 = vadd.f32 %v3041_v9, %v476_v51  ;;  %v2177_v57 = vunpack.c.l.bf16 %v2702_v46  ;;  %v2178_v58 = vunpack.c.h.bf16 %v2702_v46  ;;  %v2181_v59 = vunpack.c.l.bf16 %v2703_v47 }
  0x48   : > { %2762 = vst [vmem:[%s3064_s6 + $0x68] sm:$0xff] %v2435_v52   ;;  %v610_v60 = vadd.f32 %v3041_v9, %v477_v53  ;;  %v478_v61 = vmul.f32 %v2173_v54, %v3032_v0  ;;  %v479_v62 = vmul.f32 %v2174_v55, %v3032_v0  ;;  %v2182_v63 = vunpack.c.h.bf16 %v2703_v47 }
  0x49   : > { %vm737_vm12 = vcmp.ge.f32.partialorder %v609_v56, 0.0  ;;  %v865_v1 = vmul.f32 0.01, %v609_v56  ;;  %v480_v2 = vmul.f32 %v2177_v57, %v3032_v0  ;;  %v481_v3 = vmul.f32 %v2178_v58, %v3032_v0 }
  0x4a   : > { %vm738_vm13 = vcmp.ge.f32.partialorder %v610_v60, 0.0  ;;  %v866_v4 = vmul.f32 0.01, %v610_v60  ;;  %v611_v5 = vadd.f32 %v3041_v9, %v478_v61  ;;  %v612_v6 = vadd.f32 %v3041_v9, %v479_v62  ;;  %v2708_v62 = vld [vmem:[%s3027_s27 + $0xb0] sm:$0xff]  }
  0x4b   : > { %v993_v7 = vsel %vm737_vm12, %v609_v56, %v865_v1  ;;  %v613_v8 = vadd.f32 %v3041_v9, %v480_v2  ;;  %v614_v10 = vadd.f32 %v3041_v9, %v481_v3  ;;  %v482_v11 = vmul.f32 %v2181_v59, %v3032_v0  ;;  %v2709_v3 = vld [vmem:[%s3027_s27 + $0xb8] sm:$0xff]  }
  0x4c   : > { %v994_v12 = vsel %vm738_vm13, %v610_v60, %v866_v4  ;;  %vm739_vm14 = vcmp.ge.f32.partialorder %v611_v5, 0.0  ;;  %vm740_vm15 = vcmp.ge.f32.partialorder %v612_v6, 0.0  ;;  %v867_v13 = vmul.f32 0.01, %v611_v5 }
  0x4d   : > { %v2440_v15 = vpack.c.bf16 %v994_v12, %v993_v7  ;;  %v868_v16 = vmul.f32 0.01, %v612_v6  ;;  %vm741_vm0 = vcmp.ge.f32.partialorder %v613_v8, 0.0  ;;  %vm742_vm1 = vcmp.ge.f32.partialorder %v614_v10, 0.0 }
  0x4e   : > { %v995_v17 = vsel %vm739_vm14, %v611_v5, %v867_v13  ;;  %v869_v18 = vmul.f32 0.01, %v613_v8  ;;  %v870_v19 = vmul.f32 0.01, %v614_v10  ;;  %v483_v20 = vmul.f32 %v2182_v63, %v3032_v0 }
  0x4f   : > { %2763 = vst [vmem:[%s3064_s6 + $0x70] sm:$0xff] %v2440_v15   ;;  %v996_v21 = vsel %vm740_vm15, %v612_v6, %v868_v16  ;;  %v615_v22 = vadd.f32 %v3041_v9, %v482_v11  ;;  %v2185_v23 = vunpack.c.l.bf16 %v2704_v14  ;;  %v2186_v24 = vunpack.c.h.bf16 %v2704_v14 }
  0x50   : > { %v2445_v26 = vpack.c.bf16 %v996_v21, %v995_v17  ;;  %v997_v27 = vsel %vm741_vm0, %v613_v8, %v869_v18  ;;  %v998_v28 = vsel %vm742_vm1, %v614_v10, %v870_v19  ;;  %v616_v29 = vadd.f32 %v3041_v9, %v483_v20  ;;  %v2710_v20 = vld [vmem:[%s3027_s27 + $0xc0] sm:$0xff]  }
  0x51   : > { %v2450_v31 = vpack.c.bf16 %v998_v28, %v997_v27  ;;  %vm743_vm2 = vcmp.ge.f32.partialorder %v615_v22, 0.0  ;;  %v871_v32 = vmul.f32 0.01, %v615_v22  ;;  %v484_v33 = vmul.f32 %v2185_v23, %v3032_v0 }
  0x52   : > { %2764 = vst [vmem:[%s3064_s6 + $0x78] sm:$0xff] %v2445_v26   ;;  %vm744_vm3 = vcmp.ge.f32.partialorder %v616_v29, 0.0  ;;  %v872_v34 = vmul.f32 0.01, %v616_v29  ;;  %v485_v35 = vmul.f32 %v2186_v24, %v3032_v0  ;;  %v2189_v36 = vunpack.c.l.bf16 %v2705_v25 }
  0x53   : > { %2765 = vst [vmem:[%s3064_s6 + $0x80] sm:$0xff] %v2450_v31   ;;  %v999_v37 = vsel %vm743_vm2, %v615_v22, %v871_v32  ;;  %v617_v38 = vadd.f32 %v3041_v9, %v484_v33  ;;  %v2190_v39 = vunpack.c.h.bf16 %v2705_v25  ;;  %v2193_v40 = vunpack.c.l.bf16 %v2706_v30 }
  0x54   : > { %v1000_v41 = vsel %vm744_vm3, %v616_v29, %v872_v34  ;;  %v618_v42 = vadd.f32 %v3041_v9, %v485_v35  ;;  %v486_v43 = vmul.f32 %v2189_v36, %v3032_v0  ;;  %v2194_v44 = vunpack.c.h.bf16 %v2706_v30  ;;  %v2711_v34 = vld [vmem:[%s3027_s27 + $0xc8] sm:$0xff]  }
  0x55   : > { %v2455_v46 = vpack.c.bf16 %v1000_v41, %v999_v37  ;;  %vm745_vm4 = vcmp.ge.f32.partialorder %v617_v38, 0.0  ;;  %v873_v47 = vmul.f32 0.01, %v617_v38  ;;  %v487_v48 = vmul.f32 %v2190_v39, %v3032_v0 }
  0x56   : > { %vm746_vm5 = vcmp.ge.f32.partialorder %v618_v42, 0.0  ;;  %v874_v49 = vmul.f32 0.01, %v618_v42  ;;  %v619_v50 = vadd.f32 %v3041_v9, %v486_v43  ;;  %v488_v51 = vmul.f32 %v2193_v40, %v3032_v0 }
  0x57   : > { %2766 = vst [vmem:[%s3064_s6 + $0x88] sm:$0xff] %v2455_v46   ;;  %v1001_v52 = vsel %vm745_vm4, %v617_v38, %v873_v47  ;;  %v620_v53 = vadd.f32 %v3041_v9, %v487_v48  ;;  %v489_v54 = vmul.f32 %v2194_v44, %v3032_v0  ;;  %v2197_v55 = vunpack.c.l.bf16 %v2707_v45  ;;  %v2712_v44 = vld [vmem:[%s3027_s27 + $0xd0] sm:$0xff]  }
  0x58   : > { %v1002_v56 = vsel %vm746_vm5, %v618_v42, %v874_v49  ;;  %vm747_vm6 = vcmp.ge.f32.partialorder %v619_v50, 0.0  ;;  %v875_v57 = vmul.f32 0.01, %v619_v50  ;;  %v621_v58 = vadd.f32 %v3041_v9, %v488_v51 }
  0x59   : > { %v2460_v59 = vpack.c.bf16 %v1002_v56, %v1001_v52  ;;  %vm748_vm7 = vcmp.ge.f32.partialorder %v620_v53, 0.0  ;;  %v876_v60 = vmul.f32 0.01, %v620_v53  ;;  %v622_v61 = vadd.f32 %v3041_v9, %v489_v54 }
  0x5a   : > { %v1003_v63 = vsel %vm747_vm6, %v619_v50, %v875_v57  ;;  %vm749_vm8 = vcmp.ge.f32.partialorder %v621_v58, 0.0  ;;  %v877_v1 = vmul.f32 0.01, %v621_v58  ;;  %v2198_v2 = vunpack.c.h.bf16 %v2707_v45  ;;  %v2713_v45 = vld [vmem:[%s3027_s27 + $0xd8] sm:$0xff]  }
  0x5b   : > { %2767 = vst [vmem:[%s3064_s6 + $0x90] sm:$0xff] %v2460_v59   ;;  %v1004_v4 = vsel %vm748_vm7, %v620_v53, %v876_v60  ;;  %vm750_vm9 = vcmp.ge.f32.partialorder %v622_v61, 0.0  ;;  %v878_v5 = vmul.f32 0.01, %v622_v61  ;;  %v490_v6 = vmul.f32 %v2197_v55, %v3032_v0 }
  0x5c   : > { %v2465_v7 = vpack.c.bf16 %v1004_v4, %v1003_v63  ;;  %v1005_v8 = vsel %vm749_vm8, %v621_v58, %v877_v1  ;;  %v491_v10 = vmul.f32 %v2198_v2, %v3032_v0  ;;  %v2201_v11 = vunpack.c.l.bf16 %v2708_v62 }
  0x5d   : > { %v1006_v12 = vsel %vm750_vm9, %v622_v61, %v878_v5  ;;  %v623_v13 = vadd.f32 %v3041_v9, %v490_v6  ;;  %v2202_v14 = vunpack.c.h.bf16 %v2708_v62  ;;  %v2205_v15 = vunpack.c.l.bf16 %v2709_v3 }
  0x5e   : > { %2768 = vst [vmem:[%s3064_s6 + $0x98] sm:$0xff] %v2465_v7   ;;  %v2470_v16 = vpack.c.bf16 %v1006_v12, %v1005_v8  ;;  %v624_v17 = vadd.f32 %v3041_v9, %v491_v10  ;;  %v492_v18 = vmul.f32 %v2201_v11, %v3032_v0  ;;  %v2206_v19 = vunpack.c.h.bf16 %v2709_v3  ;;  %v2714_v12 = vld [vmem:[%s3027_s27 + $0xe0] sm:$0xff]  }
  0x5f   : > { %vm751_vm10 = vcmp.ge.f32.partialorder %v623_v13, 0.0  ;;  %v879_v21 = vmul.f32 0.01, %v623_v13  ;;  %v493_v22 = vmul.f32 %v2202_v14, %v3032_v0  ;;  %v494_v23 = vmul.f32 %v2205_v15, %v3032_v0 }
  0x60   : > { %2769 = vst [vmem:[%s3064_s6 + $0xa0] sm:$0xff] %v2470_v16   ;;  %vm752_vm11 = vcmp.ge.f32.partialorder %v624_v17, 0.0  ;;  %v880_v24 = vmul.f32 0.01, %v624_v17  ;;  %v625_v25 = vadd.f32 %v3041_v9, %v492_v18  ;;  %v495_v26 = vmul.f32 %v2206_v19, %v3032_v0  ;;  %v2715_v16 = vld [vmem:[%s3027_s27 + $0xe8] sm:$0xff]  }
  0x61   : > { %v1007_v27 = vsel %vm751_vm10, %v623_v13, %v879_v21  ;;  %v626_v28 = vadd.f32 %v3041_v9, %v493_v22  ;;  %v627_v29 = vadd.f32 %v3041_v9, %v494_v23  ;;  %v2209_v30 = vunpack.c.l.bf16 %v2710_v20 }
  0x62   : > { %v1008_v31 = vsel %vm752_vm11, %v624_v17, %v880_v24  ;;  %vm753_vm12 = vcmp.ge.f32.partialorder %v625_v25, 0.0  ;;  %v881_v32 = vmul.f32 0.01, %v625_v25  ;;  %v628_v33 = vadd.f32 %v3041_v9, %v495_v26 }
  0x63   : > { %v2475_v35 = vpack.c.bf16 %v1008_v31, %v1007_v27  ;;  %vm754_vm13 = vcmp.ge.f32.partialorder %v626_v28, 0.0  ;;  %v882_v36 = vmul.f32 0.01, %v626_v28  ;;  %vm755_vm14 = vcmp.ge.f32.partialorder %v627_v29, 0.0 }
  0x64   : > { %v1009_v37 = vsel %vm753_vm12, %v625_v25, %v881_v32  ;;  %vm756_vm15 = vcmp.ge.f32.partialorder %v628_v33, 0.0  ;;  %v883_v38 = vmul.f32 0.01, %v627_v29  ;;  %v884_v39 = vmul.f32 0.01, %v628_v33 }
  0x65   : > { %2770 = vst [vmem:[%s3064_s6 + $0xa8] sm:$0xff] %v2475_v35   ;;  %v1010_v40 = vsel %vm754_vm13, %v626_v28, %v882_v36  ;;  %v2210_v41 = vunpack.c.h.bf16 %v2710_v20  ;;  %v496_v42 = vmul.f32 %v2209_v30, %v3032_v0  ;;  %v2213_v43 = vunpack.c.l.bf16 %v2711_v34  ;;  %v2716_v28 = vld [vmem:[%s3027_s27 + $0xf0] sm:$0xff]  }
  0x66   : > { %v2480_v46 = vpack.c.bf16 %v1010_v40, %v1009_v37  ;;  %v1011_v47 = vsel %vm755_vm14, %v627_v29, %v883_v38  ;;  %v1012_v48 = vsel %vm756_vm15, %v628_v33, %v884_v39  ;;  %v2214_v49 = vunpack.c.h.bf16 %v2711_v34 }
  0x67   : > { %v2485_v50 = vpack.c.bf16 %v1012_v48, %v1011_v47  ;;  %v497_v51 = vmul.f32 %v2210_v41, %v3032_v0  ;;  %v629_v52 = vadd.f32 %v3041_v9, %v496_v42  ;;  %v498_v53 = vmul.f32 %v2213_v43, %v3032_v0  ;;  %v2717_v47 = vld [vmem:[%s3027_s27 + $0xf8] sm:$0xff]  }
  0x68   : > { %2771 = vst [vmem:[%s3064_s6 + $0xb0] sm:$0xff] %v2480_v46   ;;  %v499_v54 = vmul.f32 %v2214_v49, %v3032_v0  ;;  %v2217_v55 = vunpack.c.l.bf16 %v2712_v44  ;;  %v2218_v56 = vunpack.c.h.bf16 %v2712_v44  ;;  %v2221_v57 = vunpack.c.l.bf16 %v2713_v45 }
  0x69   : > { %2772 = vst [vmem:[%s3064_s6 + $0xb8] sm:$0xff] %v2485_v50   ;;  %v630_v58 = vadd.f32 %v3041_v9, %v497_v51  ;;  %vm757_vm0 = vcmp.ge.f32.partialorder %v629_v52, 0.0  ;;  %v885_v59 = vmul.f32 0.01, %v629_v52  ;;  %v631_v60 = vadd.f32 %v3041_v9, %v498_v53 }
  0x6a   : > { %v632_v61 = vadd.f32 %v3041_v9, %v499_v54  ;;  %v500_v62 = vmul.f32 %v2217_v55, %v3032_v0  ;;  %v501_v63 = vmul.f32 %v2218_v56, %v3032_v0  ;;  %v2222_v1 = vunpack.c.h.bf16 %v2713_v45  ;;  %v2718_v56 = vld [vmem:[%s3027_s27 + $0x100] sm:$0xff]  }
  0x6b   : > { %vm758_vm1 = vcmp.ge.f32.partialorder %v630_v58, 0.0  ;;  %v886_v2 = vmul.f32 0.01, %v630_v58  ;;  %v1013_v3 = vsel %vm757_vm0, %v629_v52, %v885_v59  ;;  %vm759_vm2 = vcmp.ge.f32.partialorder %v631_v60, 0.0 }
  0x6c   : > { %vm760_vm3 = vcmp.ge.f32.partialorder %v632_v61, 0.0  ;;  %v887_v4 = vmul.f32 0.01, %v631_v60  ;;  %v888_v5 = vmul.f32 0.01, %v632_v61  ;;  %v633_v6 = vadd.f32 %v3041_v9, %v500_v62 }
  0x6d   : > { %v1014_v7 = vsel %vm758_vm1, %v630_v58, %v886_v2  ;;  %v634_v8 = vadd.f32 %v3041_v9, %v501_v63  ;;  %v502_v10 = vmul.f32 %v2221_v57, %v3032_v0  ;;  %v503_v11 = vmul.f32 %v2222_v1, %v3032_v0 }
  0x6e   : > { %v2490_v13 = vpack.c.bf16 %v1014_v7, %v1013_v3  ;;  %v1015_v14 = vsel %vm759_vm2, %v631_v60, %v887_v4  ;;  %v1016_v15 = vsel %vm760_vm3, %v632_v61, %v888_v5  ;;  %vm761_vm4 = vcmp.ge.f32.partialorder %v633_v6, 0.0  ;;  %v2719_v61 = vld [vmem:[%s3027_s27 + $0x108] sm:$0xff]  }
  0x6f   : > { %v2495_v17 = vpack.c.bf16 %v1016_v15, %v1015_v14  ;;  %vm762_vm5 = vcmp.ge.f32.partialorder %v634_v8, 0.0  ;;  %v889_v18 = vmul.f32 0.01, %v633_v6  ;;  %v890_v19 = vmul.f32 0.01, %v634_v8  ;;  %v2720_v14 = vld [vmem:[%s3027_s27 + $0x110] sm:$0xff]  }
  0x70   : > { %2773 = vst [vmem:[%s3064_s6 + $0xc0] sm:$0xff] %v2490_v13   ;;  %v635_v20 = vadd.f32 %v3041_v9, %v502_v10  ;;  %v636_v21 = vadd.f32 %v3041_v9, %v503_v11  ;;  %v2225_v22 = vunpack.c.l.bf16 %v2714_v12  ;;  %v2226_v23 = vunpack.c.h.bf16 %v2714_v12 }
  0x71   : > { %2774 = vst [vmem:[%s3064_s6 + $0xc8] sm:$0xff] %v2495_v17   ;;  %v1017_v24 = vsel %vm761_vm4, %v633_v6, %v889_v18  ;;  %v1018_v25 = vsel %vm762_vm5, %v634_v8, %v890_v19  ;;  %v2229_v26 = vunpack.c.l.bf16 %v2715_v16  ;;  %v2230_v27 = vunpack.c.h.bf16 %v2715_v16 }
  0x72   : > { %v2500_v29 = vpack.c.bf16 %v1018_v25, %v1017_v24  ;;  %vm763_vm6 = vcmp.ge.f32.partialorder %v635_v20, 0.0  ;;  %vm764_vm7 = vcmp.ge.f32.partialorder %v636_v21, 0.0  ;;  %v891_v30 = vmul.f32 0.01, %v635_v20 }
  0x73   : > { %v892_v31 = vmul.f32 0.01, %v636_v21  ;;  %v504_v32 = vmul.f32 %v2225_v22, %v3032_v0  ;;  %v505_v33 = vmul.f32 %v2226_v23, %v3032_v0  ;;  %v506_v34 = vmul.f32 %v2229_v26, %v3032_v0 }
  0x74   : > { %2775 = vst [vmem:[%s3064_s6 + $0xd0] sm:$0xff] %v2500_v29   ;;  %v1019_v35 = vsel %vm763_vm6, %v635_v20, %v891_v30  ;;  %v507_v36 = vmul.f32 %v2230_v27, %v3032_v0  ;;  %v2233_v37 = vunpack.c.l.bf16 %v2716_v28  ;;  %v2234_v38 = vunpack.c.h.bf16 %v2716_v28 }
  0x75   : > { %v1020_v39 = vsel %vm764_vm7, %v636_v21, %v892_v31  ;;  %v637_v40 = vadd.f32 %v3041_v9, %v504_v32  ;;  %v638_v41 = vadd.f32 %v3041_v9, %v505_v33  ;;  %v639_v42 = vadd.f32 %v3041_v9, %v506_v34  ;;  %v2721_v32 = vld [vmem:[%s3027_s27 + $0x118] sm:$0xff]  }
  0x76   : > { %v2505_v43 = vpack.c.bf16 %v1020_v39, %v1019_v35  ;;  %v640_v44 = vadd.f32 %v3041_v9, %v507_v36  ;;  %v508_v45 = vmul.f32 %v2233_v37, %v3032_v0  ;;  %v509_v46 = vmul.f32 %v2234_v38, %v3032_v0  ;;  %v2722_v36 = vld [vmem:[%s3027_s27 + $0x120] sm:$0xff]   ;;  %v2723_v37 = vld [vmem:[%s3027_s27 + $0x128] sm:$0xff]  }
  0x77   : > { %vm765_vm8 = vcmp.ge.f32.partialorder %v637_v40, 0.0  ;;  %vm766_vm9 = vcmp.ge.f32.partialorder %v638_v41, 0.0  ;;  %v893_v48 = vmul.f32 0.01, %v637_v40  ;;  %v894_v49 = vmul.f32 0.01, %v638_v41 }
  0x78   : > { %2776 = vst [vmem:[%s3064_s6 + $0xd8] sm:$0xff] %v2505_v43   ;;  %vm767_vm10 = vcmp.ge.f32.partialorder %v639_v42, 0.0  ;;  %vm768_vm11 = vcmp.ge.f32.partialorder %v640_v44, 0.0  ;;  %v895_v50 = vmul.f32 0.01, %v639_v42  ;;  %v641_v54 = vadd.f32 %v3041_v9, %v508_v45 }
  0x79   : > { %v896_v51 = vmul.f32 0.01, %v640_v44  ;;  %v1021_v52 = vsel %vm765_vm8, %v637_v40, %v893_v48  ;;  %v1022_v53 = vsel %vm766_vm9, %v638_v41, %v894_v49  ;;  %v642_v55 = vadd.f32 %v3041_v9, %v509_v46  ;;  %v3255_v41 = vld [vmem:[%s3498_s1] ss:$0 sm:$0xff] }
  0x7a   : > { %v2510_v57 = vpack.c.bf16 %v1022_v53, %v1021_v52  ;;  %v1023_v58 = vsel %vm767_vm10, %v639_v42, %v895_v50  ;;  %v2237_v60 = vunpack.c.l.bf16 %v2717_v47  ;;  %vm769_vm12 = vcmp.ge.f32.partialorder %v641_v54, 0.0 }
  0x7b   : > { %v1024_v59 = vsel %vm768_vm11, %v640_v44, %v896_v51  ;;  %vm770_vm13 = vcmp.ge.f32.partialorder %v642_v55, 0.0  ;;  %v897_v63 = vmul.f32 0.01, %v641_v54  ;;  %v898_v1 = vmul.f32 0.01, %v642_v55 }
  0x7c   : > { %v2515_v62 = vpack.c.bf16 %v1024_v59, %v1023_v58  ;;  %2777 = vst [vmem:[%s3064_s6 + $0xe0] sm:$0xff] %v2510_v57   ;;  %v2238_v2 = vunpack.c.h.bf16 %v2717_v47  ;;  %v510_v3 = vmul.f32 %v2237_v60, %v3032_v0  ;;  %v2241_v4 = vunpack.c.l.bf16 %v2718_v56  ;;  %v3264_v47 = vld [vmem:[%s3498_s1 + $0x1] ss:$0 sm:$0xff] }
  0x7d   : > { %v1025_v5 = vsel %vm769_vm12, %v641_v54, %v897_v63  ;;  %v2242_v6 = vunpack.c.h.bf16 %v2718_v56  ;;  %v2245_v7 = vunpack.c.l.bf16 %v2719_v61  ;;  %v2246_v8 = vunpack.c.h.bf16 %v2719_v61 }
  0x7e   : > { %2778 = vst [vmem:[%s3064_s6 + $0xe8] sm:$0xff] %v2515_v62   ;;  %v1026_v10 = vsel %vm770_vm13, %v642_v55, %v898_v1  ;;  %v511_v11 = vmul.f32 %v2238_v2, %v3032_v0  ;;  %v643_v12 = vadd.f32 %v3041_v9, %v510_v3  ;;  %v512_v13 = vmul.f32 %v2241_v4, %v3032_v0 }
  0x7f   : > { %v2520_v15 = vpack.c.bf16 %v1026_v10, %v1025_v5  ;;  %v513_v16 = vmul.f32 %v2242_v6, %v3032_v0  ;;  %v514_v17 = vmul.f32 %v2245_v7, %v3032_v0  ;;  %v515_v18 = vmul.f32 %v2246_v8, %v3032_v0  ;;  %v2724_v5 = vld [vmem:[%s3027_s27 + $0x130] sm:$0xff]  }
  0x80   : > { %v644_v19 = vadd.f32 %v3041_v9, %v511_v11  ;;  %vm771_vm14 = vcmp.ge.f32.partialorder %v643_v12, 0.0  ;;  %v899_v20 = vmul.f32 0.01, %v643_v12  ;;  %v645_v21 = vadd.f32 %v3041_v9, %v512_v13 }
  0x81   : > { %2779 = vst [vmem:[%s3064_s6 + $0xf0] sm:$0xff] %v2520_v15   ;;  %v646_v22 = vadd.f32 %v3041_v9, %v513_v16  ;;  %v647_v23 = vadd.f32 %v3041_v9, %v514_v17  ;;  %v648_v24 = vadd.f32 %v3041_v9, %v515_v18  ;;  %v2249_v25 = vunpack.c.l.bf16 %v2720_v14  ;;  %v2725_v17 = vld [vmem:[%s3027_s27 + $0x138] sm:$0xff]  }
  0x82   : > { %vm772_vm15 = vcmp.ge.f32.partialorder %v644_v19, 0.0  ;;  %v900_v26 = vmul.f32 0.01, %v644_v19  ;;  %v1027_v27 = vsel %vm771_vm14, %v643_v12, %v899_v20  ;;  %vm773_vm0 = vcmp.ge.f32.partialorder %v645_v21, 0.0 }
  0x83   : > { %vm774_vm1 = vcmp.ge.f32.partialorder %v646_v22, 0.0  ;;  %v901_v0 = vmul.f32 0.01, %v645_v21  ;;  %v902_v28 = vmul.f32 0.01, %v646_v22  ;;  %vm775_vm2 = vcmp.ge.f32.partialorder %v647_v23, 0.0 }
  0x84   : > { %v1028_v29 = vsel %vm772_vm15, %v644_v19, %v900_v26  ;;  %vm776_vm3 = vcmp.ge.f32.partialorder %v648_v24, 0.0  ;;  %v903_v30 = vmul.f32 0.01, %v647_v23  ;;  %v904_v31 = vmul.f32 0.01, %v648_v24 }
  0x85   : > { %v2525_v33 = vpack.c.bf16 %v1028_v29, %v1027_v27  ;;  %v1029_v9 = vsel %vm773_vm0, %v645_v21, %v901_v0  ;;  %v1030_v34 = vsel %vm774_vm1, %v646_v22, %v902_v28  ;;  %v2250_v35 = vunpack.c.h.bf16 %v2720_v14  ;;  %v2726_v22 = vld [vmem:[%s3027_s27 + $0x140] sm:$0xff]  }
  0x86   : > { %v2530_v38 = vpack.c.bf16 %v1030_v34, %v1029_v9  ;;  %v1031_v39 = vsel %vm775_vm2, %v647_v23, %v903_v30  ;;  %v1032_v40 = vsel %vm776_vm3, %v648_v24, %v904_v31  ;;  %v516_v42 = vmul.f32 %v3255_v41, %v2249_v25 }
  0x87   : > { %2780 = vst [vmem:[%s3064_s6 + $0xf8] sm:$0xff] %v2525_v33   ;;  %v2535_v43 = vpack.c.bf16 %v1032_v40, %v1031_v39  ;;  %v517_v44 = vmul.f32 %v3255_v41, %v2250_v35  ;;  %v2253_v45 = vunpack.c.l.bf16 %v2721_v32  ;;  %v2254_v46 = vunpack.c.h.bf16 %v2721_v32  ;;  %v2727_v35 = vld [vmem:[%s3027_s27 + $0x148] sm:$0xff]  }
  0x88   : > { %2781 = vst [vmem:[%s3064_s6 + $0x100] sm:$0xff] %v2530_v38   ;;  %v649_v48 = vadd.f32 %v3264_v47, %v516_v42  ;;  %v2257_v49 = vunpack.c.l.bf16 %v2722_v36  ;;  %v2258_v50 = vunpack.c.h.bf16 %v2722_v36  ;;  %v2261_v51 = vunpack.c.l.bf16 %v2723_v37 }
  0x89   : > { %2782 = vst [vmem:[%s3064_s6 + $0x108] sm:$0xff] %v2535_v43   ;;  %v650_v52 = vadd.f32 %v3264_v47, %v517_v44  ;;  %v518_v53 = vmul.f32 %v3255_v41, %v2253_v45  ;;  %v519_v54 = vmul.f32 %v3255_v41, %v2254_v46  ;;  %v2262_v55 = vunpack.c.h.bf16 %v2723_v37 }
  0x8a   : > { %vm777_vm4 = vcmp.ge.f32.partialorder %v649_v48, 0.0  ;;  %v905_v56 = vmul.f32 0.01, %v649_v48  ;;  %v520_v57 = vmul.f32 %v3255_v41, %v2257_v49  ;;  %v521_v58 = vmul.f32 %v3255_v41, %v2258_v50 }
  0x8b   : > { %vm778_vm5 = vcmp.ge.f32.partialorder %v650_v52, 0.0  ;;  %v906_v59 = vmul.f32 0.01, %v650_v52  ;;  %v651_v60 = vadd.f32 %v3264_v47, %v518_v53  ;;  %v652_v61 = vadd.f32 %v3264_v47, %v519_v54  ;;  %v2728_v54 = vld [vmem:[%s3027_s27 + $0x150] sm:$0xff]  }
  0x8c   : > { %v1033_v62 = vsel %vm777_vm4, %v649_v48, %v905_v56  ;;  %v653_v63 = vadd.f32 %v3264_v47, %v520_v57  ;;  %v654_v1 = vadd.f32 %v3264_v47, %v521_v58  ;;  %v522_v2 = vmul.f32 %v3255_v41, %v2261_v51  ;;  %v2729_v58 = vld [vmem:[%s3027_s27 + $0x158] sm:$0xff]  }
  0x8d   : > { %v1034_v3 = vsel %vm778_vm5, %v650_v52, %v906_v59  ;;  %vm779_vm6 = vcmp.ge.f32.partialorder %v651_v60, 0.0  ;;  %vm780_vm7 = vcmp.ge.f32.partialorder %v652_v61, 0.0  ;;  %v907_v4 = vmul.f32 0.01, %v651_v60 }
  0x8e   : > { %v2540_v6 = vpack.c.bf16 %v1034_v3, %v1033_v62  ;;  %v908_v7 = vmul.f32 0.01, %v652_v61  ;;  %vm781_vm8 = vcmp.ge.f32.partialorder %v653_v63, 0.0  ;;  %vm782_vm9 = vcmp.ge.f32.partialorder %v654_v1, 0.0 }
  0x8f   : > { %v1035_v8 = vsel %vm779_vm6, %v651_v60, %v907_v4  ;;  %v909_v10 = vmul.f32 0.01, %v653_v63  ;;  %v910_v11 = vmul.f32 0.01, %v654_v1  ;;  %v523_v12 = vmul.f32 %v3255_v41, %v2262_v55 }
  0x90   : > { %2783 = vst [vmem:[%s3064_s6 + $0x110] sm:$0xff] %v2540_v6   ;;  %v1036_v13 = vsel %vm780_vm7, %v652_v61, %v908_v7  ;;  %v655_v14 = vadd.f32 %v3264_v47, %v522_v2  ;;  %v2265_v15 = vunpack.c.l.bf16 %v2724_v5  ;;  %v2266_v16 = vunpack.c.h.bf16 %v2724_v5 }
  0x91   : > { %v2545_v18 = vpack.c.bf16 %v1036_v13, %v1035_v8  ;;  %v1037_v19 = vsel %vm781_vm8, %v653_v63, %v909_v10  ;;  %v1038_v20 = vsel %vm782_vm9, %v654_v1, %v910_v11  ;;  %v656_v21 = vadd.f32 %v3264_v47, %v523_v12  ;;  %v2730_v12 = vld [vmem:[%s3027_s27 + $0x160] sm:$0xff]  }
  0x92   : > { %v2550_v23 = vpack.c.bf16 %v1038_v20, %v1037_v19  ;;  %vm783_vm10 = vcmp.ge.f32.partialorder %v655_v14, 0.0  ;;  %v911_v24 = vmul.f32 0.01, %v655_v14  ;;  %v524_v25 = vmul.f32 %v3255_v41, %v2265_v15 }
  0x93   : > { %2784 = vst [vmem:[%s3064_s6 + $0x118] sm:$0xff] %v2545_v18   ;;  %vm784_vm11 = vcmp.ge.f32.partialorder %v656_v21, 0.0  ;;  %v912_v26 = vmul.f32 0.01, %v656_v21  ;;  %v525_v27 = vmul.f32 %v3255_v41, %v2266_v16  ;;  %v2269_v0 = vunpack.c.l.bf16 %v2725_v17 }
  0x94   : > { %2785 = vst [vmem:[%s3064_s6 + $0x120] sm:$0xff] %v2550_v23   ;;  %v1039_v28 = vsel %vm783_vm10, %v655_v14, %v911_v24  ;;  %v657_v29 = vadd.f32 %v3264_v47, %v524_v25  ;;  %v2270_v30 = vunpack.c.h.bf16 %v2725_v17  ;;  %v2273_v31 = vunpack.c.l.bf16 %v2726_v22 }
  0x95   : > { %v1040_v32 = vsel %vm784_vm11, %v656_v21, %v912_v26  ;;  %v658_v33 = vadd.f32 %v3264_v47, %v525_v27  ;;  %v526_v9 = vmul.f32 %v3255_v41, %v2269_v0  ;;  %v2274_v34 = vunpack.c.h.bf16 %v2726_v22  ;;  %v2731_v26 = vld [vmem:[%s3027_s27 + $0x168] sm:$0xff]  }
  0x96   : > { %v2555_v36 = vpack.c.bf16 %v1040_v32, %v1039_v28  ;;  %vm785_vm12 = vcmp.ge.f32.partialorder %v657_v29, 0.0  ;;  %v913_v37 = vmul.f32 0.01, %v657_v29  ;;  %v527_v38 = vmul.f32 %v3255_v41, %v2270_v30 }
  0x97   : > { %vm786_vm13 = vcmp.ge.f32.partialorder %v658_v33, 0.0  ;;  %v914_v39 = vmul.f32 0.01, %v658_v33  ;;  %v659_v40 = vadd.f32 %v3264_v47, %v526_v9  ;;  %v528_v42 = vmul.f32 %v3255_v41, %v2273_v31 }
  0x98   : > { %2786 = vst [vmem:[%s3064_s6 + $0x128] sm:$0xff] %v2555_v36   ;;  %v1041_v43 = vsel %vm785_vm12, %v657_v29, %v913_v37  ;;  %v660_v44 = vadd.f32 %v3264_v47, %v527_v38  ;;  %v529_v45 = vmul.f32 %v3255_v41, %v2274_v34  ;;  %v2277_v46 = vunpack.c.l.bf16 %v2727_v35  ;;  %v2732_v34 = vld [vmem:[%s3027_s27 + $0x170] sm:$0xff]  }
  0x99   : > { %v1042_v48 = vsel %vm786_vm13, %v658_v33, %v914_v39  ;;  %vm787_vm14 = vcmp.ge.f32.partialorder %v659_v40, 0.0  ;;  %v915_v49 = vmul.f32 0.01, %v659_v40  ;;  %v661_v50 = vadd.f32 %v3264_v47, %v528_v42 }
  0x9a   : > { %v2560_v51 = vpack.c.bf16 %v1042_v48, %v1041_v43  ;;  %vm788_vm15 = vcmp.ge.f32.partialorder %v660_v44, 0.0  ;;  %v916_v52 = vmul.f32 0.01, %v660_v44  ;;  %v662_v53 = vadd.f32 %v3264_v47, %v529_v45 }
  0x9b   : > { %v1043_v55 = vsel %vm787_vm14, %v659_v40, %v915_v49  ;;  %vm789_vm0 = vcmp.ge.f32.partialorder %v661_v50, 0.0  ;;  %v917_v56 = vmul.f32 0.01, %v661_v50  ;;  %v2278_v57 = vunpack.c.h.bf16 %v2727_v35  ;;  %v2733_v35 = vld [vmem:[%s3027_s27 + $0x178] sm:$0xff]  }
  0x9c   : > { %2787 = vst [vmem:[%s3064_s6 + $0x130] sm:$0xff] %v2560_v51   ;;  %v1044_v59 = vsel %vm788_vm15, %v660_v44, %v916_v52  ;;  %vm790_vm1 = vcmp.ge.f32.partialorder %v662_v53, 0.0  ;;  %v918_v60 = vmul.f32 0.01, %v662_v53  ;;  %v530_v61 = vmul.f32 %v3255_v41, %v2277_v46 }
  0x9d   : > { %v2565_v62 = vpack.c.bf16 %v1044_v59, %v1043_v55  ;;  %v1045_v63 = vsel %vm789_vm0, %v661_v50, %v917_v56  ;;  %v531_v1 = vmul.f32 %v3255_v41, %v2278_v57  ;;  %v2281_v2 = vunpack.c.l.bf16 %v2728_v54 }
  0x9e   : > { %v1046_v3 = vsel %vm790_vm1, %v662_v53, %v918_v60  ;;  %v663_v4 = vadd.f32 %v3264_v47, %v530_v61  ;;  %v2282_v5 = vunpack.c.h.bf16 %v2728_v54  ;;  %v2285_v6 = vunpack.c.l.bf16 %v2729_v58 }
  0x9f   : > { %2788 = vst [vmem:[%s3064_s6 + $0x138] sm:$0xff] %v2565_v62   ;;  %v2570_v7 = vpack.c.bf16 %v1046_v3, %v1045_v63  ;;  %v664_v8 = vadd.f32 %v3264_v47, %v531_v1  ;;  %v532_v10 = vmul.f32 %v3255_v41, %v2281_v2  ;;  %v2286_v11 = vunpack.c.h.bf16 %v2729_v58  ;;  %v2734_v3 = vld [vmem:[%s3027_s27 + $0x180] sm:$0xff]  }
  0xa0   : > { %vm791_vm2 = vcmp.ge.f32.partialorder %v663_v4, 0.0  ;;  %v919_v13 = vmul.f32 0.01, %v663_v4  ;;  %v533_v14 = vmul.f32 %v3255_v41, %v2282_v5  ;;  %v534_v15 = vmul.f32 %v3255_v41, %v2285_v6 }
  0xa1   : > { %2789 = vst [vmem:[%s3064_s6 + $0x140] sm:$0xff] %v2570_v7   ;;  %vm792_vm3 = vcmp.ge.f32.partialorder %v664_v8, 0.0  ;;  %v920_v16 = vmul.f32 0.01, %v664_v8  ;;  %v665_v17 = vadd.f32 %v3264_v47, %v532_v10  ;;  %v535_v18 = vmul.f32 %v3255_v41, %v2286_v11  ;;  %v2735_v7 = vld [vmem:[%s3027_s27 + $0x188] sm:$0xff]  }
  0xa2   : > { %v1047_v19 = vsel %vm791_vm2, %v663_v4, %v919_v13  ;;  %v666_v20 = vadd.f32 %v3264_v47, %v533_v14  ;;  %v667_v21 = vadd.f32 %v3264_v47, %v534_v15  ;;  %v2289_v22 = vunpack.c.l.bf16 %v2730_v12 }
  0xa3   : > { %v1048_v23 = vsel %vm792_vm3, %v664_v8, %v920_v16  ;;  %vm793_vm4 = vcmp.ge.f32.partialorder %v665_v17, 0.0  ;;  %v921_v24 = vmul.f32 0.01, %v665_v17  ;;  %v668_v25 = vadd.f32 %v3264_v47, %v535_v18 }
  0xa4   : > { %v2575_v27 = vpack.c.bf16 %v1048_v23, %v1047_v19  ;;  %vm794_vm5 = vcmp.ge.f32.partialorder %v666_v20, 0.0  ;;  %v922_v0 = vmul.f32 0.01, %v666_v20  ;;  %vm795_vm6 = vcmp.ge.f32.partialorder %v667_v21, 0.0 }
  0xa5   : > { %v1049_v28 = vsel %vm793_vm4, %v665_v17, %v921_v24  ;;  %vm796_vm7 = vcmp.ge.f32.partialorder %v668_v25, 0.0  ;;  %v923_v29 = vmul.f32 0.01, %v667_v21  ;;  %v924_v30 = vmul.f32 0.01, %v668_v25 }
  0xa6   : > { %2790 = vst [vmem:[%s3064_s6 + $0x148] sm:$0xff] %v2575_v27   ;;  %v1050_v31 = vsel %vm794_vm5, %v666_v20, %v922_v0  ;;  %v2290_v32 = vunpack.c.h.bf16 %v2730_v12  ;;  %v536_v33 = vmul.f32 %v3255_v41, %v2289_v22  ;;  %v2293_v9 = vunpack.c.l.bf16 %v2731_v26  ;;  %v2736_v20 = vld [vmem:[%s3027_s27 + $0x190] sm:$0xff]  }
  0xa7   : > { %v2580_v36 = vpack.c.bf16 %v1050_v31, %v1049_v28  ;;  %v1051_v37 = vsel %vm795_vm6, %v667_v21, %v923_v29  ;;  %v1052_v38 = vsel %vm796_vm7, %v668_v25, %v924_v30  ;;  %v2294_v39 = vunpack.c.h.bf16 %v2731_v26 }
  0xa8   : > { %v2585_v40 = vpack.c.bf16 %v1052_v38, %v1051_v37  ;;  %v537_v42 = vmul.f32 %v3255_v41, %v2290_v32  ;;  %v669_v43 = vadd.f32 %v3264_v47, %v536_v33  ;;  %v538_v44 = vmul.f32 %v3255_v41, %v2293_v9  ;;  %v2737_v37 = vld [vmem:[%s3027_s27 + $0x198] sm:$0xff]  }
  0xa9   : > { %2791 = vst [vmem:[%s3064_s6 + $0x150] sm:$0xff] %v2580_v36   ;;  %v539_v45 = vmul.f32 %v3255_v41, %v2294_v39  ;;  %v2297_v46 = vunpack.c.l.bf16 %v2732_v34  ;;  %v2298_v48 = vunpack.c.h.bf16 %v2732_v34  ;;  %v2301_v49 = vunpack.c.l.bf16 %v2733_v35 }
  0xaa   : > { %2792 = vst [vmem:[%s3064_s6 + $0x158] sm:$0xff] %v2585_v40   ;;  %v670_v50 = vadd.f32 %v3264_v47, %v537_v42  ;;  %vm797_vm8 = vcmp.ge.f32.partialorder %v669_v43, 0.0  ;;  %v925_v51 = vmul.f32 0.01, %v669_v43  ;;  %v671_v52 = vadd.f32 %v3264_v47, %v538_v44 }
  0xab   : > { %v672_v53 = vadd.f32 %v3264_v47, %v539_v45  ;;  %v540_v54 = vmul.f32 %v3255_v41, %v2297_v46  ;;  %v541_v55 = vmul.f32 %v3255_v41, %v2298_v48  ;;  %v2302_v56 = vunpack.c.h.bf16 %v2733_v35  ;;  %v2738_v48 = vld [vmem:[%s3027_s27 + $0x1a0] sm:$0xff]  }
  0xac   : > { %vm798_vm9 = vcmp.ge.f32.partialorder %v670_v50, 0.0  ;;  %v926_v57 = vmul.f32 0.01, %v670_v50  ;;  %v1053_v58 = vsel %vm797_vm8, %v669_v43, %v925_v51  ;;  %vm799_vm10 = vcmp.ge.f32.partialorder %v671_v52, 0.0 }
  0xad   : > { %vm800_vm11 = vcmp.ge.f32.partialorder %v672_v53, 0.0  ;;  %v927_v59 = vmul.f32 0.01, %v671_v52  ;;  %v928_v60 = vmul.f32 0.01, %v672_v53  ;;  %v673_v61 = vadd.f32 %v3264_v47, %v540_v54 }
  0xae   : > { %v1054_v62 = vsel %vm798_vm9, %v670_v50, %v926_v57  ;;  %v674_v63 = vadd.f32 %v3264_v47, %v541_v55  ;;  %v542_v1 = vmul.f32 %v3255_v41, %v2301_v49  ;;  %v543_v2 = vmul.f32 %v3255_v41, %v2302_v56 }
  0xaf   : > { %v2590_v4 = vpack.c.bf16 %v1054_v62, %v1053_v58  ;;  %v1055_v5 = vsel %vm799_vm10, %v671_v52, %v927_v59  ;;  %v1056_v6 = vsel %vm800_vm11, %v672_v53, %v928_v60  ;;  %vm801_vm12 = vcmp.ge.f32.partialorder %v673_v61, 0.0  ;;  %v2739_v53 = vld [vmem:[%s3027_s27 + $0x1a8] sm:$0xff]  }
  0xb0   : > { %v2595_v8 = vpack.c.bf16 %v1056_v6, %v1055_v5  ;;  %vm802_vm13 = vcmp.ge.f32.partialorder %v674_v63, 0.0  ;;  %v929_v10 = vmul.f32 0.01, %v673_v61  ;;  %v930_v11 = vmul.f32 0.01, %v674_v63  ;;  %v2740_v5 = vld [vmem:[%s3027_s27 + $0x1b0] sm:$0xff]  }
  0xb1   : > { %2793 = vst [vmem:[%s3064_s6 + $0x160] sm:$0xff] %v2590_v4   ;;  %v675_v12 = vadd.f32 %v3264_v47, %v542_v1  ;;  %v676_v13 = vadd.f32 %v3264_v47, %v543_v2  ;;  %v2305_v14 = vunpack.c.l.bf16 %v2734_v3  ;;  %v2306_v15 = vunpack.c.h.bf16 %v2734_v3 }
  0xb2   : > { %2794 = vst [vmem:[%s3064_s6 + $0x168] sm:$0xff] %v2595_v8   ;;  %v1057_v16 = vsel %vm801_vm12, %v673_v61, %v929_v10  ;;  %v1058_v17 = vsel %vm802_vm13, %v674_v63, %v930_v11  ;;  %v2309_v18 = vunpack.c.l.bf16 %v2735_v7  ;;  %v2310_v19 = vunpack.c.h.bf16 %v2735_v7 }
  0xb3   : > { %v2600_v21 = vpack.c.bf16 %v1058_v17, %v1057_v16  ;;  %vm803_vm14 = vcmp.ge.f32.partialorder %v675_v12, 0.0  ;;  %vm804_vm15 = vcmp.ge.f32.partialorder %v676_v13, 0.0  ;;  %v931_v22 = vmul.f32 0.01, %v675_v12 }
  0xb4   : > { %v932_v23 = vmul.f32 0.01, %v676_v13  ;;  %v544_v24 = vmul.f32 %v3255_v41, %v2305_v14  ;;  %v545_v25 = vmul.f32 %v3255_v41, %v2306_v15  ;;  %v546_v26 = vmul.f32 %v3255_v41, %v2309_v18 }
  0xb5   : > { %2795 = vst [vmem:[%s3064_s6 + $0x170] sm:$0xff] %v2600_v21   ;;  %v1059_v27 = vsel %vm803_vm14, %v675_v12, %v931_v22  ;;  %v547_v0 = vmul.f32 %v3255_v41, %v2310_v19  ;;  %v2313_v28 = vunpack.c.l.bf16 %v2736_v20  ;;  %v2314_v29 = vunpack.c.h.bf16 %v2736_v20 }
  0xb6   : > { %v1060_v30 = vsel %vm804_vm15, %v676_v13, %v932_v23  ;;  %v677_v31 = vadd.f32 %v3264_v47, %v544_v24  ;;  %v678_v32 = vadd.f32 %v3264_v47, %v545_v25  ;;  %v679_v33 = vadd.f32 %v3264_v47, %v546_v26  ;;  %v2741_v25 = vld [vmem:[%s3027_s27 + $0x1b8] sm:$0xff]  }
  0xb7   : > { %v2605_v9 = vpack.c.bf16 %v1060_v30, %v1059_v27  ;;  %v680_v34 = vadd.f32 %v3264_v47, %v547_v0  ;;  %v548_v35 = vmul.f32 %v3255_v41, %v2313_v28  ;;  %v549_v36 = vmul.f32 %v3255_v41, %v2314_v29  ;;  %v2742_v29 = vld [vmem:[%s3027_s27 + $0x1c0] sm:$0xff]   ;;  %v2743_v30 = vld [vmem:[%s3027_s27 + $0x1c8] sm:$0xff]  }
  0xb8   : > { %vm805_vm0 = vcmp.ge.f32.partialorder %v677_v31, 0.0  ;;  %vm806_vm1 = vcmp.ge.f32.partialorder %v678_v32, 0.0  ;;  %v933_v38 = vmul.f32 0.01, %v677_v31  ;;  %v934_v39 = vmul.f32 0.01, %v678_v32 }
  0xb9   : > { %2796 = vst [vmem:[%s3064_s6 + $0x178] sm:$0xff] %v2605_v9   ;;  %vm807_vm2 = vcmp.ge.f32.partialorder %v679_v33, 0.0  ;;  %vm808_vm3 = vcmp.ge.f32.partialorder %v680_v34, 0.0  ;;  %v935_v40 = vmul.f32 0.01, %v679_v33  ;;  %v681_v45 = vadd.f32 %v3264_v47, %v548_v35 }
  0xba   : > { %v936_v42 = vmul.f32 0.01, %v680_v34  ;;  %v1061_v43 = vsel %vm805_vm0, %v677_v31, %v933_v38  ;;  %v1062_v44 = vsel %vm806_vm1, %v678_v32, %v934_v39  ;;  %v682_v46 = vadd.f32 %v3264_v47, %v549_v36 }
  0xbb   : > { %v2610_v49 = vpack.c.bf16 %v1062_v44, %v1061_v43  ;;  %v1063_v50 = vsel %vm807_vm2, %v679_v33, %v935_v40  ;;  %v2317_v52 = vunpack.c.l.bf16 %v2737_v37  ;;  %vm809_vm4 = vcmp.ge.f32.partialorder %v681_v45, 0.0 }
  0xbc   : > { %v1064_v51 = vsel %vm808_vm3, %v680_v34, %v936_v42  ;;  %vm810_vm5 = vcmp.ge.f32.partialorder %v682_v46, 0.0  ;;  %v937_v55 = vmul.f32 0.01, %v681_v45  ;;  %v938_v56 = vmul.f32 0.01, %v682_v46 }
  0xbd   : > { %v2615_v54 = vpack.c.bf16 %v1064_v51, %v1063_v50  ;;  %2797 = vst [vmem:[%s3064_s6 + $0x180] sm:$0xff] %v2610_v49   ;;  %v2318_v57 = vunpack.c.h.bf16 %v2737_v37  ;;  %v550_v58 = vmul.f32 %v3255_v41, %v2317_v52  ;;  %v2321_v59 = vunpack.c.l.bf16 %v2738_v48 }
  0xbe   : > { %v1065_v60 = vsel %vm809_vm4, %v681_v45, %v937_v55  ;;  %v2322_v61 = vunpack.c.h.bf16 %v2738_v48  ;;  %v2325_v62 = vunpack.c.l.bf16 %v2739_v53  ;;  %v2326_v63 = vunpack.c.h.bf16 %v2739_v53 }
  0xbf   : > { %2798 = vst [vmem:[%s3064_s6 + $0x188] sm:$0xff] %v2615_v54   ;;  %v1066_v1 = vsel %vm810_vm5, %v682_v46, %v938_v56  ;;  %v551_v2 = vmul.f32 %v3255_v41, %v2318_v57  ;;  %v683_v3 = vadd.f32 %v3264_v47, %v550_v58  ;;  %v552_v4 = vmul.f32 %v3255_v41, %v2321_v59 }
  0xc0   : > { %v2620_v6 = vpack.c.bf16 %v1066_v1, %v1065_v60  ;;  %v553_v7 = vmul.f32 %v3255_v41, %v2322_v61  ;;  %v554_v8 = vmul.f32 %v3255_v41, %v2325_v62  ;;  %v555_v10 = vmul.f32 %v3255_v41, %v2326_v63  ;;  %v2744_v60 = vld [vmem:[%s3027_s27 + $0x1d0] sm:$0xff]  }
  0xc1   : > { %v684_v11 = vadd.f32 %v3264_v47, %v551_v2  ;;  %vm811_vm6 = vcmp.ge.f32.partialorder %v683_v3, 0.0  ;;  %v939_v12 = vmul.f32 0.01, %v683_v3  ;;  %v685_v13 = vadd.f32 %v3264_v47, %v552_v4 }
  0xc2   : > { %2799 = vst [vmem:[%s3064_s6 + $0x190] sm:$0xff] %v2620_v6   ;;  %v686_v14 = vadd.f32 %v3264_v47, %v553_v7  ;;  %v687_v15 = vadd.f32 %v3264_v47, %v554_v8  ;;  %v688_v16 = vadd.f32 %v3264_v47, %v555_v10  ;;  %v2329_v17 = vunpack.c.l.bf16 %v2740_v5  ;;  %v2745_v8 = vld [vmem:[%s3027_s27 + $0x1d8] sm:$0xff]  }
  0xc3   : > { %vm812_vm7 = vcmp.ge.f32.partialorder %v684_v11, 0.0  ;;  %v940_v18 = vmul.f32 0.01, %v684_v11  ;;  %v1067_v19 = vsel %vm811_vm6, %v683_v3, %v939_v12  ;;  %vm813_vm8 = vcmp.ge.f32.partialorder %v685_v13, 0.0 }
  0xc4   : > { %vm814_vm9 = vcmp.ge.f32.partialorder %v686_v14, 0.0  ;;  %v941_v20 = vmul.f32 0.01, %v685_v13  ;;  %v942_v21 = vmul.f32 0.01, %v686_v14  ;;  %vm815_vm10 = vcmp.ge.f32.partialorder %v687_v15, 0.0 }
  0xc5   : > { %v1068_v22 = vsel %vm812_vm7, %v684_v11, %v940_v18  ;;  %vm816_vm11 = vcmp.ge.f32.partialorder %v688_v16, 0.0  ;;  %v943_v23 = vmul.f32 0.01, %v687_v15  ;;  %v944_v24 = vmul.f32 0.01, %v688_v16 }
  0xc6   : > { %v2625_v26 = vpack.c.bf16 %v1068_v22, %v1067_v19  ;;  %v1069_v27 = vsel %vm813_vm8, %v685_v13, %v941_v20  ;;  %v1070_v0 = vsel %vm814_vm9, %v686_v14, %v942_v21  ;;  %v2330_v28 = vunpack.c.h.bf16 %v2740_v5  ;;  %v2746_v14 = vld [vmem:[%s3027_s27 + $0x1e0] sm:$0xff]  }
  0xc7   : > { %v2630_v31 = vpack.c.bf16 %v1070_v0, %v1069_v27  ;;  %v1071_v32 = vsel %vm815_vm10, %v687_v15, %v943_v23  ;;  %v1072_v33 = vsel %vm816_vm11, %v688_v16, %v944_v24  ;;  %v556_v9 = vmul.f32 %v3255_v41, %v2329_v17 }
  0xc8   : > { %2800 = vst [vmem:[%s3064_s6 + $0x198] sm:$0xff] %v2625_v26   ;;  %v2635_v34 = vpack.c.bf16 %v1072_v33, %v1071_v32  ;;  %v557_v35 = vmul.f32 %v3255_v41, %v2330_v28  ;;  %v2333_v36 = vunpack.c.l.bf16 %v2741_v25  ;;  %v2334_v37 = vunpack.c.h.bf16 %v2741_v25  ;;  %v2747_v28 = vld [vmem:[%s3027_s27 + $0x1e8] sm:$0xff]  }
  0xc9   : > { %2801 = vst [vmem:[%s3064_s6 + $0x1a0] sm:$0xff] %v2630_v31   ;;  %v689_v38 = vadd.f32 %v3264_v47, %v556_v9  ;;  %v2337_v39 = vunpack.c.l.bf16 %v2742_v29  ;;  %v2338_v40 = vunpack.c.h.bf16 %v2742_v29  ;;  %v2341_v42 = vunpack.c.l.bf16 %v2743_v30 }
  0xca   : > { %2802 = vst [vmem:[%s3064_s6 + $0x1a8] sm:$0xff] %v2635_v34   ;;  %v690_v43 = vadd.f32 %v3264_v47, %v557_v35  ;;  %v558_v44 = vmul.f32 %v3255_v41, %v2333_v36  ;;  %v559_v45 = vmul.f32 %v3255_v41, %v2334_v37  ;;  %v2342_v46 = vunpack.c.h.bf16 %v2743_v30 }
  0xcb   : > { %vm817_vm12 = vcmp.ge.f32.partialorder %v689_v38, 0.0  ;;  %v945_v48 = vmul.f32 0.01, %v689_v38  ;;  %v560_v49 = vmul.f32 %v3255_v41, %v2337_v39  ;;  %v561_v50 = vmul.f32 %v3255_v41, %v2338_v40 }
  0xcc   : > { %vm818_vm13 = vcmp.ge.f32.partialorder %v690_v43, 0.0  ;;  %v946_v51 = vmul.f32 0.01, %v690_v43  ;;  %v691_v52 = vadd.f32 %v3264_v47, %v558_v44  ;;  %v692_v53 = vadd.f32 %v3264_v47, %v559_v45  ;;  %v2748_v45 = vld [vmem:[%s3027_s27 + $0x1f0] sm:$0xff]  }
  0xcd   : > { %v1073_v54 = vsel %vm817_vm12, %v689_v38, %v945_v48  ;;  %v693_v55 = vadd.f32 %v3264_v47, %v560_v49  ;;  %v694_v56 = vadd.f32 %v3264_v47, %v561_v50  ;;  %v562_v57 = vmul.f32 %v3255_v41, %v2341_v42  ;;  %v2749_v50 = vld [vmem:[%s3027_s27 + $0x1f8] sm:$0xff]   ;;  %s2950_s27 = smov [#allocation2]  }
  0xce   : > { %v1074_v58 = vsel %vm818_vm13, %v690_v43, %v946_v51  ;;  %vm819_vm14 = vcmp.ge.f32.partialorder %v691_v52, 0.0  ;;  %vm820_vm15 = vcmp.ge.f32.partialorder %v692_v53, 0.0  ;;  %v947_v59 = vmul.f32 0.01, %v691_v52  ;;  %s2876_s28 = sshll.u32 %s2950_s27, 4  ;;  %s2877_s28 = int_to_ptr.vmem [resolvable:$false] %s2876_s28 }
  0xcf   : > { %v2640_v61 = vpack.c.bf16 %v1074_v58, %v1073_v54  ;;  %v948_v62 = vmul.f32 0.01, %v692_v53  ;;  %vm821_vm0 = vcmp.ge.f32.partialorder %v693_v55, 0.0  ;;  %vm822_vm1 = vcmp.ge.f32.partialorder %v694_v56, 0.0  ;;  %s2878_s29 = scalar_lea.vmem %s2877_s28, 16384  ;;  %p2879_p1 = scmp.lt.s32.totalorder %s3446_s20, %s2877_s28 }
  0xd0   : > { %v1075_v63 = vsel %vm819_vm14, %v691_v52, %v947_v59  ;;  %v949_v1 = vmul.f32 0.01, %v693_v55  ;;  %v950_v2 = vmul.f32 0.01, %v694_v56  ;;  %v563_v3 = vmul.f32 %v3255_v41, %v2342_v46  ;;  %p2880_p2 = scmp.lt.s32.totalorder %s2878_s29, %s2872_s26 }
  0xd1   : > { %2803 = vst [vmem:[%s3064_s6 + $0x1b0] sm:$0xff] %v2640_v61   ;;  %v1076_v4 = vsel %vm820_vm15, %v692_v53, %v948_v62  ;;  %v695_v5 = vadd.f32 %v3264_v47, %v562_v57  ;;  %v2345_v6 = vunpack.c.l.bf16 %v2744_v60  ;;  %v2346_v7 = vunpack.c.h.bf16 %v2744_v60 }
  0xd2   : > { %v2645_v10 = vpack.c.bf16 %v1076_v4, %v1075_v63  ;;  %v1077_v11 = vsel %vm821_vm0, %v693_v55, %v949_v1  ;;  %v1078_v12 = vsel %vm822_vm1, %v694_v56, %v950_v2  ;;  %v696_v13 = vadd.f32 %v3264_v47, %v563_v3  ;;  %p2881_p3 = por %p2880_p2, %p2879_p1 }
  0xd3   : > { %v2650_v15 = vpack.c.bf16 %v1078_v12, %v1077_v11  ;;  %vm823_vm2 = vcmp.ge.f32.partialorder %v695_v5, 0.0  ;;  %v951_v16 = vmul.f32 0.01, %v695_v5  ;;  %v564_v17 = vmul.f32 %v3255_v41, %v2345_v6 }
  0xd4   : > { %2804 = vst [vmem:[%s3064_s6 + $0x1b8] sm:$0xff] %v2645_v10   ;;  %vm824_vm3 = vcmp.ge.f32.partialorder %v696_v13, 0.0  ;;  %v952_v18 = vmul.f32 0.01, %v696_v13  ;;  %v565_v19 = vmul.f32 %v3255_v41, %v2346_v7  ;;  %v2349_v20 = vunpack.c.l.bf16 %v2745_v8  ;;  %p2882_p5 = pnand %p2881_p3, %p2875_p0 }
  0xd5   : > { %2805 = vst [vmem:[%s3064_s6 + $0x1c0] sm:$0xff] %v2650_v15   ;;  %v1079_v21 = vsel %vm823_vm2, %v695_v5, %v951_v16  ;;  %v697_v22 = vadd.f32 %v3264_v47, %v564_v17  ;;  %v2350_v23 = vunpack.c.h.bf16 %v2745_v8  ;;  %v2353_v24 = vunpack.c.l.bf16 %v2746_v14 }
  0xd6   : > { %v1080_v25 = vsel %vm824_vm3, %v696_v13, %v952_v18  ;;  %v698_v26 = vadd.f32 %v3264_v47, %v565_v19  ;;  %v566_v27 = vmul.f32 %v3255_v41, %v2349_v20  ;;  %v2354_v0 = vunpack.c.h.bf16 %v2746_v14 }
  0xd7   : > { %v2655_v29 = vpack.c.bf16 %v1080_v25, %v1079_v21  ;;  %vm825_vm4 = vcmp.ge.f32.partialorder %v697_v22, 0.0  ;;  %v953_v30 = vmul.f32 0.01, %v697_v22  ;;  %v567_v31 = vmul.f32 %v3255_v41, %v2350_v23 }
  0xd8   : > { %vm826_vm5 = vcmp.ge.f32.partialorder %v698_v26, 0.0  ;;  %v954_v32 = vmul.f32 0.01, %v698_v26  ;;  %v699_v33 = vadd.f32 %v3264_v47, %v566_v27  ;;  %v568_v9 = vmul.f32 %v3255_v41, %v2353_v24 }
  0xd9   : > { %2806 = vst [vmem:[%s3064_s6 + $0x1c8] sm:$0xff] %v2655_v29   ;;  %v1081_v34 = vsel %vm825_vm4, %v697_v22, %v953_v30  ;;  %v700_v35 = vadd.f32 %v3264_v47, %v567_v31  ;;  %v569_v36 = vmul.f32 %v3255_v41, %v2354_v0  ;;  %v2357_v37 = vunpack.c.l.bf16 %v2747_v28 }
  0xda   : > { %v1082_v38 = vsel %vm826_vm5, %v698_v26, %v954_v32  ;;  %vm827_vm6 = vcmp.ge.f32.partialorder %v699_v33, 0.0  ;;  %v955_v39 = vmul.f32 0.01, %v699_v33  ;;  %v701_v40 = vadd.f32 %v3264_v47, %v568_v9 }
  0xdb   : > { %v2660_v42 = vpack.c.bf16 %v1082_v38, %v1081_v34  ;;  %vm828_vm7 = vcmp.ge.f32.partialorder %v700_v35, 0.0  ;;  %v956_v43 = vmul.f32 0.01, %v700_v35  ;;  %v702_v44 = vadd.f32 %v3264_v47, %v569_v36 }
  0xdc   : > { %v1083_v46 = vsel %vm827_vm6, %v699_v33, %v955_v39  ;;  %vm829_vm8 = vcmp.ge.f32.partialorder %v701_v40, 0.0  ;;  %v957_v48 = vmul.f32 0.01, %v701_v40  ;;  %v2358_v49 = vunpack.c.h.bf16 %v2747_v28 }
  0xdd   : > { %2807 = vst [vmem:[%s3064_s6 + $0x1d0] sm:$0xff] %v2660_v42   ;;  %v1084_v51 = vsel %vm828_vm7, %v700_v35, %v956_v43  ;;  %vm830_vm9 = vcmp.ge.f32.partialorder %v702_v44, 0.0  ;;  %v958_v52 = vmul.f32 0.01, %v702_v44  ;;  %v570_v53 = vmul.f32 %v3255_v41, %v2357_v37 }
  0xde   : > { %v2665_v54 = vpack.c.bf16 %v1084_v51, %v1083_v46  ;;  %v1085_v55 = vsel %vm829_vm8, %v701_v40, %v957_v48  ;;  %v571_v56 = vmul.f32 %v3255_v41, %v2358_v49  ;;  %v2361_v57 = vunpack.c.l.bf16 %v2748_v45 }
  0xdf   : > { %v1086_v58 = vsel %vm830_vm9, %v702_v44, %v958_v52  ;;  %v703_v59 = vadd.f32 %v3264_v47, %v570_v53  ;;  %v2362_v60 = vunpack.c.h.bf16 %v2748_v45  ;;  %v2365_v61 = vunpack.c.l.bf16 %v2749_v50 }
  0xe0   : > { %2808 = vst [vmem:[%s3064_s6 + $0x1d8] sm:$0xff] %v2665_v54   ;;  %v2670_v62 = vpack.c.bf16 %v1086_v58, %v1085_v55  ;;  %v704_v63 = vadd.f32 %v3264_v47, %v571_v56  ;;  %v572_v1 = vmul.f32 %v3255_v41, %v2361_v57  ;;  %v2366_v2 = vunpack.c.h.bf16 %v2749_v50 }
  0xe1   : > { %vm831_vm10 = vcmp.ge.f32.partialorder %v703_v59, 0.0  ;;  %v959_v3 = vmul.f32 0.01, %v703_v59  ;;  %v573_v4 = vmul.f32 %v3255_v41, %v2362_v60  ;;  %v574_v5 = vmul.f32 %v3255_v41, %v2365_v61 }
  0xe2   : > { %2809 = vst [vmem:[%s3064_s6 + $0x1e0] sm:$0xff] %v2670_v62   ;;  %vm832_vm11 = vcmp.ge.f32.partialorder %v704_v63, 0.0  ;;  %v960_v6 = vmul.f32 0.01, %v704_v63  ;;  %v705_v7 = vadd.f32 %v3264_v47, %v572_v1  ;;  %v575_v8 = vmul.f32 %v3255_v41, %v2366_v2 }
  0xe3   : > { %v1087_v10 = vsel %vm831_vm10, %v703_v59, %v959_v3  ;;  %v706_v11 = vadd.f32 %v3264_v47, %v573_v4  ;;  %v707_v12 = vadd.f32 %v3264_v47, %v574_v5 }
  0xe4   : > { %v1088_v13 = vsel %vm832_vm11, %v704_v63, %v960_v6  ;;  %vm833_vm12 = vcmp.ge.f32.partialorder %v705_v7, 0.0  ;;  %v961_v14 = vmul.f32 0.01, %v705_v7  ;;  %v708_v15 = vadd.f32 %v3264_v47, %v575_v8 }
  0xe5   : > { %v2675_v16 = vpack.c.bf16 %v1088_v13, %v1087_v10  ;;  %vm834_vm13 = vcmp.ge.f32.partialorder %v706_v11, 0.0  ;;  %v962_v17 = vmul.f32 0.01, %v706_v11  ;;  %vm835_vm14 = vcmp.ge.f32.partialorder %v707_v12, 0.0 }
  0xe6   : > { %v1089_v41 = vsel %vm833_vm12, %v705_v7, %v961_v14  ;;  %vm836_vm15 = vcmp.ge.f32.partialorder %v708_v15, 0.0  ;;  %v963_v18 = vmul.f32 0.01, %v707_v12  ;;  %v964_v19 = vmul.f32 0.01, %v708_v15 }
  0xe7   : > { %2810 = vst [vmem:[%s3064_s6 + $0x1e8] sm:$0xff] %v2675_v16   ;;  %v1090_v20 = vsel %vm834_vm13, %v706_v11, %v962_v17 }
  0xe8   : > { %v2680_v21 = vpack.c.bf16 %v1090_v20, %v1089_v41  ;;  %v1091_v22 = vsel %vm835_vm14, %v707_v12, %v963_v18  ;;  %v1092_v23 = vsel %vm836_vm15, %v708_v15, %v964_v19 }
  0xe9   : > { %v2685_v47 = vpack.c.bf16 %v1092_v23, %v1091_v22 }
  0xea   : > { %2811 = vst [vmem:[%s3064_s6 + $0x1f0] sm:$0xff] %v2680_v21  }
  0xeb   : > { %2812 = vst [vmem:[%s3064_s6 + $0x1f8] sm:$0xff] %v2685_v47  }
  0xec   : > { %2885 = shalt.err (!%p2882_p5)
}
  0xed   : > { %s2886_s30 = scalar_lea.hbm %s3444_s25, 8192  ;;  %s2890_s5 = scalar_lea.hbm %s3499_s2, 16384 }
  0xee   : > { %p2887_p6 = scmp.ne.s32.totalorder %s3444_s25, %s2886_s30  ;;  %p2891_p10 = scmp.lt.s32.totalorder %s3444_s25, %s3499_s2 }
  0xef   : > { %p2892_p11 = scmp.lt.s32.totalorder %s2890_s5, %s2886_s30 }
  0xf0   : > { %p2888_p7 = pnand %p2887_p6, %p3008_p4 }
  0xf1   : > { %p2893_p12 = por %p2892_p11, %p2891_p10 }
  0xf2   : > { %p2889_p9 = pneg %p2888_p7 }
  0xf4   : > { %p2894_p13 = pnand %p2893_p12, %p2889_p9 }
  0xf6   : > { %2897 = shalt.err (!%p2894_p13)
}
  0xf7   : > { %s2951_s8 = smov 64   ;;  %s2952_s15 = smov 4  }
  0xf8   : > { %2813 = dma.vmem_to_hbm [thread:$0]  (%p3008_p4), %s3446_s20, 8192, %s3444_s25, %s3452_s12, %s2951_s8, %s2951_s8, %s2952_s15  }
  0xf9 PF: > { %p2819_p0 = scmp.ge.s32.totalorder %s2948_s14, 2  ;;  %s1763_s16 = sand.u32 1, %s2928_s9  }
  0xfa   : > { %s1764_s18 = scalar_lea.sflag [#allocation3], %s1763_s16 }
  0xfb   : > { %p2816_p1 = pnand %p2819_p0, %p3015_p8 }
  0xfd   : > { %p2817_p2 = pneg %p2816_p1 }
  0xff   : > { %2923 = dma.done.wait (%p2817_p2), %s1764_s18, 8192  }
 0x100   : > { %2925 = vsyncadd (%p2817_p2), %s1764_s18, 4294959104  ;;  %s15_s14 = sadd.s32 1, %s2948_s14   ;;  %s3502_s9 = smov %s2932_s10 }
 0x101   : > { %p12_p3 = scmp.ge.s32.totalorder %s15_s14, 4   ;;  %s3503_s10 = smov %s2936_s11 }
 0x102   : > { %s3504_s11 = smov %s3021_s22  ;;  %s3505_s12 = smov %s2944_s13 }
 0x103   : > { %s3506_s13 = smov %s3508_s17  ;;  %14 = sbr.rel (!%p12_p3) target bundleno = 4 (0x4), region = 66 }
 0x108   :  { %1769 = vsyncpa [#allocation3], 1 }
 0x109   :  { %1771 = vsyncpa [#allocation3 + $0x1], 1 }

// kernel: conv2d_bn_act.2
= control target key start
LH: loop header
LB: loop body
LE: loop exit
PB: predicated region body
PF: predicated region fallthrough
CT: control target
= control target key end

     0   :  { %s4373_s15 = smov 0   ;;  %s4375_s16 = smov 0   ;;  %s4961_s0 = inlined_call_operand.vmem [shape: bf16[2048,128], index: 0, kind: input, shape index: {}]   ;;  %s4962_s1 = inlined_call_operand.vmem [shape: bf16[128,128], index: 1, kind: input, shape index: {}]   ;;  %s4963_s2 = inlined_call_operand.vmem [shape: f32[2,128], index: 2, kind: input, shape index: {}]   ;;  %s4964_s3 = inlined_call_operand.vmem [shape: bf16[2048,128], index: 3, kind: output, shape index: {0}]   ;;  %s4965_s4 = inlined_call_operand.vmem [shape: f32[2,8,128], index: 4, kind: output, shape index: {1}]  }
   0x1   :  { %s4377_s17 = smov 0  }
   0x2 LB: > { %s34_s2 = sadd.s32 1, %s4342_s16  ;;  %p3277_p0 = scmp.ge.s32.totalorder %s4346_s17, 1  ;;  %s4346_s17 = sphi %s4377_s17, %s15_s17   ;;  %s4342_s16 = sphi %s4375_s16, %s5027_s16   ;;  %s4338_s15 = sphi %s4373_s15, %s5026_s15  }
   0x3   : > { %p36_p1 = scmp.ge.s32.totalorder %s34_s2, 2  ;;  %p219_p2 = scmp.lt.s32.totalorder %s4346_s17, 3 }
   0x5   : > { %s5029_s2 = smov (%p36_p1, %s34_s2), 0  ;;  %p220_p3 = pnand %p3277_p0, %p219_p2 }
   0x7   : > { %223 = sbr.rel (%p220_p3) target bundleno = 515 (0x203), region = 32 }
   0xc   : > { %v4252_v0 = vld [vmem:[%s4962_s1 + $0x38] sm:$0xff]   ;;  %s3278_s20 = sshll.u32 %s4338_s15, 7  ;;  %v4253_v1 = vld [vmem:[%s4962_s1 + $0x30] sm:$0xff]   ;;  %v4254_v2 = vld [vmem:[%s4962_s1 + $0x28] sm:$0xff]   ;;  %p301_p5 = scmp.lt.s32.totalorder %s4338_s15, 1  ;;  %vm2471_vm0 = vcmask 1040384  }
   0xd   : > { %p271_p4 = scmp.lt.s32.totalorder %s3278_s20, 255  ;;  %4068 = vmatprep.subr.bf16.mxu0 %v4252_v0  ;;  %4212 = vmatprep.subr.bf16.mxu1 %v4252_v0  ;;  %v4255_v3 = vld [vmem:[%s4962_s1 + $0x20] sm:$0xff]   ;;  %v4256_v5 = vld [vmem:[%s4962_s1 + $0x18] sm:$0xff]   ;;  %v4257_v6 = vld [vmem:[%s4962_s1 + $0x10] sm:$0xff]   ;;  %vm2473_vm1 = vcmask 1041408  }
   0xe   : > { %4069 = vmatpush3.bf16.msra.mxu0 %v4252_v0  ;;  %4220 = vmatpush3.bf16.msra.mxu1 %v4252_v0  ;;  %v4258_v7 = vld [vmem:[%s4962_s1 + $0x8] sm:$0xff]   ;;  %v4259_v8 = vld [vmem:[%s4962_s1] sm:$0xff]   ;;  %s5033_s15 = smov (!%p301_p5, %s4338_s15), 1 }
   0xf   : > { %s5031_s20 = smov (!%p271_p4, %s3278_s20), 255  ;;  %4070 = vmatprep.subr.bf16.mxu0 %v4253_v1  ;;  %4213 = vmatprep.subr.bf16.mxu1 %v4253_v1  ;;  %s3282_s19 = sshll.u32 %s5033_s15, 3 }
  0x10   : > { %s3279_s25 = sshll.u32 %s5031_s20, 2  ;;  %s307_s22 = scalar_lea.vmem %s4965_s4, %s3282_s19 }
  0x11   : > { %s4411_s28 = scalar_lea.vmem %s4961_s0, %s3279_s25  ;;  %s4497_s18 = scalar_lea.vmem %s4964_s3, %s3279_s25 }
  0x12   : > { %4071 = vmatpush3.bf16.msra.mxu0 %v4253_v1  ;;  %4221 = vmatpush3.bf16.msra.mxu1 %v4253_v1  ;;  %v4260_v4 = vld [vmem:[%s4411_s28] sm:$0xff]   ;;  %v4261_v9 = vld [vmem:[%s4411_s28 + $0x8] sm:$0xff]   ;;  %v4262_v10 = vld [vmem:[%s4411_s28 + $0x10] sm:$0xff]  }
  0x13   : > { %4072 = vmatprep.subr.bf16.mxu0 %v4254_v2  ;;  %4214 = vmatprep.subr.bf16.mxu1 %v4254_v2  ;;  %v4263_v11 = vld [vmem:[%s4411_s28 + $0x18] sm:$0xff]   ;;  %v4264_v12 = vld [vmem:[%s4411_s28 + $0x20] sm:$0xff]   ;;  %v4293_v14 = vld [vmem:[%s4411_s28 + $0x108] sm:$0xff]  }
  0x14   : > { %4084 = vmatprep.mubr.bf16.mxu0 %v4260_v4  ;;  %v4292_v13 = vld [vmem:[%s4411_s28 + $0x100] sm:$0xff]   ;;  %v4294_v15 = vld [vmem:[%s4411_s28 + $0x110] sm:$0xff]   ;;  %v4265_v16 = vld [vmem:[%s4411_s28 + $0x28] sm:$0xff]  }
  0x15   : > { %4148 = vmatprep.mubr.bf16.mxu1 %v4292_v13  ;;  %v4266_v17 = vld [vmem:[%s4411_s28 + $0x30] sm:$0xff]   ;;  %v4295_v18 = vld [vmem:[%s4411_s28 + $0x118] sm:$0xff]   ;;  %v4296_v19 = vld [vmem:[%s4411_s28 + $0x120] sm:$0xff]  }
  0x16   : > { %4073 = vmatpush3.bf16.msra.mxu0 %v4254_v2  ;;  %4222 = vmatpush3.bf16.msra.mxu1 %v4254_v2  ;;  %v4267_v20 = vld [vmem:[%s4411_s28 + $0x38] sm:$0xff]   ;;  %v4268_v21 = vld [vmem:[%s4411_s28 + $0x40] sm:$0xff]   ;;  %v4297_v22 = vld [vmem:[%s4411_s28 + $0x128] sm:$0xff]  }
  0x17   : > { %4074 = vmatprep.subr.bf16.mxu0 %v4255_v3  ;;  %4215 = vmatprep.subr.bf16.mxu1 %v4255_v3  ;;  %v4298_v23 = vld [vmem:[%s4411_s28 + $0x130] sm:$0xff]   ;;  %v4269_v24 = vld [vmem:[%s4411_s28 + $0x48] sm:$0xff]   ;;  %v4299_v26 = vld [vmem:[%s4411_s28 + $0x138] sm:$0xff]  }
  0x18   : > { %v4270_v25 = vld [vmem:[%s4411_s28 + $0x50] sm:$0xff]   ;;  %v4300_v27 = vld [vmem:[%s4411_s28 + $0x140] sm:$0xff]   ;;  %v4271_v28 = vld [vmem:[%s4411_s28 + $0x58] sm:$0xff]  }
  0x19   : > { %v4272_v29 = vld [vmem:[%s4411_s28 + $0x60] sm:$0xff]   ;;  %v4301_v30 = vld [vmem:[%s4411_s28 + $0x148] sm:$0xff]   ;;  %v4302_v31 = vld [vmem:[%s4411_s28 + $0x150] sm:$0xff]  }
  0x1a   : > { %4075 = vmatpush3.bf16.msra.mxu0 %v4255_v3  ;;  %4223 = vmatpush3.bf16.msra.mxu1 %v4255_v3  ;;  %v4273_v32 = vld [vmem:[%s4411_s28 + $0x68] sm:$0xff]   ;;  %v4274_v33 = vld [vmem:[%s4411_s28 + $0x70] sm:$0xff]   ;;  %v4303_v34 = vld [vmem:[%s4411_s28 + $0x158] sm:$0xff]  }
  0x1b   : > { %4076 = vmatprep.subr.bf16.mxu0 %v4256_v5  ;;  %4216 = vmatprep.subr.bf16.mxu1 %v4256_v5  ;;  %v4304_v35 = vld [vmem:[%s4411_s28 + $0x160] sm:$0xff]   ;;  %v4275_v36 = vld [vmem:[%s4411_s28 + $0x78] sm:$0xff]   ;;  %v4305_v38 = vld [vmem:[%s4411_s28 + $0x168] sm:$0xff]  }
  0x1c   : > { %v4276_v37 = vld [vmem:[%s4411_s28 + $0x80] sm:$0xff]   ;;  %v4306_v39 = vld [vmem:[%s4411_s28 + $0x170] sm:$0xff]   ;;  %v4277_v40 = vld [vmem:[%s4411_s28 + $0x88] sm:$0xff]  }
  0x1d   : > { %v4278_v41 = vld [vmem:[%s4411_s28 + $0x90] sm:$0xff]   ;;  %v4307_v42 = vld [vmem:[%s4411_s28 + $0x178] sm:$0xff]   ;;  %v4308_v43 = vld [vmem:[%s4411_s28 + $0x180] sm:$0xff]  }
  0x1e   : > { %4077 = vmatpush3.bf16.msra.mxu0 %v4256_v5  ;;  %4224 = vmatpush3.bf16.msra.mxu1 %v4256_v5  ;;  %v4279_v44 = vld [vmem:[%s4411_s28 + $0x98] sm:$0xff]   ;;  %v4280_v45 = vld [vmem:[%s4411_s28 + $0xa0] sm:$0xff]   ;;  %v4309_v46 = vld [vmem:[%s4411_s28 + $0x188] sm:$0xff]  }
  0x1f   : > { %4078 = vmatprep.subr.bf16.mxu0 %v4257_v6  ;;  %4217 = vmatprep.subr.bf16.mxu1 %v4257_v6  ;;  %v4310_v47 = vld [vmem:[%s4411_s28 + $0x190] sm:$0xff]   ;;  %v4281_v48 = vld [vmem:[%s4411_s28 + $0xa8] sm:$0xff]   ;;  %v4311_v50 = vld [vmem:[%s4411_s28 + $0x198] sm:$0xff]  }
  0x20   : > { %v4282_v49 = vld [vmem:[%s4411_s28 + $0xb0] sm:$0xff]   ;;  %v4312_v51 = vld [vmem:[%s4411_s28 + $0x1a0] sm:$0xff]   ;;  %v4283_v52 = vld [vmem:[%s4411_s28 + $0xb8] sm:$0xff]  }
  0x21   : > { %v4284_v53 = vld [vmem:[%s4411_s28 + $0xc0] sm:$0xff]   ;;  %v4313_v54 = vld [vmem:[%s4411_s28 + $0x1a8] sm:$0xff]   ;;  %v4314_v55 = vld [vmem:[%s4411_s28 + $0x1b0] sm:$0xff]  }
  0x22   : > { %4079 = vmatpush3.bf16.msra.mxu0 %v4257_v6  ;;  %4225 = vmatpush3.bf16.msra.mxu1 %v4257_v6  ;;  %v4285_v56 = vld [vmem:[%s4411_s28 + $0xc8] sm:$0xff]   ;;  %v4286_v57 = vld [vmem:[%s4411_s28 + $0xd0] sm:$0xff]   ;;  %v4315_v58 = vld [vmem:[%s4411_s28 + $0x1b8] sm:$0xff]  }
  0x23   : > { %4080 = vmatprep.subr.bf16.mxu0 %v4258_v7  ;;  %4218 = vmatprep.subr.bf16.mxu1 %v4258_v7  ;;  %v4316_v59 = vld [vmem:[%s4411_s28 + $0x1c0] sm:$0xff]   ;;  %v4287_v60 = vld [vmem:[%s4411_s28 + $0xd8] sm:$0xff]   ;;  %v4317_v62 = vld [vmem:[%s4411_s28 + $0x1c8] sm:$0xff]  }
  0x24   : > { %v4288_v61 = vld [vmem:[%s4411_s28 + $0xe0] sm:$0xff]   ;;  %v4318_v63 = vld [vmem:[%s4411_s28 + $0x1d0] sm:$0xff]   ;;  %v4289_v0 = vld [vmem:[%s4411_s28 + $0xe8] sm:$0xff]  }
  0x25   : > { %v4290_v1 = vld [vmem:[%s4411_s28 + $0xf0] sm:$0xff]   ;;  %v4319_v2 = vld [vmem:[%s4411_s28 + $0x1d8] sm:$0xff]   ;;  %v4320_v3 = vld [vmem:[%s4411_s28 + $0x1e0] sm:$0xff]  }
  0x26   : > { %4081 = vmatpush3.bf16.msra.mxu0 %v4258_v7  ;;  %4226 = vmatpush3.bf16.msra.mxu1 %v4258_v7  ;;  %v4291_v4 = vld [vmem:[%s4411_s28 + $0xf8] sm:$0xff]   ;;  %v4321_v5 = vld [vmem:[%s4411_s28 + $0x1e8] sm:$0xff]   ;;  %v4322_v6 = vld [vmem:[%s4411_s28 + $0x1f0] sm:$0xff]  }
  0x27   : > { %4082 = vmatprep.subr.bf16.mxu0 %v4259_v8  ;;  %4219 = vmatprep.subr.bf16.mxu1 %v4259_v8  ;;  %v4323_v7 = vld [vmem:[%s4411_s28 + $0x1f8] sm:$0xff]  }
  0x2a   : > { %4083 = vmatpush3.bf16.msra.mxu0 %v4259_v8  ;;  %4227 = vmatpush3.bf16.msra.mxu1 %v4259_v8 }
  0x2d   : > { %4085 = vmatmul.mubr.bf16.vlgmr.msra.gmra.mxu0 %v4261_v9  ;;  %4149 = vmatmul.mubr.bf16.vlgmr.msra.gmra.mxu1 %v4293_v14 }
  0x2e   : > { %4088 = vmatprep.mubr.bf16.mxu0 %v4262_v10  ;;  %4152 = vmatprep.mubr.bf16.mxu1 %v4294_v15 }
  0x35   : > { %4089 = vmatmul.mubr.bf16.gmra.mxu0 %v4263_v11  ;;  %4153 = vmatmul.mubr.bf16.gmra.mxu1 %v4295_v18 }
  0x36   : > { %4092 = vmatprep.mubr.bf16.mxu0 %v4264_v12  ;;  %4156 = vmatprep.mubr.bf16.mxu1 %v4296_v19 }
  0x3d   : > { %4093 = vmatmul.mubr.bf16.gmra.mxu0 %v4265_v16  ;;  %4157 = vmatmul.mubr.bf16.gmra.mxu1 %v4297_v22 }
  0x3e   : > { %4096 = vmatprep.mubr.bf16.mxu0 %v4266_v17  ;;  %4160 = vmatprep.mubr.bf16.mxu1 %v4298_v23 }
  0x45   : > { %4097 = vmatmul.mubr.bf16.gmra.mxu0 %v4267_v20  ;;  %4161 = vmatmul.mubr.bf16.gmra.mxu1 %v4299_v26 }
  0x46   : > { %4100 = vmatprep.mubr.bf16.mxu0 %v4268_v21  ;;  %4164 = vmatprep.mubr.bf16.mxu1 %v4300_v27 }
  0x4d   : > { %4101 = vmatmul.mubr.bf16.gmra.mxu0 %v4269_v24  ;;  %4165 = vmatmul.mubr.bf16.gmra.mxu1 %v4301_v30 }
  0x4e   : > { %4104 = vmatprep.mubr.bf16.mxu0 %v4270_v25  ;;  %4168 = vmatprep.mubr.bf16.mxu1 %v4302_v31 }
  0x55   : > { %4105 = vmatmul.mubr.bf16.gmra.mxu0 %v4271_v28  ;;  %4169 = vmatmul.mubr.bf16.gmra.mxu1 %v4303_v34 }
  0x56   : > { %4108 = vmatprep.mubr.bf16.mxu0 %v4272_v29  ;;  %4172 = vmatprep.mubr.bf16.mxu1 %v4304_v35 }
  0x5d   : > { %4109 = vmatmul.mubr.bf16.gmra.mxu0 %v4273_v32  ;;  %4173 = vmatmul.mubr.bf16.gmra.mxu1 %v4305_v38 }
  0x5e   : > { %4112 = vmatprep.mubr.bf16.mxu0 %v4274_v33  ;;  %4176 = vmatprep.mubr.bf16.mxu1 %v4306_v39 }
  0x65   : > { %4113 = vmatmul.mubr.bf16.gmra.mxu0 %v4275_v36  ;;  %4177 = vmatmul.mubr.bf16.gmra.mxu1 %v4307_v42 }
  0x66   : > { %4116 = vmatprep.mubr.bf16.mxu0 %v4276_v37  ;;  %4180 = vmatprep.mubr.bf16.mxu1 %v4308_v43 }
  0x6d   : > { %4117 = vmatmul.mubr.bf16.gmra.mxu0 %v4277_v40  ;;  %4181 = vmatmul.mubr.bf16.gmra.mxu1 %v4309_v46 }
  0x6e   : > { %4120 = vmatprep.mubr.bf16.mxu0 %v4278_v41  ;;  %4184 = vmatprep.mubr.bf16.mxu1 %v4310_v47 }
  0x75   : > { %4121 = vmatmul.mubr.bf16.gmra.mxu0 %v4279_v44  ;;  %4185 = vmatmul.mubr.bf16.gmra.mxu1 %v4311_v50 }
  0x76   : > { %4124 = vmatprep.mubr.bf16.mxu0 %v4280_v45  ;;  %4188 = vmatprep.mubr.bf16.mxu1 %v4312_v51 }
  0x7d   : > { %4125 = vmatmul.mubr.bf16.gmra.mxu0 %v4281_v48  ;;  %4189 = vmatmul.mubr.bf16.gmra.mxu1 %v4313_v54 }
  0x7e   : > { %4128 = vmatprep.mubr.bf16.mxu0 %v4282_v49  ;;  %4192 = vmatprep.mubr.bf16.mxu1 %v4314_v55 }
  0x85   : > { %4129 = vmatmul.mubr.bf16.gmra.mxu0 %v4283_v52  ;;  %4193 = vmatmul.mubr.bf16.gmra.mxu1 %v4315_v58 }
  0x86   : > { %4132 = vmatprep.mubr.bf16.mxu0 %v4284_v53  ;;  %4196 = vmatprep.mubr.bf16.mxu1 %v4316_v59 }
  0x8d   : > { %4133 = vmatmul.mubr.bf16.gmra.mxu0 %v4285_v56  ;;  %4197 = vmatmul.mubr.bf16.gmra.mxu1 %v4317_v62 }
  0x8e   : > { %4136 = vmatprep.mubr.bf16.mxu0 %v4286_v57  ;;  %4200 = vmatprep.mubr.bf16.mxu1 %v4318_v63 }
  0x95   : > { %4137 = vmatmul.mubr.bf16.gmra.mxu0 %v4287_v60  ;;  %4201 = vmatmul.mubr.bf16.gmra.mxu1 %v4319_v2 }
  0x96   : > { %4140 = vmatprep.mubr.bf16.mxu0 %v4288_v61  ;;  %4204 = vmatprep.mubr.bf16.mxu1 %v4320_v3 }
  0x9d   : > { %4141 = vmatmul.mubr.bf16.gmra.mxu0 %v4289_v0  ;;  %4205 = vmatmul.mubr.bf16.gmra.mxu1 %v4321_v5 }
  0x9e   : > { %4144 = vmatprep.mubr.bf16.mxu0 %v4290_v1  ;;  %4208 = vmatprep.mubr.bf16.mxu1 %v4322_v6 }
  0xa5   : > { %4145 = vmatmul.mubr.bf16.gmra.mxu0 %v4291_v4  ;;  %4209 = vmatmul.mubr.bf16.gmra.mxu1 %v4323_v7 }
  0xed   : > { %v4086_v8 = vpop.f32.mrf.mxu0  ;;  %v4501_v21 = vpop.f32.mrf.mxu1 }
  0xee   : > { %v2212_v18 = vmul.f32 %v4086_v8, %v4086_v8 }
  0xef   : > { %v1179_v9 = vpop.f32.mrf.mxu0  ;;  %v4503_v26 = vpop.f32.mrf.mxu1 }
  0xf0   : > { %v2210_v13 = vmul.f32 %v1179_v9, %v1179_v9 }
  0xf1   : > { %v4087_v10 = vpop.f32.mrf.mxu0  ;;  %v4505_v32 = vpop.f32.mrf.mxu1 }
  0xf2   : > { %v3621_v11 = vpack.c.bf16 %v4087_v10, %v4086_v8  ;;  %v2213_v23 = vmul.f32 %v4087_v10, %v4087_v10  ;;  %v3781_v34 = vpack.c.bf16 %v4505_v32, %v4501_v21 }
  0xf3   : > { %v1182_v12 = vpop.f32.mrf.mxu0  ;;  %v4510_v39 = vpop.f32.mrf.mxu1 }
  0xf4   : > { %3933 = vst [vmem:[%s4497_s18 + $0x8] sm:$0xff] %v3621_v11   ;;  %v2077_v14 = vadd.f32 %v1182_v12, %v1179_v9  ;;  %v2211_v15 = vmul.f32 %v1182_v12, %v1182_v12  ;;  %v3616_v16 = vpack.c.bf16 %v1182_v12, %v1179_v9  ;;  %3965 = vst [vmem:[%s4497_s18 + $0x108] sm:$0xff] %v3781_v34  }
  0xf5   : > { %v4090_v17 = vpop.f32.mrf.mxu0  ;;  %v3776_v41 = vpack.c.bf16 %v4510_v39, %v4503_v26  ;;  %v4516_v45 = vpop.f32.mrf.mxu1 }
  0xf6   : > { %v2078_v19 = vadd.f32 %v4086_v8, %v2077_v14  ;;  %v2338_v20 = vadd.f32 %v2211_v15, %v2210_v13  ;;  %3617 = vst [vmem:[%s4497_s18] sm:$0xff] %v3616_v16   ;;  %v2216_v42 = vmul.f32 %v4090_v17, %v4090_v17 }
  0xf7   : > { %v1195_v22 = vpop.f32.mrf.mxu0  ;;  %3964 = vst [vmem:[%s4497_s18 + $0x100] sm:$0xff] %v3776_v41   ;;  %v4519_v50 = vpop.f32.mrf.mxu1 }
  0xf8   : > { %v2339_v24 = vadd.f32 %v2338_v20, %v2212_v18  ;;  %v2079_v25 = vadd.f32 %v4087_v10, %v2078_v19  ;;  %v2214_v29 = vmul.f32 %v1195_v22, %v1195_v22 }
  0xf9   : > { %v4091_v27 = vpop.f32.mrf.mxu0  ;;  %v4521_v56 = vpop.f32.mrf.mxu1 }
  0xfa   : > { %v2080_v28 = vadd.f32 %v2079_v25, %v1195_v22  ;;  %v2340_v30 = vadd.f32 %v2339_v24, %v2213_v23  ;;  %v3631_v31 = vpack.c.bf16 %v4091_v27, %v4090_v17  ;;  %v2217_v47 = vmul.f32 %v4091_v27, %v4091_v27 }
  0xfb   : > { %v1198_v33 = vpop.f32.mrf.mxu0  ;;  %v3791_v58 = vpack.c.bf16 %v4521_v56, %v4516_v45  ;;  %v4526_v63 = vpop.f32.mrf.mxu1 }
  0xfc   : > { %v2341_v35 = vadd.f32 %v2340_v30, %v2214_v29  ;;  %3935 = vst [vmem:[%s4497_s18 + $0x18] sm:$0xff] %v3631_v31   ;;  %v2081_v36 = vadd.f32 %v2080_v28, %v1198_v33  ;;  %v2215_v37 = vmul.f32 %v1198_v33, %v1198_v33  ;;  %v3626_v38 = vpack.c.bf16 %v1198_v33, %v1195_v22 }
  0xfd   : > { %v4094_v40 = vpop.f32.mrf.mxu0  ;;  %3967 = vst [vmem:[%s4497_s18 + $0x118] sm:$0xff] %v3791_v58   ;;  %v3786_v1 = vpack.c.bf16 %v4526_v63, %v4519_v50  ;;  %v4532_v5 = vpop.f32.mrf.mxu1 }
  0xfe   : > { %v2082_v43 = vadd.f32 %v4090_v17, %v2081_v36  ;;  %v2342_v44 = vadd.f32 %v2341_v35, %v2215_v37  ;;  %3934 = vst [vmem:[%s4497_s18 + $0x10] sm:$0xff] %v3626_v38   ;;  %v2220_v2 = vmul.f32 %v4094_v40, %v4094_v40 }
  0xff   : > { %v1211_v46 = vpop.f32.mrf.mxu0  ;;  %3966 = vst [vmem:[%s4497_s18 + $0x110] sm:$0xff] %v3786_v1   ;;  %v4535_v10 = vpop.f32.mrf.mxu1 }
 0x100   : > { %v2343_v48 = vadd.f32 %v2342_v44, %v2216_v42  ;;  %v2083_v49 = vadd.f32 %v4091_v27, %v2082_v43  ;;  %v2218_v53 = vmul.f32 %v1211_v46, %v1211_v46 }
 0x101   : > { %v4095_v51 = vpop.f32.mrf.mxu0  ;;  %v4537_v16 = vpop.f32.mrf.mxu1 }
 0x102   : > { %v2084_v52 = vadd.f32 %v2083_v49, %v1211_v46  ;;  %v2344_v54 = vadd.f32 %v2343_v48, %v2217_v47  ;;  %v3641_v55 = vpack.c.bf16 %v4095_v51, %v4094_v40  ;;  %v2221_v7 = vmul.f32 %v4095_v51, %v4095_v51 }
 0x103   : > { %v1214_v57 = vpop.f32.mrf.mxu0  ;;  %v3801_v18 = vpack.c.bf16 %v4537_v16, %v4532_v5  ;;  %v4542_v24 = vpop.f32.mrf.mxu1 }
 0x104   : > { %v2345_v59 = vadd.f32 %v2344_v54, %v2218_v53  ;;  %3937 = vst [vmem:[%s4497_s18 + $0x28] sm:$0xff] %v3641_v55   ;;  %v2085_v60 = vadd.f32 %v2084_v52, %v1214_v57  ;;  %v2219_v61 = vmul.f32 %v1214_v57, %v1214_v57  ;;  %v3636_v62 = vpack.c.bf16 %v1214_v57, %v1211_v46 }
 0x105   : > { %v4098_v0 = vpop.f32.mrf.mxu0  ;;  %3969 = vst [vmem:[%s4497_s18 + $0x128] sm:$0xff] %v3801_v18   ;;  %v3796_v27 = vpack.c.bf16 %v4542_v24, %v4535_v10  ;;  %v4548_v31 = vpop.f32.mrf.mxu1 }
 0x106   : > { %v2086_v3 = vadd.f32 %v4094_v40, %v2085_v60  ;;  %v2346_v4 = vadd.f32 %v2345_v59, %v2219_v61  ;;  %3936 = vst [vmem:[%s4497_s18 + $0x20] sm:$0xff] %v3636_v62   ;;  %v2224_v28 = vmul.f32 %v4098_v0, %v4098_v0 }
 0x107   : > { %v1227_v6 = vpop.f32.mrf.mxu0  ;;  %3968 = vst [vmem:[%s4497_s18 + $0x120] sm:$0xff] %v3796_v27   ;;  %v4551_v37 = vpop.f32.mrf.mxu1 }
 0x108   : > { %v2347_v8 = vadd.f32 %v2346_v4, %v2220_v2  ;;  %v2087_v9 = vadd.f32 %v4095_v51, %v2086_v3  ;;  %v2222_v13 = vmul.f32 %v1227_v6, %v1227_v6 }
 0x109   : > { %v4099_v11 = vpop.f32.mrf.mxu0  ;;  %v4553_v44 = vpop.f32.mrf.mxu1 }
 0x10a   : > { %v2088_v12 = vadd.f32 %v2087_v9, %v1227_v6  ;;  %v2348_v14 = vadd.f32 %v2347_v8, %v2221_v7  ;;  %v3651_v15 = vpack.c.bf16 %v4099_v11, %v4098_v0  ;;  %v2225_v34 = vmul.f32 %v4099_v11, %v4099_v11 }
 0x10b   : > { %v1230_v17 = vpop.f32.mrf.mxu0  ;;  %v3811_v47 = vpack.c.bf16 %v4553_v44, %v4548_v31  ;;  %v4558_v53 = vpop.f32.mrf.mxu1 }
 0x10c   : > { %v2349_v19 = vadd.f32 %v2348_v14, %v2222_v13  ;;  %3939 = vst [vmem:[%s4497_s18 + $0x38] sm:$0xff] %v3651_v15   ;;  %v2089_v20 = vadd.f32 %v2088_v12, %v1230_v17  ;;  %v2223_v22 = vmul.f32 %v1230_v17, %v1230_v17  ;;  %v3646_v23 = vpack.c.bf16 %v1230_v17, %v1227_v6 }
 0x10d   : > { %v4102_v25 = vpop.f32.mrf.mxu0  ;;  %3971 = vst [vmem:[%s4497_s18 + $0x138] sm:$0xff] %v3811_v47   ;;  %v3806_v55 = vpack.c.bf16 %v4558_v53, %v4551_v37  ;;  %v4564_v60 = vpop.f32.mrf.mxu1 }
 0x10e   : > { %v2090_v29 = vadd.f32 %v4098_v0, %v2089_v20  ;;  %v2350_v30 = vadd.f32 %v2349_v19, %v2223_v22  ;;  %3938 = vst [vmem:[%s4497_s18 + $0x30] sm:$0xff] %v3646_v23   ;;  %v2228_v57 = vmul.f32 %v4102_v25, %v4102_v25 }
 0x10f   : > { %v1243_v33 = vpop.f32.mrf.mxu0  ;;  %3970 = vst [vmem:[%s4497_s18 + $0x130] sm:$0xff] %v3806_v55   ;;  %v4567_v2 = vpop.f32.mrf.mxu1 }
 0x110   : > { %v2351_v35 = vadd.f32 %v2350_v30, %v2224_v28  ;;  %v2091_v36 = vadd.f32 %v4099_v11, %v2090_v29  ;;  %v2226_v41 = vmul.f32 %v1243_v33, %v1243_v33 }
 0x111   : > { %v4103_v38 = vpop.f32.mrf.mxu0  ;;  %v4569_v9 = vpop.f32.mrf.mxu1 }
 0x112   : > { %v2092_v40 = vadd.f32 %v2091_v36, %v1243_v33  ;;  %v2352_v42 = vadd.f32 %v2351_v35, %v2225_v34  ;;  %v3661_v43 = vpack.c.bf16 %v4103_v38, %v4102_v25  ;;  %v2229_v62 = vmul.f32 %v4103_v38, %v4103_v38 }
 0x113   : > { %v1246_v46 = vpop.f32.mrf.mxu0  ;;  %v3821_v12 = vpack.c.bf16 %v4569_v9, %v4564_v60  ;;  %v4574_v18 = vpop.f32.mrf.mxu1 }
 0x114   : > { %v2353_v48 = vadd.f32 %v2352_v42, %v2226_v41  ;;  %3941 = vst [vmem:[%s4497_s18 + $0x48] sm:$0xff] %v3661_v43   ;;  %v2093_v49 = vadd.f32 %v2092_v40, %v1246_v46  ;;  %v2227_v51 = vmul.f32 %v1246_v46, %v1246_v46  ;;  %v3656_v52 = vpack.c.bf16 %v1246_v46, %v1243_v33 }
 0x115   : > { %v4106_v54 = vpop.f32.mrf.mxu0  ;;  %3973 = vst [vmem:[%s4497_s18 + $0x148] sm:$0xff] %v3821_v12   ;;  %v3816_v20 = vpack.c.bf16 %v4574_v18, %v4567_v2  ;;  %v4580_v27 = vpop.f32.mrf.mxu1 }
 0x116   : > { %v2094_v58 = vadd.f32 %v4102_v25, %v2093_v49  ;;  %v2354_v59 = vadd.f32 %v2353_v48, %v2227_v51  ;;  %3940 = vst [vmem:[%s4497_s18 + $0x40] sm:$0xff] %v3656_v52   ;;  %v2232_v22 = vmul.f32 %v4106_v54, %v4106_v54 }
 0x117   : > { %v1259_v61 = vpop.f32.mrf.mxu0  ;;  %3972 = vst [vmem:[%s4497_s18 + $0x140] sm:$0xff] %v3816_v20   ;;  %v4583_v34 = vpop.f32.mrf.mxu1 }
 0x118   : > { %v2355_v0 = vadd.f32 %v2354_v59, %v2228_v57  ;;  %v2095_v1 = vadd.f32 %v4103_v38, %v2094_v58  ;;  %v2230_v6 = vmul.f32 %v1259_v61, %v1259_v61 }
 0x119   : > { %v4107_v3 = vpop.f32.mrf.mxu0  ;;  %v4585_v42 = vpop.f32.mrf.mxu1 }
 0x11a   : > { %v2096_v4 = vadd.f32 %v2095_v1, %v1259_v61  ;;  %v2356_v7 = vadd.f32 %v2355_v0, %v2229_v62  ;;  %v3671_v8 = vpack.c.bf16 %v4107_v3, %v4106_v54  ;;  %v2233_v29 = vmul.f32 %v4107_v3, %v4107_v3 }
 0x11b   : > { %v1262_v11 = vpop.f32.mrf.mxu0  ;;  %v3831_v46 = vpack.c.bf16 %v4585_v42, %v4580_v27  ;;  %v4590_v52 = vpop.f32.mrf.mxu1 }
 0x11c   : > { %v2357_v13 = vadd.f32 %v2356_v7, %v2230_v6  ;;  %3943 = vst [vmem:[%s4497_s18 + $0x58] sm:$0xff] %v3671_v8   ;;  %v2097_v14 = vadd.f32 %v2096_v4, %v1262_v11  ;;  %v2231_v15 = vmul.f32 %v1262_v11, %v1262_v11  ;;  %v3666_v17 = vpack.c.bf16 %v1262_v11, %v1259_v61 }
 0x11d   : > { %v4110_v19 = vpop.f32.mrf.mxu0  ;;  %3975 = vst [vmem:[%s4497_s18 + $0x158] sm:$0xff] %v3831_v46   ;;  %v3826_v55 = vpack.c.bf16 %v4590_v52, %v4583_v34  ;;  %v4596_v61 = vpop.f32.mrf.mxu1 }
 0x11e   : > { %v2098_v23 = vadd.f32 %v4106_v54, %v2097_v14  ;;  %v2358_v25 = vadd.f32 %v2357_v13, %v2231_v15  ;;  %3942 = vst [vmem:[%s4497_s18 + $0x50] sm:$0xff] %v3666_v17   ;;  %v2236_v57 = vmul.f32 %v4110_v19, %v4110_v19 }
 0x11f   : > { %v1275_v28 = vpop.f32.mrf.mxu0  ;;  %3974 = vst [vmem:[%s4497_s18 + $0x150] sm:$0xff] %v3826_v55   ;;  %v4599_v4 = vpop.f32.mrf.mxu1 }
 0x120   : > { %v2359_v30 = vadd.f32 %v2358_v25, %v2232_v22  ;;  %v2099_v33 = vadd.f32 %v4107_v3, %v2098_v23  ;;  %v2234_v38 = vmul.f32 %v1275_v28, %v1275_v28 }
 0x121   : > { %v4111_v35 = vpop.f32.mrf.mxu0  ;;  %v4601_v13 = vpop.f32.mrf.mxu1 }
 0x122   : > { %v2100_v36 = vadd.f32 %v2099_v33, %v1275_v28  ;;  %v2360_v40 = vadd.f32 %v2359_v30, %v2233_v29  ;;  %v3681_v41 = vpack.c.bf16 %v4111_v35, %v4110_v19  ;;  %v2237_v0 = vmul.f32 %v4111_v35, %v4111_v35 }
 0x123   : > { %v1278_v43 = vpop.f32.mrf.mxu0  ;;  %v3841_v15 = vpack.c.bf16 %v4601_v13, %v4596_v61  ;;  %v4606_v23 = vpop.f32.mrf.mxu1 }
 0x124   : > { %v2361_v47 = vadd.f32 %v2360_v40, %v2234_v38  ;;  %3945 = vst [vmem:[%s4497_s18 + $0x68] sm:$0xff] %v3681_v41   ;;  %v2101_v48 = vadd.f32 %v2100_v36, %v1278_v43  ;;  %v2235_v49 = vmul.f32 %v1278_v43, %v1278_v43  ;;  %v3676_v51 = vpack.c.bf16 %v1278_v43, %v1275_v28 }
 0x125   : > { %v4114_v54 = vpop.f32.mrf.mxu0  ;;  %3977 = vst [vmem:[%s4497_s18 + $0x168] sm:$0xff] %v3841_v15   ;;  %v3836_v28 = vpack.c.bf16 %v4606_v23, %v4599_v4 }
 0x126   : > { %v2102_v58 = vadd.f32 %v4110_v19, %v2101_v48  ;;  %v2362_v59 = vadd.f32 %v2361_v47, %v2235_v49  ;;  %3944 = vst [vmem:[%s4497_s18 + $0x60] sm:$0xff] %v3676_v51   ;;  %v2240_v29 = vmul.f32 %v4114_v54, %v4114_v54 }
 0x127   : > { %v1291_v62 = vpop.f32.mrf.mxu0  ;;  %3976 = vst [vmem:[%s4497_s18 + $0x160] sm:$0xff] %v3836_v28  }
 0x128   : > { %v2363_v1 = vadd.f32 %v2362_v59, %v2236_v57  ;;  %v2103_v3 = vadd.f32 %v4111_v35, %v2102_v58  ;;  %v2238_v8 = vmul.f32 %v1291_v62, %v1291_v62  ;;  %v4612_v35 = vpop.f32.mrf.mxu1 }
 0x129   : > { %v4115_v6 = vpop.f32.mrf.mxu0 }
 0x12a   : > { %v2104_v7 = vadd.f32 %v2103_v3, %v1291_v62  ;;  %v2364_v11 = vadd.f32 %v2363_v1, %v2237_v0  ;;  %v3691_v12 = vpack.c.bf16 %v4115_v6, %v4114_v54  ;;  %v2241_v38 = vmul.f32 %v4115_v6, %v4115_v6  ;;  %v4615_v43 = vpop.f32.mrf.mxu1 }
 0x12b   : > { %v1294_v14 = vpop.f32.mrf.mxu0 }
 0x12c   : > { %v2365_v17 = vadd.f32 %v2364_v11, %v2238_v8  ;;  %3947 = vst [vmem:[%s4497_s18 + $0x78] sm:$0xff] %v3691_v12   ;;  %v2105_v19 = vadd.f32 %v2104_v7, %v1294_v14  ;;  %v2239_v20 = vmul.f32 %v1294_v14, %v1294_v14  ;;  %v3686_v22 = vpack.c.bf16 %v1294_v14, %v1291_v62 }
 0x12d   : > { %v4118_v25 = vpop.f32.mrf.mxu0 }
 0x12e   : > { %v2106_v30 = vadd.f32 %v4114_v54, %v2105_v19  ;;  %v2366_v33 = vadd.f32 %v2365_v17, %v2239_v20  ;;  %3946 = vst [vmem:[%s4497_s18 + $0x70] sm:$0xff] %v3686_v22   ;;  %v4617_v54 = vpop.f32.mrf.mxu1  ;;  %v2244_v7 = vmul.f32 %v4118_v25, %v4118_v25 }
 0x12f   : > { %v1307_v36 = vpop.f32.mrf.mxu0  ;;  %v3851_v57 = vpack.c.bf16 %v4617_v54, %v4612_v35 }
 0x130   : > { %v2367_v40 = vadd.f32 %v2366_v33, %v2240_v29  ;;  %v2107_v41 = vadd.f32 %v4115_v6, %v2106_v30  ;;  %v2242_v48 = vmul.f32 %v1307_v36, %v1307_v36  ;;  %v4622_v1 = vpop.f32.mrf.mxu1 }
 0x131   : > { %v4119_v46 = vpop.f32.mrf.mxu0  ;;  %3979 = vst [vmem:[%s4497_s18 + $0x178] sm:$0xff] %v3851_v57   ;;  %v3846_v6 = vpack.c.bf16 %v4622_v1, %v4615_v43 }
 0x132   : > { %v2108_v47 = vadd.f32 %v2107_v41, %v1307_v36  ;;  %v2368_v49 = vadd.f32 %v2367_v40, %v2241_v38  ;;  %v3701_v51 = vpack.c.bf16 %v4119_v46, %v4118_v25  ;;  %v4628_v12 = vpop.f32.mrf.mxu1  ;;  %v2245_v15 = vmul.f32 %v4119_v46, %v4119_v46 }
 0x133   : > { %v1310_v55 = vpop.f32.mrf.mxu0  ;;  %3978 = vst [vmem:[%s4497_s18 + $0x170] sm:$0xff] %v3846_v6  }
 0x134   : > { %v2369_v58 = vadd.f32 %v2368_v49, %v2242_v48  ;;  %3949 = vst [vmem:[%s4497_s18 + $0x88] sm:$0xff] %v3701_v51   ;;  %v2109_v59 = vadd.f32 %v2108_v47, %v1310_v55  ;;  %v2243_v62 = vmul.f32 %v1310_v55, %v1310_v55  ;;  %v3696_v0 = vpack.c.bf16 %v1310_v55, %v1307_v36  ;;  %v4631_v20 = vpop.f32.mrf.mxu1 }
 0x135   : > { %v4122_v3 = vpop.f32.mrf.mxu0 }
 0x136   : > { %v2110_v8 = vadd.f32 %v4118_v25, %v2109_v59  ;;  %v2370_v11 = vadd.f32 %v2369_v58, %v2243_v62  ;;  %3948 = vst [vmem:[%s4497_s18 + $0x80] sm:$0xff] %v3696_v0   ;;  %v4633_v25 = vpop.f32.mrf.mxu1  ;;  %v2248_v55 = vmul.f32 %v4122_v3, %v4122_v3 }
 0x137   : > { %v1323_v14 = vpop.f32.mrf.mxu0  ;;  %v3861_v38 = vpack.c.bf16 %v4633_v25, %v4628_v12 }
 0x138   : > { %v2371_v17 = vadd.f32 %v2370_v11, %v2244_v7  ;;  %v2111_v19 = vadd.f32 %v4119_v46, %v2110_v8  ;;  %v2246_v29 = vmul.f32 %v1323_v14, %v1323_v14  ;;  %v4638_v48 = vpop.f32.mrf.mxu1 }
 0x139   : > { %v4123_v22 = vpop.f32.mrf.mxu0  ;;  %3981 = vst [vmem:[%s4497_s18 + $0x188] sm:$0xff] %v3861_v38   ;;  %v3856_v51 = vpack.c.bf16 %v4638_v48, %v4631_v20 }
 0x13a   : > { %v2112_v28 = vadd.f32 %v2111_v19, %v1323_v14  ;;  %v2372_v30 = vadd.f32 %v2371_v17, %v2245_v15  ;;  %v3711_v33 = vpack.c.bf16 %v4123_v22, %v4122_v3  ;;  %v4644_v59 = vpop.f32.mrf.mxu1  ;;  %v2249_v0 = vmul.f32 %v4123_v22, %v4123_v22 }
 0x13b   : > { %v1326_v36 = vpop.f32.mrf.mxu0  ;;  %3980 = vst [vmem:[%s4497_s18 + $0x180] sm:$0xff] %v3856_v51  }
 0x13c   : > { %v2373_v40 = vadd.f32 %v2372_v30, %v2246_v29  ;;  %3951 = vst [vmem:[%s4497_s18 + $0x98] sm:$0xff] %v3711_v33   ;;  %v2113_v41 = vadd.f32 %v2112_v28, %v1326_v36  ;;  %v2247_v46 = vmul.f32 %v1326_v36, %v1326_v36  ;;  %v3706_v47 = vpack.c.bf16 %v1326_v36, %v1323_v14  ;;  %v4647_v8 = vpop.f32.mrf.mxu1 }
 0x13d   : > { %v4126_v49 = vpop.f32.mrf.mxu0 }
 0x13e   : > { %v2114_v57 = vadd.f32 %v4122_v3, %v2113_v41  ;;  %v2374_v58 = vadd.f32 %v2373_v40, %v2247_v46  ;;  %3950 = vst [vmem:[%s4497_s18 + $0x90] sm:$0xff] %v3706_v47   ;;  %v4649_v3 = vpop.f32.mrf.mxu1  ;;  %v2252_v46 = vmul.f32 %v4126_v49, %v4126_v49 }
 0x13f   : > { %v1339_v62 = vpop.f32.mrf.mxu0  ;;  %v3871_v29 = vpack.c.bf16 %v4649_v3, %v4644_v59 }
 0x140   : > { %v2375_v6 = vadd.f32 %v2374_v58, %v2248_v55  ;;  %v2115_v7 = vadd.f32 %v4123_v22, %v2114_v57  ;;  %v2250_v15 = vmul.f32 %v1339_v62, %v1339_v62  ;;  %v4654_v38 = vpop.f32.mrf.mxu1 }
 0x141   : > { %v4127_v11 = vpop.f32.mrf.mxu0  ;;  %3983 = vst [vmem:[%s4497_s18 + $0x198] sm:$0xff] %v3871_v29   ;;  %v3866_v41 = vpack.c.bf16 %v4654_v38, %v4647_v8 }
 0x142   : > { %v2116_v14 = vadd.f32 %v2115_v7, %v1339_v62  ;;  %v2376_v17 = vadd.f32 %v2375_v6, %v2249_v0  ;;  %v3721_v19 = vpack.c.bf16 %v4127_v11, %v4126_v49  ;;  %v4660_v55 = vpop.f32.mrf.mxu1  ;;  %v2253_v58 = vmul.f32 %v4127_v11, %v4127_v11 }
 0x143   : > { %v1342_v28 = vpop.f32.mrf.mxu0  ;;  %4996 = vst [vmem:[#allocation3_spill] sm:$0xff] %v4660_v55  ;;  %3982 = vst [vmem:[%s4497_s18 + $0x190] sm:$0xff] %v3866_v41  }
 0x144   : > { %v2377_v30 = vadd.f32 %v2376_v17, %v2250_v15  ;;  %3953 = vst [vmem:[%s4497_s18 + $0xa8] sm:$0xff] %v3721_v19   ;;  %v2117_v33 = vadd.f32 %v2116_v14, %v1342_v28  ;;  %v2251_v22 = vmul.f32 %v1342_v28, %v1342_v28  ;;  %v3716_v36 = vpack.c.bf16 %v1342_v28, %v1339_v62  ;;  %v4663_v62 = vpop.f32.mrf.mxu1 }
 0x145   : > { %v4130_v40 = vpop.f32.mrf.mxu0 }
 0x146   : > { %v2118_v47 = vadd.f32 %v4126_v49, %v2117_v33  ;;  %v2378_v51 = vadd.f32 %v2377_v30, %v2251_v22  ;;  %3952 = vst [vmem:[%s4497_s18 + $0xa0] sm:$0xff] %v3716_v36   ;;  %v4665_v49 = vpop.f32.mrf.mxu1 }
 0x147   : > { %v1355_v57 = vpop.f32.mrf.mxu0  ;;  %4997 = vst [vmem:[#allocation4_spill] sm:$0xff] %v4665_v49  ;;  %v3881_v29 = vpack.c.bf16 %v4665_v49, %v4660_v55 }
 0x148   : > { %v2379_v0 = vadd.f32 %v2378_v51, %v2252_v46  ;;  %v2119_v6 = vadd.f32 %v4127_v11, %v2118_v47  ;;  %v2254_v15 = vmul.f32 %v1355_v57, %v1355_v57  ;;  %v4670_v36 = vpop.f32.mrf.mxu1  ;;  %v2256_v47 = vmul.f32 %v4130_v40, %v4130_v40 }
 0x149   : > { %v4131_v7 = vpop.f32.mrf.mxu0  ;;  %4998 = vst [vmem:[#allocation5_spill] sm:$0xff] %v4670_v36  ;;  %3985 = vst [vmem:[%s4497_s18 + $0x1a8] sm:$0xff] %v3881_v29   ;;  %v3876_v46 = vpack.c.bf16 %v4670_v36, %v4663_v62 }
 0x14a   : > { %v2120_v14 = vadd.f32 %v2119_v6, %v1355_v57  ;;  %v2380_v17 = vadd.f32 %v2379_v0, %v2253_v58  ;;  %v3731_v19 = vpack.c.bf16 %v4131_v7, %v4130_v40  ;;  %v4676_v0 = vpop.f32.mrf.mxu1 }
 0x14b   : > { %v1358_v28 = vpop.f32.mrf.mxu0  ;;  %4999 = vst [vmem:[#allocation6_spill] sm:$0xff] %v4676_v0  ;;  %3984 = vst [vmem:[%s4497_s18 + $0x1a0] sm:$0xff] %v3876_v46  }
 0x14c   : > { %v2381_v30 = vadd.f32 %v2380_v17, %v2254_v15  ;;  %3955 = vst [vmem:[%s4497_s18 + $0xb8] sm:$0xff] %v3731_v19   ;;  %v2121_v33 = vadd.f32 %v2120_v14, %v1358_v28  ;;  %v2255_v11 = vmul.f32 %v1358_v28, %v1358_v28  ;;  %v3726_v22 = vpack.c.bf16 %v1358_v28, %v1355_v57  ;;  %v4679_v57 = vpop.f32.mrf.mxu1 }
 0x14d   : > { %v4134_v41 = vpop.f32.mrf.mxu0  ;;  %v2257_v15 = vmul.f32 %v4131_v7, %v4131_v7  ;;  %5000 = vst [vmem:[#allocation7_spill] sm:$0xff] %v4679_v57 }
 0x14e   : > { %v2122_v51 = vadd.f32 %v4130_v40, %v2121_v33  ;;  %v2382_v58 = vadd.f32 %v2381_v30, %v2255_v11  ;;  %3954 = vst [vmem:[%s4497_s18 + $0xb0] sm:$0xff] %v3726_v22   ;;  %v4681_v40 = vpop.f32.mrf.mxu1 }
 0x14f   : > { %v1371_v6 = vpop.f32.mrf.mxu0  ;;  %5001 = vst [vmem:[#allocation8_spill] sm:$0xff] %v4681_v40  ;;  %v3891_v33 = vpack.c.bf16 %v4681_v40, %v4676_v0 }
 0x150   : > { %v2383_v14 = vadd.f32 %v2382_v58, %v2256_v47  ;;  %v2123_v17 = vadd.f32 %v4131_v7, %v2122_v51  ;;  %v2258_v29 = vmul.f32 %v1371_v6, %v1371_v6  ;;  %v4686_v47 = vpop.f32.mrf.mxu1 }
 0x151   : > { %v4135_v19 = vpop.f32.mrf.mxu0  ;;  %5002 = vst [vmem:[#allocation9_spill] sm:$0xff] %v4686_v47  ;;  %3987 = vst [vmem:[%s4497_s18 + $0x1b8] sm:$0xff] %v3891_v33   ;;  %v3886_v58 = vpack.c.bf16 %v4686_v47, %v4679_v57 }
 0x152   : > { %v2124_v28 = vadd.f32 %v2123_v17, %v1371_v6  ;;  %v2384_v49 = vadd.f32 %v2383_v14, %v2257_v15  ;;  %v3741_v55 = vpack.c.bf16 %v4135_v19, %v4134_v41  ;;  %v2260_v15 = vmul.f32 %v4134_v41, %v4134_v41  ;;  %v4692_v36 = vpop.f32.mrf.mxu1 }
 0x153   : > { %v1374_v30 = vpop.f32.mrf.mxu0  ;;  %5003 = vst [vmem:[#allocation10_spill] sm:$0xff] %v4692_v36  ;;  %3986 = vst [vmem:[%s4497_s18 + $0x1b0] sm:$0xff] %v3886_v58  }
 0x154   : > { %v2385_v11 = vadd.f32 %v2384_v49, %v2258_v29  ;;  %3957 = vst [vmem:[%s4497_s18 + $0xc8] sm:$0xff] %v3741_v55   ;;  %v2125_v22 = vadd.f32 %v2124_v28, %v1374_v30  ;;  %v2259_v7 = vmul.f32 %v1374_v30, %v1374_v30  ;;  %v3736_v46 = vpack.c.bf16 %v1374_v30, %v1371_v6  ;;  %v4695_v6 = vpop.f32.mrf.mxu1 }
 0x155   : > { %v4138_v51 = vpop.f32.mrf.mxu0  ;;  %v2261_v55 = vmul.f32 %v4135_v19, %v4135_v19  ;;  %5004 = vst [vmem:[#allocation11_spill] sm:$0xff] %v4695_v6 }
 0x156   : > { %v2126_v14 = vadd.f32 %v4134_v41, %v2125_v22  ;;  %v2386_v17 = vadd.f32 %v2385_v11, %v2259_v7  ;;  %3956 = vst [vmem:[%s4497_s18 + $0xc0] sm:$0xff] %v3736_v46   ;;  %v4697_v41 = vpop.f32.mrf.mxu1 }
 0x157   : > { %v1387_v40 = vpop.f32.mrf.mxu0  ;;  %5005 = vst [vmem:[#allocation12_spill] sm:$0xff] %v4697_v41  ;;  %v3901_v22 = vpack.c.bf16 %v4697_v41, %v4692_v36 }
 0x158   : > { %v2387_v49 = vadd.f32 %v2386_v17, %v2260_v15  ;;  %v2127_v28 = vadd.f32 %v4135_v19, %v2126_v14  ;;  %v2262_v33 = vmul.f32 %v1387_v40, %v1387_v40  ;;  %v4702_v15 = vpop.f32.mrf.mxu1 }
 0x159   : > { %v4139_v29 = vpop.f32.mrf.mxu0  ;;  %5006 = vst [vmem:[#allocation13_spill] sm:$0xff] %v4702_v15  ;;  %3989 = vst [vmem:[%s4497_s18 + $0x1c8] sm:$0xff] %v3901_v22   ;;  %v3896_v17 = vpack.c.bf16 %v4702_v15, %v4695_v6 }
 0x15a   : > { %v2128_v30 = vadd.f32 %v2127_v28, %v1387_v40  ;;  %v2388_v0 = vadd.f32 %v2387_v49, %v2261_v55  ;;  %v3751_v47 = vpack.c.bf16 %v4139_v29, %v4138_v51  ;;  %v2264_v55 = vmul.f32 %v4138_v51, %v4138_v51  ;;  %v4708_v57 = vpop.f32.mrf.mxu1 }
 0x15b   : > { %v1390_v11 = vpop.f32.mrf.mxu0  ;;  %5007 = vst [vmem:[#allocation14_spill] sm:$0xff] %v4708_v57  ;;  %3988 = vst [vmem:[%s4497_s18 + $0x1c0] sm:$0xff] %v3896_v17  }
 0x15c   : > { %v2389_v7 = vadd.f32 %v2388_v0, %v2262_v33  ;;  %3959 = vst [vmem:[%s4497_s18 + $0xd8] sm:$0xff] %v3751_v47   ;;  %v2129_v46 = vadd.f32 %v2128_v30, %v1390_v11  ;;  %v2263_v19 = vmul.f32 %v1390_v11, %v1390_v11  ;;  %v3746_v58 = vpack.c.bf16 %v1390_v11, %v1387_v40  ;;  %v4711_v40 = vpop.f32.mrf.mxu1 }
 0x15d   : > { %v4142_v14 = vpop.f32.mrf.mxu0  ;;  %v2265_v0 = vmul.f32 %v4139_v29, %v4139_v29 }
 0x15e   : > { %v2130_v49 = vadd.f32 %v4138_v51, %v2129_v46  ;;  %v2390_v28 = vadd.f32 %v2389_v7, %v2263_v19  ;;  %3958 = vst [vmem:[%s4497_s18 + $0xd0] sm:$0xff] %v3746_v58   ;;  %v4713_v51 = vpop.f32.mrf.mxu1 }
 0x15f   : > { %v1403_v41 = vpop.f32.mrf.mxu0  ;;  %5008 = vst [vmem:[#allocation15_spill] sm:$0xff] %v4713_v51  ;;  %v3911_v46 = vpack.c.bf16 %v4713_v51, %v4708_v57 }
 0x160   : > { %v2391_v47 = vadd.f32 %v2390_v28, %v2264_v55  ;;  %v2131_v30 = vadd.f32 %v4139_v29, %v2130_v49  ;;  %v2266_v22 = vmul.f32 %v1403_v41, %v1403_v41  ;;  %v4718_v55 = vpop.f32.mrf.mxu1 }
 0x161   : > { %v4143_v33 = vpop.f32.mrf.mxu0  ;;  %5009 = vst [vmem:[#allocation16_spill] sm:$0xff] %v4718_v55  ;;  %3991 = vst [vmem:[%s4497_s18 + $0x1d8] sm:$0xff] %v3911_v46   ;;  %v3906_v28 = vpack.c.bf16 %v4718_v55, %v4711_v40 }
 0x162   : > { %v2132_v11 = vadd.f32 %v2131_v30, %v1403_v41  ;;  %v2392_v36 = vadd.f32 %v2391_v47, %v2265_v0  ;;  %v3761_v15 = vpack.c.bf16 %v4143_v33, %v4142_v14  ;;  %v2268_v0 = vmul.f32 %v4142_v14, %v4142_v14  ;;  %v4724_v6 = vpop.f32.mrf.mxu1 }
 0x163   : > { %v1406_v7 = vpop.f32.mrf.mxu0  ;;  %3990 = vst [vmem:[%s4497_s18 + $0x1d0] sm:$0xff] %v3906_v28  }
 0x164   : > { %v2393_v19 = vadd.f32 %v2392_v36, %v2266_v22  ;;  %3961 = vst [vmem:[%s4497_s18 + $0xe8] sm:$0xff] %v3761_v15   ;;  %v2133_v58 = vadd.f32 %v2132_v11, %v1406_v7  ;;  %v2267_v29 = vmul.f32 %v1406_v7, %v1406_v7  ;;  %v3756_v17 = vpack.c.bf16 %v1406_v7, %v1403_v41  ;;  %v4727_v41 = vpop.f32.mrf.mxu1 }
 0x165   : > { %v4146_v49 = vpop.f32.mrf.mxu0  ;;  %v2269_v36 = vmul.f32 %v4143_v33, %v4143_v33 }
 0x166   : > { %v2134_v47 = vadd.f32 %v4142_v14, %v2133_v58  ;;  %v2394_v30 = vadd.f32 %v2393_v19, %v2267_v29  ;;  %3960 = vst [vmem:[%s4497_s18 + $0xe0] sm:$0xff] %v3756_v17   ;;  %v4729_v14 = vpop.f32.mrf.mxu1 }
 0x167   : > { %v1419_v51 = vpop.f32.mrf.mxu0  ;;  %5010 = vst [vmem:[#allocation17_spill] sm:$0xff] %v4729_v14  ;;  %v3921_v58 = vpack.c.bf16 %v4729_v14, %v4724_v6 }
 0x168   : > { %v2395_v15 = vadd.f32 %v2394_v30, %v2268_v0  ;;  %v2135_v11 = vadd.f32 %v4143_v33, %v2134_v47  ;;  %v2270_v46 = vmul.f32 %v1419_v51, %v1419_v51  ;;  %v4734_v0 = vpop.f32.mrf.mxu1  ;;  %v2272_v30 = vmul.f32 %v4146_v49, %v4146_v49 }
 0x169   : > { %v4147_v22 = vpop.f32.mrf.mxu0  ;;  %3993 = vst [vmem:[%s4497_s18 + $0x1e8] sm:$0xff] %v3921_v58   ;;  %v3916_v47 = vpack.c.bf16 %v4734_v0, %v4727_v41 }
 0x16a   : > { %v2136_v7 = vadd.f32 %v2135_v11, %v1419_v51  ;;  %v2396_v57 = vadd.f32 %v2395_v15, %v2269_v36  ;;  %v3771_v55 = vpack.c.bf16 %v4147_v22, %v4146_v49  ;;  %v4740_v11 = vpop.f32.mrf.mxu1  ;;  %v2273_v14 = vmul.f32 %v4147_v22, %v4147_v22 }
 0x16b   : > { %v1422_v19 = vpop.f32.mrf.mxu0  ;;  %3992 = vst [vmem:[%s4497_s18 + $0x1e0] sm:$0xff] %v3916_v47  }
 0x16c   : > { %v2397_v29 = vadd.f32 %v2396_v57, %v2270_v46  ;;  %3963 = vst [vmem:[%s4497_s18 + $0xf8] sm:$0xff] %v3771_v55   ;;  %v2137_v17 = vadd.f32 %v2136_v7, %v1422_v19  ;;  %v2271_v33 = vmul.f32 %v1422_v19, %v1422_v19  ;;  %v3766_v28 = vpack.c.bf16 %v1422_v19, %v1419_v51  ;;  %v4743_v7 = vpop.f32.mrf.mxu1 }
 0x16d   : > { %v2274_v51 = vmul.f32 %v4503_v26, %v4503_v26 }
 0x16e   : > { %v2138_v36 = vadd.f32 %v4146_v49, %v2137_v17  ;;  %v2398_v15 = vadd.f32 %v2397_v29, %v2271_v33  ;;  %3962 = vst [vmem:[%s4497_s18 + $0xf0] sm:$0xff] %v3766_v28   ;;  %v4748_v58 = vpop.f32.mrf.mxu1 }
 0x16f   : > { %v3931_v49 = vpack.c.bf16 %v4748_v58, %v4740_v11 }
 0x170   : > { %v2139_v57 = vadd.f32 %v4147_v22, %v2138_v36  ;;  %v2399_v55 = vadd.f32 %v2398_v15, %v2272_v30  ;;  %v2275_v22 = vmul.f32 %v4510_v39, %v4510_v39  ;;  %v4755_v33 = vpop.f32.mrf.mxu1  ;;  %v2277_v30 = vmul.f32 %v4505_v32, %v4505_v32 }
 0x171   : > { %3995 = vst [vmem:[%s4497_s18 + $0x1f8] sm:$0xff] %v3931_v49   ;;  %v3926_v28 = vpack.c.bf16 %v4755_v33, %v4743_v7 }
 0x172   : > { %v2140_v46 = vadd.f32 %v2139_v57, %v4503_v26  ;;  %v2400_v19 = vadd.f32 %v2399_v55, %v2273_v14  ;;  %v2276_v26 = vmul.f32 %v4501_v21, %v4501_v21  ;;  %v2278_v57 = vmul.f32 %v4519_v50, %v4519_v50 }
 0x173   : > { %3994 = vst [vmem:[%s4497_s18 + $0x1f0] sm:$0xff] %v3926_v28   ;;  %v2282_v28 = vmul.f32 %v4535_v10, %v4535_v10 }
 0x174   : > { %v2401_v29 = vadd.f32 %v2400_v19, %v2274_v51  ;;  %v2141_v17 = vadd.f32 %v2140_v46, %v4510_v39  ;;  %v2280_v19 = vmul.f32 %v4516_v45, %v4516_v45 }
 0x176   : > { %v2142_v14 = vadd.f32 %v4501_v21, %v2141_v17  ;;  %v2402_v47 = vadd.f32 %v2401_v29, %v2275_v22  ;;  %v2279_v21 = vmul.f32 %v4526_v63, %v4526_v63 }
 0x178   : > { %v2403_v36 = vadd.f32 %v2402_v47, %v2276_v26  ;;  %v2143_v15 = vadd.f32 %v4505_v32, %v2142_v14  ;;  %v2281_v32 = vmul.f32 %v4521_v56, %v4521_v56  ;;  %v2283_v47 = vmul.f32 %v4542_v24, %v4542_v24 }
 0x17a   : > { %v2144_v39 = vadd.f32 %v2143_v15, %v4519_v50  ;;  %v2404_v55 = vadd.f32 %v2403_v36, %v2277_v30 }
 0x17c   : > { %v2405_v51 = vadd.f32 %v2404_v55, %v2278_v57  ;;  %v2145_v46 = vadd.f32 %v2144_v39, %v4526_v63  ;;  %v2286_v57 = vmul.f32 %v4551_v37, %v4551_v37 }
 0x17e   : > { %v2146_v49 = vadd.f32 %v4516_v45, %v2145_v46  ;;  %v2406_v29 = vadd.f32 %v2405_v51, %v2279_v21  ;;  %v2284_v45 = vmul.f32 %v4532_v5, %v4532_v5  ;;  %v2287_v46 = vmul.f32 %v4558_v53, %v4558_v53 }
 0x180   : > { %v2407_v17 = vadd.f32 %v2406_v29, %v2280_v19  ;;  %v2147_v22 = vadd.f32 %v4521_v56, %v2146_v49  ;;  %v2285_v56 = vmul.f32 %v4537_v16, %v4537_v16 }
 0x182   : > { %v2148_v50 = vadd.f32 %v2147_v22, %v4535_v10  ;;  %v2408_v26 = vadd.f32 %v2407_v17, %v2281_v32  ;;  %v2290_v32 = vmul.f32 %v4567_v2, %v4567_v2 }
 0x184   : > { %v2409_v14 = vadd.f32 %v2408_v26, %v2282_v28  ;;  %v2149_v63 = vadd.f32 %v2148_v50, %v4542_v24  ;;  %v2291_v50 = vmul.f32 %v4574_v18, %v4574_v18 }
 0x186   : > { %v2150_v30 = vadd.f32 %v4532_v5, %v2149_v63  ;;  %v2410_v36 = vadd.f32 %v2409_v14, %v2283_v47  ;;  %v2288_v5 = vmul.f32 %v4548_v31, %v4548_v31  ;;  %v2294_v47 = vmul.f32 %v4583_v34, %v4583_v34 }
 0x188   : > { %v2411_v15 = vadd.f32 %v2410_v36, %v2284_v45  ;;  %v2151_v39 = vadd.f32 %v4537_v16, %v2150_v30  ;;  %v2289_v16 = vmul.f32 %v4553_v44, %v4553_v44  ;;  %v2295_v36 = vmul.f32 %v4590_v52, %v4590_v52 }
 0x18a   : > { %v2152_v10 = vadd.f32 %v2151_v39, %v4551_v37  ;;  %v2412_v55 = vadd.f32 %v2411_v15, %v2285_v56 }
 0x18c   : > { %v2413_v51 = vadd.f32 %v2412_v55, %v2286_v57  ;;  %v2153_v24 = vadd.f32 %v2152_v10, %v4558_v53  ;;  %v2298_v57 = vmul.f32 %v4599_v4, %v4599_v4 }
 0x18e   : > { %v2154_v21 = vadd.f32 %v4548_v31, %v2153_v24  ;;  %v2414_v19 = vadd.f32 %v2413_v51, %v2287_v46  ;;  %v2292_v31 = vmul.f32 %v4564_v60, %v4564_v60  ;;  %v2299_v24 = vmul.f32 %v4606_v23, %v4606_v23 }
 0x190   : > { %v2415_v49 = vadd.f32 %v2414_v19, %v2288_v5  ;;  %v2155_v29 = vadd.f32 %v4553_v44, %v2154_v21  ;;  %v2293_v44 = vmul.f32 %v4569_v9, %v4569_v9 }
 0x192   : > { %v2156_v37 = vadd.f32 %v2155_v29, %v4567_v2  ;;  %v2416_v17 = vadd.f32 %v2415_v49, %v2289_v16  ;;  %v2302_v16 = vmul.f32 %v4615_v43, %v4615_v43 }
 0x194   : > { %v2417_v22 = vadd.f32 %v2416_v17, %v2290_v32  ;;  %v2157_v53 = vadd.f32 %v2156_v37, %v4574_v18  ;;  %v2303_v37 = vmul.f32 %v4622_v1, %v4622_v1 }
 0x196   : > { %v2158_v28 = vadd.f32 %v4564_v60, %v2157_v53  ;;  %v2418_v26 = vadd.f32 %v2417_v22, %v2291_v50  ;;  %v2296_v60 = vmul.f32 %v4580_v27, %v4580_v27  ;;  %v2306_v50 = vmul.f32 %v4631_v20, %v4631_v20 }
 0x198   : > { %v2419_v14 = vadd.f32 %v2418_v26, %v2292_v31  ;;  %v2159_v63 = vadd.f32 %v4569_v9, %v2158_v28  ;;  %v2297_v9 = vmul.f32 %v4585_v42, %v4585_v42  ;;  %v2307_v26 = vmul.f32 %v4638_v48, %v4638_v48 }
 0x19a   : > { %v2160_v2 = vadd.f32 %v2159_v63, %v4583_v34  ;;  %v2420_v45 = vadd.f32 %v2419_v14, %v2293_v44 }
 0x19c   : > { %v2421_v30 = vadd.f32 %v2420_v45, %v2294_v47  ;;  %v2161_v18 = vadd.f32 %v2160_v2, %v4590_v52  ;;  %v2310_v47 = vmul.f32 %v4647_v8, %v4647_v8 }
 0x19e   : > { %v2162_v56 = vadd.f32 %v4580_v27, %v2161_v18  ;;  %v2422_v15 = vadd.f32 %v2421_v30, %v2295_v36  ;;  %v2300_v27 = vmul.f32 %v4596_v61, %v4596_v61  ;;  %v2311_v18 = vmul.f32 %v4654_v38, %v4654_v38 }
 0x1a0   : > { %v2423_v39 = vadd.f32 %v2422_v15, %v2296_v60  ;;  %v2163_v10 = vadd.f32 %v4585_v42, %v2162_v56  ;;  %v2301_v42 = vmul.f32 %v4601_v13, %v4601_v13 }
 0x1a2   : > { %v2164_v34 = vadd.f32 %v2163_v10, %v4599_v4  ;;  %v2424_v55 = vadd.f32 %v2423_v39, %v2297_v9  ;;  %v2314_v9 = vmul.f32 %v4663_v62, %v4663_v62 }
 0x1a4   : > { %v2425_v51 = vadd.f32 %v2424_v55, %v2298_v57  ;;  %v2165_v52 = vadd.f32 %v2164_v34, %v4606_v23 }
 0x1a6   : > { %v2166_v46 = vadd.f32 %v4596_v61, %v2165_v52  ;;  %v2426_v5 = vadd.f32 %v2425_v51, %v2299_v24  ;;  %v2304_v61 = vmul.f32 %v4612_v35, %v4612_v35  ;;  %v5013_v24 = vld [vmem:[#allocation4_spill] sm:$0xff] }
 0x1a8   : > { %v2427_v21 = vadd.f32 %v2426_v5, %v2300_v27  ;;  %v2167_v19 = vadd.f32 %v4601_v13, %v2166_v46  ;;  %v2305_v13 = vmul.f32 %v4617_v54, %v4617_v54 }
 0x1aa   : > { %v2168_v4 = vadd.f32 %v2167_v19, %v4615_v43  ;;  %v2428_v49 = vadd.f32 %v2427_v21, %v2301_v42 }
 0x1ac   : > { %v2429_v29 = vadd.f32 %v2428_v49, %v2302_v16  ;;  %v2169_v23 = vadd.f32 %v2168_v4, %v4622_v1  ;;  %v5015_v4 = vld [vmem:[#allocation9_spill] sm:$0xff] }
 0x1ad   : > { %v2319_v49 = vmul.f32 %v5015_v4, %v5015_v4 }
 0x1ae   : > { %v2170_v32 = vadd.f32 %v4612_v35, %v2169_v23  ;;  %v2430_v17 = vadd.f32 %v2429_v29, %v2303_v37  ;;  %v2308_v35 = vmul.f32 %v4628_v12, %v4628_v12  ;;  %v5016_v29 = vld [vmem:[#allocation6_spill] sm:$0xff] }
 0x1af   : > { %v2320_v23 = vmul.f32 %v5016_v29, %v5016_v29 }
 0x1b0   : > { %v2431_v22 = vadd.f32 %v2430_v17, %v2304_v61  ;;  %v2171_v53 = vadd.f32 %v4617_v54, %v2170_v32  ;;  %v2309_v54 = vmul.f32 %v4633_v25, %v4633_v25  ;;  %v5017_v32 = vld [vmem:[#allocation8_spill] sm:$0xff] }
 0x1b1   : > { %v2321_v17 = vmul.f32 %v5017_v32, %v5017_v32 }
 0x1b2   : > { %v2172_v43 = vadd.f32 %v2171_v53, %v4631_v20  ;;  %v2432_v31 = vadd.f32 %v2431_v22, %v2305_v13  ;;  %v5018_v53 = vld [vmem:[#allocation11_spill] sm:$0xff] }
 0x1b4   : > { %v2433_v28 = vadd.f32 %v2432_v31, %v2306_v50  ;;  %v2173_v1 = vadd.f32 %v2172_v43, %v4638_v48  ;;  %v2322_v50 = vmul.f32 %v5018_v53, %v5018_v53 }
 0x1b6   : > { %v2174_v44 = vadd.f32 %v4628_v12, %v2173_v1  ;;  %v2434_v14 = vadd.f32 %v2433_v28, %v2307_v26  ;;  %v2312_v12 = vmul.f32 %v4644_v59, %v4644_v59  ;;  %v5019_v1 = vld [vmem:[#allocation13_spill] sm:$0xff] }
 0x1b8   : > { %v2435_v63 = vadd.f32 %v2434_v14, %v2308_v35  ;;  %v2175_v2 = vadd.f32 %v4633_v25, %v2174_v44  ;;  %v2313_v25 = vmul.f32 %v4649_v3, %v4649_v3  ;;  %v2323_v35 = vmul.f32 %v5019_v1, %v5019_v1  ;;  %v5020_v44 = vld [vmem:[#allocation10_spill] sm:$0xff] }
 0x1b9   : > { %v2324_v14 = vmul.f32 %v5020_v44, %v5020_v44 }
 0x1ba   : > { %v2176_v20 = vadd.f32 %v2175_v2, %v4647_v8  ;;  %v2436_v45 = vadd.f32 %v2435_v63, %v2309_v54  ;;  %v5021_v2 = vld [vmem:[#allocation12_spill] sm:$0xff] }
 0x1bc   : > { %v2437_v30 = vadd.f32 %v2436_v45, %v2310_v47  ;;  %v2177_v48 = vadd.f32 %v2176_v20, %v4654_v38  ;;  %v5011_v38 = vld [vmem:[#allocation5_spill] sm:$0xff]  ;;  %v2325_v20 = vmul.f32 %v5021_v2, %v5021_v2 }
 0x1bd   : > { %v2315_v57 = vmul.f32 %v5011_v38, %v5011_v38 }
 0x1be   : > { %v2178_v36 = vadd.f32 %v4644_v59, %v2177_v48  ;;  %v2438_v60 = vadd.f32 %v2437_v30, %v2311_v18  ;;  %v5012_v59 = vld [vmem:[#allocation3_spill] sm:$0xff]  ;;  %v2326_v48 = vmul.f32 %v4711_v40, %v4711_v40 }
 0x1bf   : > { %v2316_v55 = vmul.f32 %v5012_v59, %v5012_v59 }
 0x1c0   : > { %v2439_v56 = vadd.f32 %v2438_v60, %v2312_v12  ;;  %v2179_v15 = vadd.f32 %v4649_v3, %v2178_v36  ;;  %v2317_v3 = vmul.f32 %v5013_v24, %v5013_v24  ;;  %v5022_v36 = vld [vmem:[#allocation16_spill] sm:$0xff] }
 0x1c2   : > { %v2180_v8 = vadd.f32 %v2179_v15, %v4663_v62  ;;  %v2440_v39 = vadd.f32 %v2439_v56, %v2313_v25  ;;  %v5014_v62 = vld [vmem:[#allocation7_spill] sm:$0xff]  ;;  %v2327_v25 = vmul.f32 %v5022_v36, %v5022_v36  ;;  %v5023_v56 = vld [vmem:[#allocation14_spill] sm:$0xff] }
 0x1c3   : > { %v2318_v42 = vmul.f32 %v5014_v62, %v5014_v62  ;;  %v2328_v15 = vmul.f32 %v5023_v56, %v5023_v56 }
 0x1c4   : > { %v2441_v10 = vadd.f32 %v2440_v39, %v2314_v9  ;;  %v2181_v34 = vadd.f32 %v2180_v8, %v5011_v38  ;;  %v5024_v39 = vld [vmem:[#allocation15_spill] sm:$0xff] }
 0x1c6   : > { %v2182_v51 = vadd.f32 %v5012_v59, %v2181_v34  ;;  %v2442_v52 = vadd.f32 %v2441_v10, %v2315_v57  ;;  %v2329_v10 = vmul.f32 %v5024_v39, %v5024_v39  ;;  %v2330_v57 = vmul.f32 %v4727_v41, %v4727_v41 }
 0x1c8   : > { %v2443_v27 = vadd.f32 %v2442_v52, %v2316_v55  ;;  %v2183_v46 = vadd.f32 %v5013_v24, %v2182_v51  ;;  %v2331_v52 = vmul.f32 %v4734_v0, %v4734_v0  ;;  %v2332_v24 = vmul.f32 %v4724_v6, %v4724_v6 }
 0x1ca   : > { %v2184_v5 = vadd.f32 %v2183_v46, %v5014_v62  ;;  %v2444_v21 = vadd.f32 %v2443_v27, %v2317_v3  ;;  %v5025_v46 = vld [vmem:[#allocation17_spill] sm:$0xff] }
 0x1cb   : > { %v2333_v62 = vmul.f32 %v5025_v46, %v5025_v46 }
 0x1cc   : > { %v2445_v19 = vadd.f32 %v2444_v21, %v2318_v42  ;;  %v2185_v16 = vadd.f32 %v2184_v5, %v5015_v4  ;;  %v2334_v21 = vmul.f32 %v4743_v7, %v4743_v7 }
 0x1ce   : > { %v2186_v37 = vadd.f32 %v5016_v29, %v2185_v16  ;;  %v2446_v61 = vadd.f32 %v2445_v19, %v2319_v49  ;;  %v2336_v16 = vmul.f32 %v4740_v11, %v4740_v11 }
 0x1d0   : > { %v2447_v13 = vadd.f32 %v2446_v61, %v2320_v23  ;;  %v2187_v22 = vadd.f32 %v5017_v32, %v2186_v37  ;;  %v2337_v23 = vmul.f32 %v4748_v58, %v4748_v58 }
 0x1d2   : > { %v2188_v43 = vadd.f32 %v2187_v22, %v5018_v53  ;;  %v2448_v31 = vadd.f32 %v2447_v13, %v2321_v17 }
 0x1d4   : > { %v2449_v28 = vadd.f32 %v2448_v31, %v2322_v50  ;;  %v2189_v26 = vadd.f32 %v2188_v43, %v5019_v1 }
 0x1d6   : > { %v2190_v54 = vadd.f32 %v5020_v44, %v2189_v26  ;;  %v2450_v63 = vadd.f32 %v2449_v28, %v2323_v35 }
 0x1d8   : > { %v2451_v47 = vadd.f32 %v2450_v63, %v2324_v14  ;;  %v2191_v45 = vadd.f32 %v5021_v2, %v2190_v54 }
 0x1da   : > { %v2192_v30 = vadd.f32 %v2191_v45, %v4711_v40  ;;  %v2452_v18 = vadd.f32 %v2451_v47, %v2325_v20 }
 0x1dc   : > { %v2453_v12 = vadd.f32 %v2452_v18, %v2326_v48  ;;  %v2193_v60 = vadd.f32 %v2192_v30, %v5022_v36 }
 0x1de   : > { %v2194_v8 = vadd.f32 %v5023_v56, %v2193_v60  ;;  %v2454_v9 = vadd.f32 %v2453_v12, %v2327_v25 }
 0x1e0   : > { %v2455_v38 = vadd.f32 %v2454_v9, %v2328_v15  ;;  %v2195_v34 = vadd.f32 %v5024_v39, %v2194_v8 }
 0x1e2   : > { %v2196_v40 = vadd.f32 %v2195_v34, %v4727_v41  ;;  %v2456_v59 = vadd.f32 %v2455_v38, %v2329_v10 }
 0x1e4   : > { %v2457_v55 = vadd.f32 %v2456_v59, %v2330_v57  ;;  %v2197_v51 = vadd.f32 %v2196_v40, %v4734_v0 }
 0x1e6   : > { %v2198_v3 = vadd.f32 %v4724_v6, %v2197_v51  ;;  %v2458_v27 = vadd.f32 %v2457_v55, %v2331_v52  ;;  %v2335_v6 = vmul.f32 %v4755_v33, %v4755_v33 }
 0x1e8   : > { %v2459_v5 = vadd.f32 %v2458_v27, %v2332_v24  ;;  %v2199_v41 = vadd.f32 %v5025_v46, %v2198_v3 }
 0x1ea   : > { %v2200_v42 = vadd.f32 %v2199_v41, %v4743_v7  ;;  %v2460_v19 = vadd.f32 %v2459_v5, %v2333_v62 }
 0x1ec   : > { %v2461_v0 = vadd.f32 %v2460_v19, %v2334_v21  ;;  %v2201_v4 = vadd.f32 %v2200_v42, %v4755_v33 }
 0x1ee   : > { %v2202_v49 = vadd.f32 %v4740_v11, %v2201_v4  ;;  %v2462_v29 = vadd.f32 %v2461_v0, %v2335_v6 }
 0x1f0   : > { %v2203_v37 = vadd.f32 %v4748_v58, %v2202_v49  ;;  %v2463_v7 = vadd.f32 %v2462_v29, %v2336_v16 }
 0x1f2   : > { %v2204_v61 = vrot.slane %v2203_v37, 4  ;;  %v2464_v32 = vadd.f32 %v2463_v7, %v2337_v23 }
 0x1f4   : > { %v2205_v17 = vadd.f32 %v2204_v61, %v2203_v37  ;;  %v2465_v13 = vrot.slane %v2464_v32, 4 }
 0x1f6   : > { %v2206_v22 = vrot.slane %v2205_v17, 2  ;;  %v2466_v53 = vadd.f32 %v2465_v13, %v2464_v32 }
 0x1f8   : > { %v2207_v33 = vadd.f32 %v2206_v22, %v2205_v17  ;;  %v2467_v43 = vrot.slane %v2466_v53, 2 }
 0x1fa   : > { %v2208_v50 = vrot.slane %v2207_v33, 1  ;;  %v2468_v31 = vadd.f32 %v2467_v43, %v2466_v53 }
 0x1fc   : > { %v2469_v11 = vrot.slane %v2468_v31, 1  ;;  %v2209_v28 = vadd.f32 %v2208_v50, %v2207_v33 }
 0x1fe   : > { %v2470_v1 = vadd.f32 %v2469_v11, %v2468_v31 }
 0x200   : > { %v2472_v58 = vsel %vm2471_vm0, %v2209_v28, %v2470_v1 }
 0x201   : > { %v2474_v26 = vsel %vm2473_vm1, %v2472_v58, 0.0 }
 0x202   : > { %2475 = vst [vmem:[%s307_s22] sm:$0xff] %v2474_v26 }
 0x203 PF: > { %s15_s17 = sadd.s32 1, %s4346_s17   ;;  %s5026_s15 = smov %s4342_s16 }
 0x204   : > { %p12_p6 = scmp.ge.s32.totalorder %s15_s17, 4   ;;  %s5027_s16 = smov %s5029_s2 }
 0x206   :  { %14 = sbr.rel (!%p12_p6) target bundleno = 2 (0x2), region = 88 }

</bundles_post_ra>
